<compile_context>
chip_gen: v5e
topology: v5e:2x2
jax: 0.10.0
libtpu: 0.0.40
codegen_flags: <defaults>
</compile_context>

<pallas_src>
import jax
import jax.numpy as jnp
from jax import lax
from jax.experimental import pallas as pl
from jax.experimental.pallas import tpu as pltpu

_OFF = 8  # sublane-aligned offset of the valid rows inside the padded VMEM scratch


# ------------------------------ fused kernel ------------------------------- #

def _fused_kernel(x_ref, w1_ref, b1_ref, w2_ref, b2_ref, w3_ref, b3_ref,
                  wf1_ref, bf1_ref, wf2_ref, bf2_ref, wf3_ref, bf3_ref,
                  out_ref, p1_ref, p2_ref, p3_ref):
    """Whole network for one batch block.

    Activations are channel-last (block_b, length, channels): length on sublanes,
    channels on lanes.  All intermediates live in VMEM scratch refs.
    """
    f32, bf16 = jnp.float32, jnp.bfloat16
    bb = x_ref.shape[0]
    L = x_ref.shape[1] - 4
    L1, L2, L3 = L // 2, L // 4, L // 8
    C1 = w1_ref.shape[1]      # 32
    C2 = w2_ref.shape[2]      # 64
    C3 = w3_ref.shape[2]      # 128

    # --- stage 1: conv1 (1->C1, k=5, pad=2) + BN1 + ReLU + MaxPool(2)  [VPU] ---
    # pooled position p = max over conv positions t=2p (taps x_pad[2p+k]) and
    # t=2p+1 (taps x_pad[2p+1+k]); the 6 distinct stride-2 taps are loaded once.
    w1 = w1_ref[...]                                              # (5, C1) f32
    taps1 = [x_ref[:, pl.ds(j, L1, 2), :] for j in range(6)]      # (bb, L1, 1) each
    acc_e = taps1[0] * w1[0:1, :].reshape(1, 1, C1)
    acc_o = taps1[1] * w1[0:1, :].reshape(1, 1, C1)
    for k in range(1, 5):
        wk = w1[k:k + 1, :].reshape(1, 1, C1)
        acc_e = acc_e + taps1[k] * wk
        acc_o = acc_o + taps1[k + 1] * wk
    p1 = jnp.maximum(jnp.maximum(acc_e, acc_o) + b1_ref[...].reshape(1, 1, C1), 0.0)

    p1_ref[...] = jnp.zeros(p1_ref.shape, f32)                    # zero-pad halo
    p1_ref[:, _OFF:_OFF + L1, :] = p1

    # --- stage 2: conv2 (C1->C2, k=3, pad=1) + BN2 + ReLU + MaxPool(2)  [MXU] ---
    # even/odd pooled positions stacked along M -> one matmul per tap k.
    m2 = bb * L2
    taps2 = [p1_ref[:, pl.ds(_OFF - 1 + j, L2, 2), :].reshape(m2, C1)
             for j in range(4)]                                   # (m2, C1) each
    acc2 = None
    for k in range(3):
        xk = jnp.concatenate([taps2[k], taps2[k + 1]], axis=0).astype(bf16)
        d = jnp.dot(xk, w2_ref[k], preferred_element_type=f32)    # (2*m2, C2)
        acc2 = d if acc2 is None else acc2 + d
    p2 = jnp.maximum(jnp.maximum(acc2[:m2], acc2[m2:]) + b2_ref[...], 0.0)

    p2_ref[...] = jnp.zeros(p2_ref.shape, f32)
    p2_ref[:, _OFF:_OFF + L2, :] = p2.reshape(bb, L2, C2)

    # --- stage 3: conv3 (C2->C3, k=3, pad=1) + BN3 + ReLU + MaxPool(2)  [MXU] ---
    m3 = bb * L3
    taps3 = [p2_ref[:, pl.ds(_OFF - 1 + j, L3, 2), :].reshape(m3, C2)
             for j in range(4)]                                   # (m3, C2) each
    acc3 = None
    for k in range(3):
        xk = jnp.concatenate([taps3[k], taps3[k + 1]], axis=0).astype(bf16)
        d = jnp.dot(xk, w3_ref[k], preferred_element_type=f32)    # (2*m3, C3)
        acc3 = d if acc3 is None else acc3 + d
    p3 = jnp.maximum(jnp.maximum(acc3[:m3], acc3[m3:]) + b3_ref[...], 0.0)
    p3_ref[...] = p3.reshape(bb, L3, C3).astype(bf16)

    # --- FC head: fc1+BN4+ReLU -> fc2+BN5+ReLU -> fc3 --------------------------
    # fc1 contracts over (length, channel); the torch channel-major flatten was
    # folded into a (L3, C3, H2) weight permutation at trace time, so we simply
    # sum per-position matmuls and never transpose the activation in-kernel.
    h4 = None
    for l in range(L3):
        d = jnp.dot(p3_ref[:, l, :], wf1_ref[l], preferred_element_type=f32)
        h4 = d if h4 is None else h4 + d
    h4 = jnp.maximum(h4 + bf1_ref[...], 0.0)
    # TODO(synk): Dropout(0.5)/Dropout(0.3) are identity (eval mode) and BatchNorm
    # uses folded running statistics; training-mode behaviour is not implemented.
    h5 = jnp.dot(h4.astype(bf16), wf2_ref[...], preferred_element_type=f32) + bf2_ref[...]
    h5 = jnp.maximum(h5, 0.0)
    out_ref[...] = (jnp.dot(h5.astype(bf16), wf3_ref[...],
                            preferred_element_type=f32) + bf3_ref[...])


# ------------------------------ forward wrapper ----------------------------- #

def fingerprint_forward(x, params, block_b=4, eps=1e-5):
    """x: (B, input_size) float32 -> logits (B, num_classes) (eval mode)."""
    f32, bf16 = jnp.float32, jnp.bfloat16
    B, L = x.shape
    assert L % 64 == 0, "input_size must be a multiple of 64 (keeps tiles aligned)"
    assert B % block_b == 0
    G = B // block_b
    L1, L2, L3 = L // 2, L // 4, L // 8

    def fold(w, b, pre):
        g, beta, m, v = (params[f"{pre}_{n}"] for n in ("g", "b", "m", "v"))
        s = g / jnp.sqrt(v + eps)
        return w * s.reshape((-1,) + (1,) * (w.ndim - 1)), (b - m) * s + beta

    w1f, b1f = fold(params["conv1_w"], params["conv1_b"], "bn1")
    w2f, b2f = fold(params["conv2_w"], params["conv2_b"], "bn2")
    w3f, b3f = fold(params["conv3_w"], params["conv3_b"], "bn3")
    f1f, c1f = fold(params["fc1_w"], params["fc1_b"], "bn4")
    f2f, c2f = fold(params["fc2_w"], params["fc2_b"], "bn5")

    C1, C2, C3 = w1f.shape[0], w2f.shape[0], w3f.shape[0]
    H2, H = f1f.shape[0], f2f.shape[0]
    NC = params["fc3_w"].shape[0]

    # conv weights -> (k, Cin, Cout); conv1 stays f32 (VPU path), conv2/3 bf16 (MXU)
    w1_t = jnp.transpose(w1f[:, 0, :], (1, 0)).astype(f32)                 # (5, C1)
    w2_t = jnp.transpose(w2f, (2, 1, 0)).astype(bf16)                      # (3, C1, C2)
    w3_t = jnp.transpose(w3f, (2, 1, 0)).astype(bf16)                      # (3, C2, C3)
    b1_2 = b1f.reshape(1, C1).astype(f32)
    b2_2 = b2f.reshape(1, C2).astype(f32)
    b3_2 = b3f.reshape(1, C3).astype(f32)
    # fc1: permute so torch's channel-major flatten matches the kernel's
    # (length, channel) ordering -> no in-kernel transpose of p3.
    wf1 = jnp.transpose(f1f.reshape(H2, C3, L3), (2, 1, 0)).astype(bf16)   # (L3, C3, H2)
    bf1 = c1f.reshape(1, H2).astype(f32)
    wf2 = jnp.transpose(f2f, (1, 0)).astype(bf16)                          # (H2, H)
    bf2 = c2f.reshape(1, H).astype(f32)
    wf3 = jnp.transpose(params["fc3_w"], (1, 0)).astype(bf16)              # (H, NC)
    bf3 = params["fc3_b"].reshape(1, NC).astype(f32)

    x_pad = jnp.pad(x.astype(f32), ((0, 0), (2, 2))).reshape(G, block_b, L + 4, 1)

    weights = (w1_t, b1_2, w2_t, b2_2, w3_t, b3_2, wf1, bf1, wf2, bf2, wf3, bf3)

    def full_spec(a):
        if a.ndim == 2:
            return pl.BlockSpec(a.shape, lambda g: (0, 0))
        return pl.BlockSpec(a.shape, lambda g: (0, 0, 0))

    out = pl.pallas_call(
        _fused_kernel,
        out_shape=jax.ShapeDtypeStruct((G, block_b, NC), f32),
        grid=(G,),
        in_specs=[pl.BlockSpec((None, block_b, L + 4, 1), lambda g: (g, 0, 0, 0))]
                 + [full_spec(a) for a in weights],
        out_specs=pl.BlockSpec((None, block_b, NC), lambda g: (g, 0, 0)),
        scratch_shapes=[
            pltpu.VMEM((block_b, L1 + 16, C1), f32),   # p1 (zero-padded halo)
            pltpu.VMEM((block_b, L2 + 16, C2), f32),   # p2 (zero-padded halo)
            pltpu.VMEM((block_b, L3, C3), bf16),       # p3 (pre-flatten)
        ],
        compiler_params=pltpu.CompilerParams(dimension_semantics=("parallel",)),
    )(x_pad, *weights)
    return out.reshape(B, NC)


# ---------------------- pure-JAX reference (for checking) ------------------- #

def _bn_eval(h, g, b, m, v, eps=1e-5):
    if h.ndim == 3:
        g, b, m, v = (t[None, :, None] for t in (g, b, m, v))
    return (h - m) / jnp.sqrt(v + eps) * g + b


def reference_forward(x, params, eps=1e-5):
    """Eval-mode reference in f32 / HIGHEST precision."""
    P = lax.Precision.HIGHEST
    dn = ("NCH", "OIH", "NCH")

    def block(h, wname, bnname, pad):
        h = lax.conv_general_dilated(h, params[f"{wname}_w"], (1,), [(pad, pad)],
                                     dimension_numbers=dn, precision=P)
        h = h + params[f"{wname}_b"][None, :, None]
        h = jax.nn.relu(_bn_eval(h, params[f"{bnname}_g"], params[f"{bnname}_b"],
                                 params[f"{bnname}_m"], params[f"{bnname}_v"], eps))
        return lax.reduce_window(h, -jnp.inf, lax.max, (1, 1, 2), (1, 1, 2), "VALID")

    h = block(x[:, None, :], "conv1", "bn1", 2)
    h = block(h, "conv2", "bn2", 1)
    h = block(h, "conv3", "bn3", 1)
    flat = h.reshape(h.shape[0], -1)                  # channel-major, like .view()
    h = jnp.dot(flat, params["fc1_w"].T, precision=P) + params["fc1_b"]
    h = jax.nn.relu(_bn_eval(h, params["bn4_g"], params["bn4_b"],
                             params["bn4_m"], params["bn4_v"], eps))
    h = jnp.dot(h, params["fc2_w"].T, precision=P) + params["fc2_b"]
    h = jax.nn.relu(_bn_eval(h, params["bn5_g"], params["bn5_b"],
                             params["bn5_m"], params["bn5_v"], eps))
    return jnp.dot(h, params["fc3_w"].T, precision=P) + params["fc3_b"]


# ----------------------------------- main ----------------------------------- #

if __name__ == "__main__":
    input_size = 128          # multiple of 64
    hidden_size = 32
    num_classes = 10
    batch = 8
    L3 = input_size // 8
    fc_in = L3 * 128

    key = jax.random.PRNGKey(0)
    ks = iter(jax.random.split(key, 40))

    def winit(shape, fan_in):
        return jax.random.normal(next(ks), shape, jnp.float32) / jnp.sqrt(float(fan_in))

    def bn(c):
        return {
            "g": 1.0 + 0.1 * jax.random.normal(next(ks), (c,), jnp.float32),
            "b": 0.1 * jax.random.normal(next(ks), (c,), jnp.float32),
            "m": 0.1 * jax.random.normal(next(ks), (c,), jnp.float32),
            "v": jax.random.uniform(next(ks), (c,), jnp.float32, 0.5, 1.5),
        }

    params = {
        "conv1_w": winit((32, 1, 5), 5),      "conv1_b": winit((32,), 5),
        "conv2_w": winit((64, 32, 3), 96),    "conv2_b": winit((64,), 96),
        "conv3_w": winit((128, 64, 3), 192),  "conv3_b": winit((128,), 192),
        "fc1_w": winit((hidden_size * 2, fc_in), fc_in),
        "fc1_b": winit((hidden_size * 2,), fc_in),
        "fc2_w": winit((hidden_size, hidden_size * 2), hidden_size * 2),
        "fc2_b": winit((hidden_size,), hidden_size * 2),
        "fc3_w": winit((num_classes, hidden_size), hidden_size),
        "fc3_b": winit((num_classes,), hidden_size),
    }
    for i, c in ((1, 32), (2, 64), (3, 128), (4, hidden_size * 2), (5, hidden_size)):
        for n, v in bn(c).items():
            params[f"bn{i}_{n}"] = v

    x = jax.random.normal(next(ks), (batch, input_size), jnp.float32)

    fwd = jax.jit(fingerprint_forward)
    out = jax.block_until_ready(fwd(x, params))
    assert out.shape == (batch, num_classes)

    ref = reference_forward(x, params)
    assert jnp.allclose(out, ref, atol=3e-2, rtol=3e-2), float(jnp.max(jnp.abs(out - ref)))
    print("KERNEL_OK")
</pallas_src>

<mosaic_0001>
module attributes {stable_mosaic.version = 11 : i64} {
  func.func @_fused_kernel(%arg0: i32, %arg1: memref<1x4x132x1xf32, #tpu.memory_space<vmem>>, %arg2: memref<5x32xf32, #tpu.memory_space<vmem>>, %arg3: memref<1x32xf32, #tpu.memory_space<vmem>>, %arg4: memref<3x32x64xbf16, #tpu.memory_space<vmem>>, %arg5: memref<1x64xf32, #tpu.memory_space<vmem>>, %arg6: memref<3x64x128xbf16, #tpu.memory_space<vmem>>, %arg7: memref<1x128xf32, #tpu.memory_space<vmem>>, %arg8: memref<16x128x64xbf16, #tpu.memory_space<vmem>>, %arg9: memref<1x64xf32, #tpu.memory_space<vmem>>, %arg10: memref<64x32xbf16, #tpu.memory_space<vmem>>, %arg11: memref<1x32xf32, #tpu.memory_space<vmem>>, %arg12: memref<32x10xbf16, #tpu.memory_space<vmem>>, %arg13: memref<1x10xf32, #tpu.memory_space<vmem>>, %arg14: memref<1x4x10xf32, #tpu.memory_space<vmem>>, %arg15: memref<4x80x32xf32, #tpu.memory_space<vmem>>, %arg16: memref<4x48x64xf32, #tpu.memory_space<vmem>>, %arg17: memref<4x16x128xbf16, #tpu.memory_space<vmem>>) attributes {dimension_semantics = [#tpu.dimension_semantics<parallel>], iteration_bounds = array<i64: 2>, scalar_prefetch = 0 : i64, scratch_operands = 3 : i64, tpu.core_type = #tpu.core_type<tc>, window_params = [{transform_indices = @transform_0, window_bounds = array<i64: 1, 4, 132, 1>}, {pipeline_mode = #tpu.pipeline_mode<synchronous>, transform_indices = @transform_1, window_bounds = array<i64: 5, 32>}, {pipeline_mode = #tpu.pipeline_mode<synchronous>, transform_indices = @transform_2, window_bounds = array<i64: 1, 32>}, {pipeline_mode = #tpu.pipeline_mode<synchronous>, transform_indices = @transform_3, window_bounds = array<i64: 3, 32, 64>}, {pipeline_mode = #tpu.pipeline_mode<synchronous>, transform_indices = @transform_4, window_bounds = array<i64: 1, 64>}, {pipeline_mode = #tpu.pipeline_mode<synchronous>, transform_indices = @transform_5, window_bounds = array<i64: 3, 64, 128>}, {pipeline_mode = #tpu.pipeline_mode<synchronous>, transform_indices = @transform_6, window_bounds = array<i64: 1, 128>}, {pipeline_mode = #tpu.pipeline_mode<synchronous>, transform_indices = @transform_7, window_bounds = array<i64: 16, 128, 64>}, {pipeline_mode = #tpu.pipeline_mode<synchronous>, transform_indices = @transform_8, window_bounds = array<i64: 1, 64>}, {pipeline_mode = #tpu.pipeline_mode<synchronous>, transform_indices = @transform_9, window_bounds = array<i64: 64, 32>}, {pipeline_mode = #tpu.pipeline_mode<synchronous>, transform_indices = @transform_10, window_bounds = array<i64: 1, 32>}, {pipeline_mode = #tpu.pipeline_mode<synchronous>, transform_indices = @transform_11, window_bounds = array<i64: 32, 10>}, {pipeline_mode = #tpu.pipeline_mode<synchronous>, transform_indices = @transform_12, window_bounds = array<i64: 1, 10>}, {transform_indices = @transform_13, window_bounds = array<i64: 1, 4, 10>}]} {
    %c0 = arith.constant 0 : index
    %c0_0 = arith.constant 0 : index
    %0 = vector.load %arg2[%c0, %c0_0] : memref<5x32xf32, #tpu.memory_space<vmem>>, vector<5x32xf32>
    %c0_1 = arith.constant 0 : index
    %c0_2 = arith.constant 0 : index
    %c0_3 = arith.constant 0 : index
    %c0_4 = arith.constant 0 : index
    %1 = tpu.strided_load %arg1[%c0_1, %c0_2, %c0_3, %c0_4] {strides = array<i32: 1, 1, 2, 1>} : memref<1x4x132x1xf32, #tpu.memory_space<vmem>>, vector<1x4x64x1xf32>
    %2 = vector.shape_cast %1 : vector<1x4x64x1xf32> to vector<4x64x1xf32>
    %c0_5 = arith.constant 0 : index
    %c0_6 = arith.constant 0 : index
    %c1 = arith.constant 1 : index
    %c0_7 = arith.constant 0 : index
    %3 = tpu.strided_load %arg1[%c0_5, %c0_6, %c1, %c0_7] {strides = array<i32: 1, 1, 2, 1>} : memref<1x4x132x1xf32, #tpu.memory_space<vmem>>, vector<1x4x64x1xf32>
    %4 = vector.shape_cast %3 : vector<1x4x64x1xf32> to vector<4x64x1xf32>
    %c0_8 = arith.constant 0 : index
    %c0_9 = arith.constant 0 : index
    %c2 = arith.constant 2 : index
    %c0_10 = arith.constant 0 : index
    %5 = tpu.strided_load %arg1[%c0_8, %c0_9, %c2, %c0_10] {strides = array<i32: 1, 1, 2, 1>} : memref<1x4x132x1xf32, #tpu.memory_space<vmem>>, vector<1x4x64x1xf32>
    %6 = vector.shape_cast %5 : vector<1x4x64x1xf32> to vector<4x64x1xf32>
    %c0_11 = arith.constant 0 : index
    %c0_12 = arith.constant 0 : index
    %c3 = arith.constant 3 : index
    %c0_13 = arith.constant 0 : index
    %7 = tpu.strided_load %arg1[%c0_11, %c0_12, %c3, %c0_13] {strides = array<i32: 1, 1, 2, 1>} : memref<1x4x132x1xf32, #tpu.memory_space<vmem>>, vector<1x4x64x1xf32>
    %8 = vector.shape_cast %7 : vector<1x4x64x1xf32> to vector<4x64x1xf32>
    %c0_14 = arith.constant 0 : index
    %c0_15 = arith.constant 0 : index
    %c4 = arith.constant 4 : index
    %c0_16 = arith.constant 0 : index
    %9 = tpu.strided_load %arg1[%c0_14, %c0_15, %c4, %c0_16] {strides = array<i32: 1, 1, 2, 1>} : memref<1x4x132x1xf32, #tpu.memory_space<vmem>>, vector<1x4x64x1xf32>
    %10 = vector.shape_cast %9 : vector<1x4x64x1xf32> to vector<4x64x1xf32>
    %c0_17 = arith.constant 0 : index
    %c0_18 = arith.constant 0 : index
    %c5 = arith.constant 5 : index
    %c0_19 = arith.constant 0 : index
    %11 = tpu.strided_load %arg1[%c0_17, %c0_18, %c5, %c0_19] {strides = array<i32: 1, 1, 2, 1>} : memref<1x4x132x1xf32, #tpu.memory_space<vmem>>, vector<1x4x64x1xf32>
    %12 = vector.shape_cast %11 : vector<1x4x64x1xf32> to vector<4x64x1xf32>
    %13 = vector.extract_strided_slice %0 {offsets = [0, 0], sizes = [1, 32], strides = [1, 1]} : vector<5x32xf32> to vector<1x32xf32>
    %14 = vector.shape_cast %13 : vector<1x32xf32> to vector<1x1x32xf32>
    %15 = vector.broadcast %2 : vector<4x64x1xf32> to vector<4x64x32xf32>
    %16 = vector.broadcast %14 : vector<1x1x32xf32> to vector<4x64x32xf32>
    %17 = arith.mulf %15, %16 : vector<4x64x32xf32>
    %18 = vector.extract_strided_slice %0 {offsets = [0, 0], sizes = [1, 32], strides = [1, 1]} : vector<5x32xf32> to vector<1x32xf32>
    %19 = vector.shape_cast %18 : vector<1x32xf32> to vector<1x1x32xf32>
    %20 = vector.broadcast %4 : vector<4x64x1xf32> to vector<4x64x32xf32>
    %21 = vector.broadcast %19 : vector<1x1x32xf32> to vector<4x64x32xf32>
    %22 = arith.mulf %20, %21 : vector<4x64x32xf32>
    %23 = vector.extract_strided_slice %0 {offsets = [1, 0], sizes = [1, 32], strides = [1, 1]} : vector<5x32xf32> to vector<1x32xf32>
    %24 = vector.shape_cast %23 : vector<1x32xf32> to vector<1x1x32xf32>
    %25 = vector.broadcast %4 : vector<4x64x1xf32> to vector<4x64x32xf32>
    %26 = vector.broadcast %24 : vector<1x1x32xf32> to vector<4x64x32xf32>
    %27 = arith.mulf %25, %26 : vector<4x64x32xf32>
    %28 = arith.addf %17, %27 : vector<4x64x32xf32>
    %29 = vector.broadcast %6 : vector<4x64x1xf32> to vector<4x64x32xf32>
    %30 = vector.broadcast %24 : vector<1x1x32xf32> to vector<4x64x32xf32>
    %31 = arith.mulf %29, %30 : vector<4x64x32xf32>
    %32 = arith.addf %22, %31 : vector<4x64x32xf32>
    %33 = vector.extract_strided_slice %0 {offsets = [2, 0], sizes = [1, 32], strides = [1, 1]} : vector<5x32xf32> to vector<1x32xf32>
    %34 = vector.shape_cast %33 : vector<1x32xf32> to vector<1x1x32xf32>
    %35 = vector.broadcast %6 : vector<4x64x1xf32> to vector<4x64x32xf32>
    %36 = vector.broadcast %34 : vector<1x1x32xf32> to vector<4x64x32xf32>
    %37 = arith.mulf %35, %36 : vector<4x64x32xf32>
    %38 = arith.addf %28, %37 : vector<4x64x32xf32>
    %39 = vector.broadcast %8 : vector<4x64x1xf32> to vector<4x64x32xf32>
    %40 = vector.broadcast %34 : vector<1x1x32xf32> to vector<4x64x32xf32>
    %41 = arith.mulf %39, %40 : vector<4x64x32xf32>
    %42 = arith.addf %32, %41 : vector<4x64x32xf32>
    %43 = vector.extract_strided_slice %0 {offsets = [3, 0], sizes = [1, 32], strides = [1, 1]} : vector<5x32xf32> to vector<1x32xf32>
    %44 = vector.shape_cast %43 : vector<1x32xf32> to vector<1x1x32xf32>
    %45 = vector.broadcast %8 : vector<4x64x1xf32> to vector<4x64x32xf32>
    %46 = vector.broadcast %44 : vector<1x1x32xf32> to vector<4x64x32xf32>
    %47 = arith.mulf %45, %46 : vector<4x64x32xf32>
    %48 = arith.addf %38, %47 : vector<4x64x32xf32>
    %49 = vector.broadcast %10 : vector<4x64x1xf32> to vector<4x64x32xf32>
    %50 = vector.broadcast %44 : vector<1x1x32xf32> to vector<4x64x32xf32>
    %51 = arith.mulf %49, %50 : vector<4x64x32xf32>
    %52 = arith.addf %42, %51 : vector<4x64x32xf32>
    %53 = vector.extract_strided_slice %0 {offsets = [4, 0], sizes = [1, 32], strides = [1, 1]} : vector<5x32xf32> to vector<1x32xf32>
    %54 = vector.shape_cast %53 : vector<1x32xf32> to vector<1x1x32xf32>
    %55 = vector.broadcast %10 : vector<4x64x1xf32> to vector<4x64x32xf32>
    %56 = vector.broadcast %54 : vector<1x1x32xf32> to vector<4x64x32xf32>
    %57 = arith.mulf %55, %56 : vector<4x64x32xf32>
    %58 = arith.addf %48, %57 : vector<4x64x32xf32>
    %59 = vector.broadcast %12 : vector<4x64x1xf32> to vector<4x64x32xf32>
    %60 = vector.broadcast %54 : vector<1x1x32xf32> to vector<4x64x32xf32>
    %61 = arith.mulf %59, %60 : vector<4x64x32xf32>
    %62 = arith.addf %52, %61 : vector<4x64x32xf32>
    %63 = arith.maximumf %58, %62 : vector<4x64x32xf32>
    %c0_20 = arith.constant 0 : index
    %c0_21 = arith.constant 0 : index
    %64 = vector.load %arg3[%c0_20, %c0_21] : memref<1x32xf32, #tpu.memory_space<vmem>>, vector<1x32xf32>
    %65 = vector.shape_cast %64 : vector<1x32xf32> to vector<1x1x32xf32>
    %66 = vector.broadcast %65 : vector<1x1x32xf32> to vector<4x64x32xf32>
    %67 = arith.addf %63, %66 : vector<4x64x32xf32>
    %cst = arith.constant 0.000000e+00 : f32
    %68 = vector.broadcast %cst : f32 to vector<4x64x32xf32>
    %69 = arith.maximumf %67, %68 : vector<4x64x32xf32>
    %cst_22 = arith.constant 0.000000e+00 : f32
    %70 = vector.broadcast %cst_22 : f32 to vector<4x80x32xf32>
    %c0_23 = arith.constant 0 : index
    %c0_24 = arith.constant 0 : index
    %c0_25 = arith.constant 0 : index
    %71 = vector.load %arg15[%c0_23, %c0_24, %c0_25] : memref<4x80x32xf32, #tpu.memory_space<vmem>>, vector<4x80x32xf32>
    tpu.vector_store %arg15[%c0_23, %c0_24, %c0_25], %70 {strides = array<i32>} : memref<4x80x32xf32, #tpu.memory_space<vmem>>, vector<4x80x32xf32>,
    %c0_26 = arith.constant 0 : index
    %c8 = arith.constant 8 : index
    %c0_27 = arith.constant 0 : index
    %72 = vector.load %arg15[%c0_26, %c8, %c0_27] : memref<4x80x32xf32, #tpu.memory_space<vmem>>, vector<4x64x32xf32>
    tpu.vector_store %arg15[%c0_26, %c8, %c0_27], %69 {strides = array<i32>} : memref<4x80x32xf32, #tpu.memory_space<vmem>>, vector<4x64x32xf32>,
    %c0_28 = arith.constant 0 : index
    %c7 = arith.constant 7 : index
    %c0_29 = arith.constant 0 : index
    %73 = tpu.strided_load %arg15[%c0_28, %c7, %c0_29] {strides = array<i32: 1, 2, 1>} : memref<4x80x32xf32, #tpu.memory_space<vmem>>, vector<4x32x32xf32>
    %74 = vector.shape_cast %73 : vector<4x32x32xf32> to vector<128x32xf32>
    %c0_30 = arith.constant 0 : index
    %c8_31 = arith.constant 8 : index
    %c0_32 = arith.constant 0 : index
    %75 = tpu.strided_load %arg15[%c0_30, %c8_31, %c0_32] {strides = array<i32: 1, 2, 1>} : memref<4x80x32xf32, #tpu.memory_space<vmem>>, vector<4x32x32xf32>
    %76 = vector.shape_cast %75 : vector<4x32x32xf32> to vector<128x32xf32>
    %c0_33 = arith.constant 0 : index
    %c9 = arith.constant 9 : index
    %c0_34 = arith.constant 0 : index
    %77 = tpu.strided_load %arg15[%c0_33, %c9, %c0_34] {strides = array<i32: 1, 2, 1>} : memref<4x80x32xf32, #tpu.memory_space<vmem>>, vector<4x32x32xf32>
    %78 = vector.shape_cast %77 : vector<4x32x32xf32> to vector<128x32xf32>
    %c0_35 = arith.constant 0 : index
    %c10 = arith.constant 10 : index
    %c0_36 = arith.constant 0 : index
    %79 = tpu.strided_load %arg15[%c0_35, %c10, %c0_36] {strides = array<i32: 1, 2, 1>} : memref<4x80x32xf32, #tpu.memory_space<vmem>>, vector<4x32x32xf32>
    %80 = vector.shape_cast %79 : vector<4x32x32xf32> to vector<128x32xf32>
    %81 = tpu.concatenate %74, %76 in 0 : vector<128x32xf32>, vector<128x32xf32> -> vector<256x32xf32>
    %82 = arith.truncf %81 : vector<256x32xf32> to vector<256x32xbf16>
    %c0_37 = arith.constant 0 : index
    %c0_38 = arith.constant 0 : index
    %c0_39 = arith.constant 0 : index
    %83 = vector.load %arg4[%c0_37, %c0_38, %c0_39] : memref<3x32x64xbf16, #tpu.memory_space<vmem>>, vector<1x32x64xbf16>
    %84 = vector.shape_cast %83 : vector<1x32x64xbf16> to vector<32x64xbf16>
    %cst_40 = arith.constant dense<0.000000e+00> : vector<256x64xf32>
    %85 = tpu.matmul %82, %84, %cst_40 {dimension_numbers = #tpu.dot_dimension_numbers<[1], [0], [0], [1], [0, 0, 1, 1], [], []>} : vector<256x32xbf16>, vector<32x64xbf16>, vector<256x64xf32> -> vector<256x64xf32>
    %86 = tpu.concatenate %76, %78 in 0 : vector<128x32xf32>, vector<128x32xf32> -> vector<256x32xf32>
    %87 = arith.truncf %86 : vector<256x32xf32> to vector<256x32xbf16>
    %c1_41 = arith.constant 1 : index
    %c0_42 = arith.constant 0 : index
    %c0_43 = arith.constant 0 : index
    %88 = vector.load %arg4[%c1_41, %c0_42, %c0_43] : memref<3x32x64xbf16, #tpu.memory_space<vmem>>, vector<1x32x64xbf16>
    %89 = vector.shape_cast %88 : vector<1x32x64xbf16> to vector<32x64xbf16>
    %cst_44 = arith.constant dense<0.000000e+00> : vector<256x64xf32>
    %90 = tpu.matmul %87, %89, %cst_44 {dimension_numbers = #tpu.dot_dimension_numbers<[1], [0], [0], [1], [0, 0, 1, 1], [], []>} : vector<256x32xbf16>, vector<32x64xbf16>, vector<256x64xf32> -> vector<256x64xf32>
    %91 = arith.addf %85, %90 : vector<256x64xf32>
    %92 = tpu.concatenate %78, %80 in 0 : vector<128x32xf32>, vector<128x32xf32> -> vector<256x32xf32>
    %93 = arith.truncf %92 : vector<256x32xf32> to vector<256x32xbf16>
    %c2_45 = arith.constant 2 : index
    %c0_46 = arith.constant 0 : index
    %c0_47 = arith.constant 0 : index
    %94 = vector.load %arg4[%c2_45, %c0_46, %c0_47] : memref<3x32x64xbf16, #tpu.memory_space<vmem>>, vector<1x32x64xbf16>
    %95 = vector.shape_cast %94 : vector<1x32x64xbf16> to vector<32x64xbf16>
    %cst_48 = arith.constant dense<0.000000e+00> : vector<256x64xf32>
    %96 = tpu.matmul %93, %95, %cst_48 {dimension_numbers = #tpu.dot_dimension_numbers<[1], [0], [0], [1], [0, 0, 1, 1], [], []>} : vector<256x32xbf16>, vector<32x64xbf16>, vector<256x64xf32> -> vector<256x64xf32>
    %97 = arith.addf %91, %96 : vector<256x64xf32>
    %98 = vector.extract_strided_slice %97 {offsets = [0, 0], sizes = [128, 64], strides = [1, 1]} : vector<256x64xf32> to vector<128x64xf32>
    %99 = vector.extract_strided_slice %97 {offsets = [128, 0], sizes = [128, 64], strides = [1, 1]} : vector<256x64xf32> to vector<128x64xf32>
    %100 = arith.maximumf %98, %99 : vector<128x64xf32>
    %c0_49 = arith.constant 0 : index
    %c0_50 = arith.constant 0 : index
    %101 = vector.load %arg5[%c0_49, %c0_50] : memref<1x64xf32, #tpu.memory_space<vmem>>, vector<1x64xf32>
    %102 = vector.broadcast %101 : vector<1x64xf32> to vector<128x64xf32>
    %103 = arith.addf %100, %102 : vector<128x64xf32>
    %cst_51 = arith.constant 0.000000e+00 : f32
    %104 = vector.broadcast %cst_51 : f32 to vector<128x64xf32>
    %105 = arith.maximumf %103, %104 : vector<128x64xf32>
    %cst_52 = arith.constant 0.000000e+00 : f32
    %106 = vector.broadcast %cst_52 : f32 to vector<4x48x64xf32>
    %c0_53 = arith.constant 0 : index
    %c0_54 = arith.constant 0 : index
    %c0_55 = arith.constant 0 : index
    %107 = vector.load %arg16[%c0_53, %c0_54, %c0_55] : memref<4x48x64xf32, #tpu.memory_space<vmem>>, vector<4x48x64xf32>
    tpu.vector_store %arg16[%c0_53, %c0_54, %c0_55], %106 {strides = array<i32>} : memref<4x48x64xf32, #tpu.memory_space<vmem>>, vector<4x48x64xf32>,
    %108 = vector.shape_cast %105 : vector<128x64xf32> to vector<4x32x64xf32>
    %c0_56 = arith.constant 0 : index
    %c8_57 = arith.constant 8 : index
    %c0_58 = arith.constant 0 : index
    %109 = vector.load %arg16[%c0_56, %c8_57, %c0_58] : memref<4x48x64xf32, #tpu.memory_space<vmem>>, vector<4x32x64xf32>
    tpu.vector_store %arg16[%c0_56, %c8_57, %c0_58], %108 {strides = array<i32>} : memref<4x48x64xf32, #tpu.memory_space<vmem>>, vector<4x32x64xf32>,
    %c0_59 = arith.constant 0 : index
    %c7_60 = arith.constant 7 : index
    %c0_61 = arith.constant 0 : index
    %110 = tpu.strided_load %arg16[%c0_59, %c7_60, %c0_61] {strides = array<i32: 1, 2, 1>} : memref<4x48x64xf32, #tpu.memory_space<vmem>>, vector<4x16x64xf32>
    %111 = vector.shape_cast %110 : vector<4x16x64xf32> to vector<64x64xf32>
    %c0_62 = arith.constant 0 : index
    %c8_63 = arith.constant 8 : index
    %c0_64 = arith.constant 0 : index
    %112 = tpu.strided_load %arg16[%c0_62, %c8_63, %c0_64] {strides = array<i32: 1, 2, 1>} : memref<4x48x64xf32, #tpu.memory_space<vmem>>, vector<4x16x64xf32>
    %113 = vector.shape_cast %112 : vector<4x16x64xf32> to vector<64x64xf32>
    %c0_65 = arith.constant 0 : index
    %c9_66 = arith.constant 9 : index
    %c0_67 = arith.constant 0 : index
    %114 = tpu.strided_load %arg16[%c0_65, %c9_66, %c0_67] {strides = array<i32: 1, 2, 1>} : memref<4x48x64xf32, #tpu.memory_space<vmem>>, vector<4x16x64xf32>
    %115 = vector.shape_cast %114 : vector<4x16x64xf32> to vector<64x64xf32>
    %c0_68 = arith.constant 0 : index
    %c10_69 = arith.constant 10 : index
    %c0_70 = arith.constant 0 : index
    %116 = tpu.strided_load %arg16[%c0_68, %c10_69, %c0_70] {strides = array<i32: 1, 2, 1>} : memref<4x48x64xf32, #tpu.memory_space<vmem>>, vector<4x16x64xf32>
    %117 = vector.shape_cast %116 : vector<4x16x64xf32> to vector<64x64xf32>
    %118 = tpu.concatenate %111, %113 in 0 : vector<64x64xf32>, vector<64x64xf32> -> vector<128x64xf32>
    %119 = arith.truncf %118 : vector<128x64xf32> to vector<128x64xbf16>
    %c0_71 = arith.constant 0 : index
    %c0_72 = arith.constant 0 : index
    %c0_73 = arith.constant 0 : index
    %120 = vector.load %arg6[%c0_71, %c0_72, %c0_73] : memref<3x64x128xbf16, #tpu.memory_space<vmem>>, vector<1x64x128xbf16>
    %121 = vector.shape_cast %120 : vector<1x64x128xbf16> to vector<64x128xbf16>
    %cst_74 = arith.constant dense<0.000000e+00> : vector<128x128xf32>
    %122 = tpu.matmul %119, %121, %cst_74 {dimension_numbers = #tpu.dot_dimension_numbers<[1], [0], [0], [1], [0, 0, 1, 1], [], []>} : vector<128x64xbf16>, vector<64x128xbf16>, vector<128x128xf32> -> vector<128x128xf32>
    %123 = tpu.concatenate %113, %115 in 0 : vector<64x64xf32>, vector<64x64xf32> -> vector<128x64xf32>
    %124 = arith.truncf %123 : vector<128x64xf32> to vector<128x64xbf16>
    %c1_75 = arith.constant 1 : index
    %c0_76 = arith.constant 0 : index
    %c0_77 = arith.constant 0 : index
    %125 = vector.load %arg6[%c1_75, %c0_76, %c0_77] : memref<3x64x128xbf16, #tpu.memory_space<vmem>>, vector<1x64x128xbf16>
    %126 = vector.shape_cast %125 : vector<1x64x128xbf16> to vector<64x128xbf16>
    %cst_78 = arith.constant dense<0.000000e+00> : vector<128x128xf32>
    %127 = tpu.matmul %124, %126, %cst_78 {dimension_numbers = #tpu.dot_dimension_numbers<[1], [0], [0], [1], [0, 0, 1, 1], [], []>} : vector<128x64xbf16>, vector<64x128xbf16>, vector<128x128xf32> -> vector<128x128xf32>
    %128 = arith.addf %122, %127 : vector<128x128xf32>
    %129 = tpu.concatenate %115, %117 in 0 : vector<64x64xf32>, vector<64x64xf32> -> vector<128x64xf32>
    %130 = arith.truncf %129 : vector<128x64xf32> to vector<128x64xbf16>
    %c2_79 = arith.constant 2 : index
    %c0_80 = arith.constant 0 : index
    %c0_81 = arith.constant 0 : index
    %131 = vector.load %arg6[%c2_79, %c0_80, %c0_81] : memref<3x64x128xbf16, #tpu.memory_space<vmem>>, vector<1x64x128xbf16>
    %132 = vector.shape_cast %131 : vector<1x64x128xbf16> to vector<64x128xbf16>
    %cst_82 = arith.constant dense<0.000000e+00> : vector<128x128xf32>
    %133 = tpu.matmul %130, %132, %cst_82 {dimension_numbers = #tpu.dot_dimension_numbers<[1], [0], [0], [1], [0, 0, 1, 1], [], []>} : vector<128x64xbf16>, vector<64x128xbf16>, vector<128x128xf32> -> vector<128x128xf32>
    %134 = arith.addf %128, %133 : vector<128x128xf32>
    %135 = vector.extract_strided_slice %134 {offsets = [0, 0], sizes = [64, 128], strides = [1, 1]} : vector<128x128xf32> to vector<64x128xf32>
    %136 = vector.extract_strided_slice %134 {offsets = [64, 0], sizes = [64, 128], strides = [1, 1]} : vector<128x128xf32> to vector<64x128xf32>
    %137 = arith.maximumf %135, %136 : vector<64x128xf32>
    %c0_83 = arith.constant 0 : index
    %c0_84 = arith.constant 0 : index
    %138 = vector.load %arg7[%c0_83, %c0_84] : memref<1x128xf32, #tpu.memory_space<vmem>>, vector<1x128xf32>
    %139 = vector.broadcast %138 : vector<1x128xf32> to vector<64x128xf32>
    %140 = arith.addf %137, %139 : vector<64x128xf32>
    %cst_85 = arith.constant 0.000000e+00 : f32
    %141 = vector.broadcast %cst_85 : f32 to vector<64x128xf32>
    %142 = arith.maximumf %140, %141 : vector<64x128xf32>
    %143 = vector.shape_cast %142 : vector<64x128xf32> to vector<4x16x128xf32>
    %144 = arith.truncf %143 : vector<4x16x128xf32> to vector<4x16x128xbf16>
    %c0_86 = arith.constant 0 : index
    %c0_87 = arith.constant 0 : index
    %c0_88 = arith.constant 0 : index
    %145 = vector.load %arg17[%c0_86, %c0_87, %c0_88] : memref<4x16x128xbf16, #tpu.memory_space<vmem>>, vector<4x16x128xbf16>
    tpu.vector_store %arg17[%c0_86, %c0_87, %c0_88], %144 {strides = array<i32>} : memref<4x16x128xbf16, #tpu.memory_space<vmem>>, vector<4x16x128xbf16>,
    %c0_89 = arith.constant 0 : index
    %c0_90 = arith.constant 0 : index
    %c0_91 = arith.constant 0 : index
    %146 = vector.load %arg17[%c0_89, %c0_90, %c0_91] : memref<4x16x128xbf16, #tpu.memory_space<vmem>>, vector<4x1x128xbf16>
    %147 = vector.shape_cast %146 : vector<4x1x128xbf16> to vector<4x128xbf16>
    %c0_92 = arith.constant 0 : index
    %c0_93 = arith.constant 0 : index
    %c0_94 = arith.constant 0 : index
    %148 = vector.load %arg8[%c0_92, %c0_93, %c0_94] : memref<16x128x64xbf16, #tpu.memory_space<vmem>>, vector<1x128x64xbf16>
    %149 = vector.shape_cast %148 : vector<1x128x64xbf16> to vector<128x64xbf16>
    %cst_95 = arith.constant dense<0.000000e+00> : vector<4x64xf32>
    %150 = tpu.matmul %147, %149, %cst_95 {dimension_numbers = #tpu.dot_dimension_numbers<[1], [0], [0], [1], [0, 0, 1, 1], [], []>} : vector<4x128xbf16>, vector<128x64xbf16>, vector<4x64xf32> -> vector<4x64xf32>
    %c0_96 = arith.constant 0 : index
    %c1_97 = arith.constant 1 : index
    %c0_98 = arith.constant 0 : index
    %151 = vector.load %arg17[%c0_96, %c1_97, %c0_98] : memref<4x16x128xbf16, #tpu.memory_space<vmem>>, vector<4x1x128xbf16>
    %152 = vector.shape_cast %151 : vector<4x1x128xbf16> to vector<4x128xbf16>
    %c1_99 = arith.constant 1 : index
    %c0_100 = arith.constant 0 : index
    %c0_101 = arith.constant 0 : index
    %153 = vector.load %arg8[%c1_99, %c0_100, %c0_101] : memref<16x128x64xbf16, #tpu.memory_space<vmem>>, vector<1x128x64xbf16>
    %154 = vector.shape_cast %153 : vector<1x128x64xbf16> to vector<128x64xbf16>
    %cst_102 = arith.constant dense<0.000000e+00> : vector<4x64xf32>
    %155 = tpu.matmul %152, %154, %cst_102 {dimension_numbers = #tpu.dot_dimension_numbers<[1], [0], [0], [1], [0, 0, 1, 1], [], []>} : vector<4x128xbf16>, vector<128x64xbf16>, vector<4x64xf32> -> vector<4x64xf32>
    %156 = arith.addf %150, %155 : vector<4x64xf32>
    %c0_103 = arith.constant 0 : index
    %c2_104 = arith.constant 2 : index
    %c0_105 = arith.constant 0 : index
    %157 = vector.load %arg17[%c0_103, %c2_104, %c0_105] : memref<4x16x128xbf16, #tpu.memory_space<vmem>>, vector<4x1x128xbf16>
    %158 = vector.shape_cast %157 : vector<4x1x128xbf16> to vector<4x128xbf16>
    %c2_106 = arith.constant 2 : index
    %c0_107 = arith.constant 0 : index
    %c0_108 = arith.constant 0 : index
    %159 = vector.load %arg8[%c2_106, %c0_107, %c0_108] : memref<16x128x64xbf16, #tpu.memory_space<vmem>>, vector<1x128x64xbf16>
    %160 = vector.shape_cast %159 : vector<1x128x64xbf16> to vector<128x64xbf16>
    %cst_109 = arith.constant dense<0.000000e+00> : vector<4x64xf32>
    %161 = tpu.matmul %158, %160, %cst_109 {dimension_numbers = #tpu.dot_dimension_numbers<[1], [0], [0], [1], [0, 0, 1, 1], [], []>} : vector<4x128xbf16>, vector<128x64xbf16>, vector<4x64xf32> -> vector<4x64xf32>
    %162 = arith.addf %156, %161 : vector<4x64xf32>
    %c0_110 = arith.constant 0 : index
    %c3_111 = arith.constant 3 : index
    %c0_112 = arith.constant 0 : index
    %163 = vector.load %arg17[%c0_110, %c3_111, %c0_112] : memref<4x16x128xbf16, #tpu.memory_space<vmem>>, vector<4x1x128xbf16>
    %164 = vector.shape_cast %163 : vector<4x1x128xbf16> to vector<4x128xbf16>
    %c3_113 = arith.constant 3 : index
    %c0_114 = arith.constant 0 : index
    %c0_115 = arith.constant 0 : index
    %165 = vector.load %arg8[%c3_113, %c0_114, %c0_115] : memref<16x128x64xbf16, #tpu.memory_space<vmem>>, vector<1x128x64xbf16>
    %166 = vector.shape_cast %165 : vector<1x128x64xbf16> to vector<128x64xbf16>
    %cst_116 = arith.constant dense<0.000000e+00> : vector<4x64xf32>
    %167 = tpu.matmul %164, %166, %cst_116 {dimension_numbers = #tpu.dot_dimension_numbers<[1], [0], [0], [1], [0, 0, 1, 1], [], []>} : vector<4x128xbf16>, vector<128x64xbf16>, vector<4x64xf32> -> vector<4x64xf32>
    %168 = arith.addf %162, %167 : vector<4x64xf32>
    %c0_117 = arith.constant 0 : index
    %c4_118 = arith.constant 4 : index
    %c0_119 = arith.constant 0 : index
    %169 = vector.load %arg17[%c0_117, %c4_118, %c0_119] : memref<4x16x128xbf16, #tpu.memory_space<vmem>>, vector<4x1x128xbf16>
    %170 = vector.shape_cast %169 : vector<4x1x128xbf16> to vector<4x128xbf16>
    %c4_120 = arith.constant 4 : index
    %c0_121 = arith.constant 0 : index
    %c0_122 = arith.constant 0 : index
    %171 = vector.load %arg8[%c4_120, %c0_121, %c0_122] : memref<16x128x64xbf16, #tpu.memory_space<vmem>>, vector<1x128x64xbf16>
    %172 = vector.shape_cast %171 : vector<1x128x64xbf16> to vector<128x64xbf16>
    %cst_123 = arith.constant dense<0.000000e+00> : vector<4x64xf32>
    %173 = tpu.matmul %170, %172, %cst_123 {dimension_numbers = #tpu.dot_dimension_numbers<[1], [0], [0], [1], [0, 0, 1, 1], [], []>} : vector<4x128xbf16>, vector<128x64xbf16>, vector<4x64xf32> -> vector<4x64xf32>
    %174 = arith.addf %168, %173 : vector<4x64xf32>
    %c0_124 = arith.constant 0 : index
    %c5_125 = arith.constant 5 : index
    %c0_126 = arith.constant 0 : index
    %175 = vector.load %arg17[%c0_124, %c5_125, %c0_126] : memref<4x16x128xbf16, #tpu.memory_space<vmem>>, vector<4x1x128xbf16>
    %176 = vector.shape_cast %175 : vector<4x1x128xbf16> to vector<4x128xbf16>
    %c5_127 = arith.constant 5 : index
    %c0_128 = arith.constant 0 : index
    %c0_129 = arith.constant 0 : index
    %177 = vector.load %arg8[%c5_127, %c0_128, %c0_129] : memref<16x128x64xbf16, #tpu.memory_space<vmem>>, vector<1x128x64xbf16>
    %178 = vector.shape_cast %177 : vector<1x128x64xbf16> to vector<128x64xbf16>
    %cst_130 = arith.constant dense<0.000000e+00> : vector<4x64xf32>
    %179 = tpu.matmul %176, %178, %cst_130 {dimension_numbers = #tpu.dot_dimension_numbers<[1], [0], [0], [1], [0, 0, 1, 1], [], []>} : vector<4x128xbf16>, vector<128x64xbf16>, vector<4x64xf32> -> vector<4x64xf32>
    %180 = arith.addf %174, %179 : vector<4x64xf32>
    %c0_131 = arith.constant 0 : index
    %c6 = arith.constant 6 : index
    %c0_132 = arith.constant 0 : index
    %181 = vector.load %arg17[%c0_131, %c6, %c0_132] : memref<4x16x128xbf16, #tpu.memory_space<vmem>>, vector<4x1x128xbf16>
    %182 = vector.shape_cast %181 : vector<4x1x128xbf16> to vector<4x128xbf16>
    %c6_133 = arith.constant 6 : index
    %c0_134 = arith.constant 0 : index
    %c0_135 = arith.constant 0 : index
    %183 = vector.load %arg8[%c6_133, %c0_134, %c0_135] : memref<16x128x64xbf16, #tpu.memory_space<vmem>>, vector<1x128x64xbf16>
    %184 = vector.shape_cast %183 : vector<1x128x64xbf16> to vector<128x64xbf16>
    %cst_136 = arith.constant dense<0.000000e+00> : vector<4x64xf32>
    %185 = tpu.matmul %182, %184, %cst_136 {dimension_numbers = #tpu.dot_dimension_numbers<[1], [0], [0], [1], [0, 0, 1, 1], [], []>} : vector<4x128xbf16>, vector<128x64xbf16>, vector<4x64xf32> -> vector<4x64xf32>
    %186 = arith.addf %180, %185 : vector<4x64xf32>
    %c0_137 = arith.constant 0 : index
    %c7_138 = arith.constant 7 : index
    %c0_139 = arith.constant 0 : index
    %187 = vector.load %arg17[%c0_137, %c7_138, %c0_139] : memref<4x16x128xbf16, #tpu.memory_space<vmem>>, vector<4x1x128xbf16>
    %188 = vector.shape_cast %187 : vector<4x1x128xbf16> to vector<4x128xbf16>
    %c7_140 = arith.constant 7 : index
    %c0_141 = arith.constant 0 : index
    %c0_142 = arith.constant 0 : index
    %189 = vector.load %arg8[%c7_140, %c0_141, %c0_142] : memref<16x128x64xbf16, #tpu.memory_space<vmem>>, vector<1x128x64xbf16>
    %190 = vector.shape_cast %189 : vector<1x128x64xbf16> to vector<128x64xbf16>
    %cst_143 = arith.constant dense<0.000000e+00> : vector<4x64xf32>
    %191 = tpu.matmul %188, %190, %cst_143 {dimension_numbers = #tpu.dot_dimension_numbers<[1], [0], [0], [1], [0, 0, 1, 1], [], []>} : vector<4x128xbf16>, vector<128x64xbf16>, vector<4x64xf32> -> vector<4x64xf32>
    %192 = arith.addf %186, %191 : vector<4x64xf32>
    %c0_144 = arith.constant 0 : index
    %c8_145 = arith.constant 8 : index
    %c0_146 = arith.constant 0 : index
    %193 = vector.load %arg17[%c0_144, %c8_145, %c0_146] : memref<4x16x128xbf16, #tpu.memory_space<vmem>>, vector<4x1x128xbf16>
    %194 = vector.shape_cast %193 : vector<4x1x128xbf16> to vector<4x128xbf16>
    %c8_147 = arith.constant 8 : index
    %c0_148 = arith.constant 0 : index
    %c0_149 = arith.constant 0 : index
    %195 = vector.load %arg8[%c8_147, %c0_148, %c0_149] : memref<16x128x64xbf16, #tpu.memory_space<vmem>>, vector<1x128x64xbf16>
    %196 = vector.shape_cast %195 : vector<1x128x64xbf16> to vector<128x64xbf16>
    %cst_150 = arith.constant dense<0.000000e+00> : vector<4x64xf32>
    %197 = tpu.matmul %194, %196, %cst_150 {dimension_numbers = #tpu.dot_dimension_numbers<[1], [0], [0], [1], [0, 0, 1, 1], [], []>} : vector<4x128xbf16>, vector<128x64xbf16>, vector<4x64xf32> -> vector<4x64xf32>
    %198 = arith.addf %192, %197 : vector<4x64xf32>
    %c0_151 = arith.constant 0 : index
    %c9_152 = arith.constant 9 : index
    %c0_153 = arith.constant 0 : index
    %199 = vector.load %arg17[%c0_151, %c9_152, %c0_153] : memref<4x16x128xbf16, #tpu.memory_space<vmem>>, vector<4x1x128xbf16>
    %200 = vector.shape_cast %199 : vector<4x1x128xbf16> to vector<4x128xbf16>
    %c9_154 = arith.constant 9 : index
    %c0_155 = arith.constant 0 : index
    %c0_156 = arith.constant 0 : index
    %201 = vector.load %arg8[%c9_154, %c0_155, %c0_156] : memref<16x128x64xbf16, #tpu.memory_space<vmem>>, vector<1x128x64xbf16>
    %202 = vector.shape_cast %201 : vector<1x128x64xbf16> to vector<128x64xbf16>
    %cst_157 = arith.constant dense<0.000000e+00> : vector<4x64xf32>
    %203 = tpu.matmul %200, %202, %cst_157 {dimension_numbers = #tpu.dot_dimension_numbers<[1], [0], [0], [1], [0, 0, 1, 1], [], []>} : vector<4x128xbf16>, vector<128x64xbf16>, vector<4x64xf32> -> vector<4x64xf32>
    %204 = arith.addf %198, %203 : vector<4x64xf32>
    %c0_158 = arith.constant 0 : index
    %c10_159 = arith.constant 10 : index
    %c0_160 = arith.constant 0 : index
    %205 = vector.load %arg17[%c0_158, %c10_159, %c0_160] : memref<4x16x128xbf16, #tpu.memory_space<vmem>>, vector<4x1x128xbf16>
    %206 = vector.shape_cast %205 : vector<4x1x128xbf16> to vector<4x128xbf16>
    %c10_161 = arith.constant 10 : index
    %c0_162 = arith.constant 0 : index
    %c0_163 = arith.constant 0 : index
    %207 = vector.load %arg8[%c10_161, %c0_162, %c0_163] : memref<16x128x64xbf16, #tpu.memory_space<vmem>>, vector<1x128x64xbf16>
    %208 = vector.shape_cast %207 : vector<1x128x64xbf16> to vector<128x64xbf16>
    %cst_164 = arith.constant dense<0.000000e+00> : vector<4x64xf32>
    %209 = tpu.matmul %206, %208, %cst_164 {dimension_numbers = #tpu.dot_dimension_numbers<[1], [0], [0], [1], [0, 0, 1, 1], [], []>} : vector<4x128xbf16>, vector<128x64xbf16>, vector<4x64xf32> -> vector<4x64xf32>
    %210 = arith.addf %204, %209 : vector<4x64xf32>
    %c0_165 = arith.constant 0 : index
    %c11 = arith.constant 11 : index
    %c0_166 = arith.constant 0 : index
    %211 = vector.load %arg17[%c0_165, %c11, %c0_166] : memref<4x16x128xbf16, #tpu.memory_space<vmem>>, vector<4x1x128xbf16>
    %212 = vector.shape_cast %211 : vector<4x1x128xbf16> to vector<4x128xbf16>
    %c11_167 = arith.constant 11 : index
    %c0_168 = arith.constant 0 : index
    %c0_169 = arith.constant 0 : index
    %213 = vector.load %arg8[%c11_167, %c0_168, %c0_169] : memref<16x128x64xbf16, #tpu.memory_space<vmem>>, vector<1x128x64xbf16>
    %214 = vector.shape_cast %213 : vector<1x128x64xbf16> to vector<128x64xbf16>
    %cst_170 = arith.constant dense<0.000000e+00> : vector<4x64xf32>
    %215 = tpu.matmul %212, %214, %cst_170 {dimension_numbers = #tpu.dot_dimension_numbers<[1], [0], [0], [1], [0, 0, 1, 1], [], []>} : vector<4x128xbf16>, vector<128x64xbf16>, vector<4x64xf32> -> vector<4x64xf32>
    %216 = arith.addf %210, %215 : vector<4x64xf32>
    %c0_171 = arith.constant 0 : index
    %c12 = arith.constant 12 : index
    %c0_172 = arith.constant 0 : index
    %217 = vector.load %arg17[%c0_171, %c12, %c0_172] : memref<4x16x128xbf16, #tpu.memory_space<vmem>>, vector<4x1x128xbf16>
    %218 = vector.shape_cast %217 : vector<4x1x128xbf16> to vector<4x128xbf16>
    %c12_173 = arith.constant 12 : index
    %c0_174 = arith.constant 0 : index
    %c0_175 = arith.constant 0 : index
    %219 = vector.load %arg8[%c12_173, %c0_174, %c0_175] : memref<16x128x64xbf16, #tpu.memory_space<vmem>>, vector<1x128x64xbf16>
    %220 = vector.shape_cast %219 : vector<1x128x64xbf16> to vector<128x64xbf16>
    %cst_176 = arith.constant dense<0.000000e+00> : vector<4x64xf32>
    %221 = tpu.matmul %218, %220, %cst_176 {dimension_numbers = #tpu.dot_dimension_numbers<[1], [0], [0], [1], [0, 0, 1, 1], [], []>} : vector<4x128xbf16>, vector<128x64xbf16>, vector<4x64xf32> -> vector<4x64xf32>
    %222 = arith.addf %216, %221 : vector<4x64xf32>
    %c0_177 = arith.constant 0 : index
    %c13 = arith.constant 13 : index
    %c0_178 = arith.constant 0 : index
    %223 = vector.load %arg17[%c0_177, %c13, %c0_178] : memref<4x16x128xbf16, #tpu.memory_space<vmem>>, vector<4x1x128xbf16>
    %224 = vector.shape_cast %223 : vector<4x1x128xbf16> to vector<4x128xbf16>
    %c13_179 = arith.constant 13 : index
    %c0_180 = arith.constant 0 : index
    %c0_181 = arith.constant 0 : index
    %225 = vector.load %arg8[%c13_179, %c0_180, %c0_181] : memref<16x128x64xbf16, #tpu.memory_space<vmem>>, vector<1x128x64xbf16>
    %226 = vector.shape_cast %225 : vector<1x128x64xbf16> to vector<128x64xbf16>
    %cst_182 = arith.constant dense<0.000000e+00> : vector<4x64xf32>
    %227 = tpu.matmul %224, %226, %cst_182 {dimension_numbers = #tpu.dot_dimension_numbers<[1], [0], [0], [1], [0, 0, 1, 1], [], []>} : vector<4x128xbf16>, vector<128x64xbf16>, vector<4x64xf32> -> vector<4x64xf32>
    %228 = arith.addf %222, %227 : vector<4x64xf32>
    %c0_183 = arith.constant 0 : index
    %c14 = arith.constant 14 : index
    %c0_184 = arith.constant 0 : index
    %229 = vector.load %arg17[%c0_183, %c14, %c0_184] : memref<4x16x128xbf16, #tpu.memory_space<vmem>>, vector<4x1x128xbf16>
    %230 = vector.shape_cast %229 : vector<4x1x128xbf16> to vector<4x128xbf16>
    %c14_185 = arith.constant 14 : index
    %c0_186 = arith.constant 0 : index
    %c0_187 = arith.constant 0 : index
    %231 = vector.load %arg8[%c14_185, %c0_186, %c0_187] : memref<16x128x64xbf16, #tpu.memory_space<vmem>>, vector<1x128x64xbf16>
    %232 = vector.shape_cast %231 : vector<1x128x64xbf16> to vector<128x64xbf16>
    %cst_188 = arith.constant dense<0.000000e+00> : vector<4x64xf32>
    %233 = tpu.matmul %230, %232, %cst_188 {dimension_numbers = #tpu.dot_dimension_numbers<[1], [0], [0], [1], [0, 0, 1, 1], [], []>} : vector<4x128xbf16>, vector<128x64xbf16>, vector<4x64xf32> -> vector<4x64xf32>
    %234 = arith.addf %228, %233 : vector<4x64xf32>
    %c0_189 = arith.constant 0 : index
    %c15 = arith.constant 15 : index
    %c0_190 = arith.constant 0 : index
    %235 = vector.load %arg17[%c0_189, %c15, %c0_190] : memref<4x16x128xbf16, #tpu.memory_space<vmem>>, vector<4x1x128xbf16>
    %236 = vector.shape_cast %235 : vector<4x1x128xbf16> to vector<4x128xbf16>
    %c15_191 = arith.constant 15 : index
    %c0_192 = arith.constant 0 : index
    %c0_193 = arith.constant 0 : index
    %237 = vector.load %arg8[%c15_191, %c0_192, %c0_193] : memref<16x128x64xbf16, #tpu.memory_space<vmem>>, vector<1x128x64xbf16>
    %238 = vector.shape_cast %237 : vector<1x128x64xbf16> to vector<128x64xbf16>
    %cst_194 = arith.constant dense<0.000000e+00> : vector<4x64xf32>
    %239 = tpu.matmul %236, %238, %cst_194 {dimension_numbers = #tpu.dot_dimension_numbers<[1], [0], [0], [1], [0, 0, 1, 1], [], []>} : vector<4x128xbf16>, vector<128x64xbf16>, vector<4x64xf32> -> vector<4x64xf32>
    %240 = arith.addf %234, %239 : vector<4x64xf32>
    %c0_195 = arith.constant 0 : index
    %c0_196 = arith.constant 0 : index
    %241 = vector.load %arg9[%c0_195, %c0_196] : memref<1x64xf32, #tpu.memory_space<vmem>>, vector<1x64xf32>
    %242 = vector.broadcast %241 : vector<1x64xf32> to vector<4x64xf32>
    %243 = arith.addf %240, %242 : vector<4x64xf32>
    %cst_197 = arith.constant 0.000000e+00 : f32
    %244 = vector.broadcast %cst_197 : f32 to vector<4x64xf32>
    %245 = arith.maximumf %243, %244 : vector<4x64xf32>
    %246 = arith.truncf %245 : vector<4x64xf32> to vector<4x64xbf16>
    %c0_198 = arith.constant 0 : index
    %c0_199 = arith.constant 0 : index
    %247 = vector.load %arg10[%c0_198, %c0_199] : memref<64x32xbf16, #tpu.memory_space<vmem>>, vector<64x32xbf16>
    %cst_200 = arith.constant dense<0.000000e+00> : vector<4x32xf32>
    %248 = tpu.matmul %246, %247, %cst_200 {dimension_numbers = #tpu.dot_dimension_numbers<[1], [0], [0], [1], [0, 0, 1, 1], [], []>} : vector<4x64xbf16>, vector<64x32xbf16>, vector<4x32xf32> -> vector<4x32xf32>
    %c0_201 = arith.constant 0 : index
    %c0_202 = arith.constant 0 : index
    %249 = vector.load %arg11[%c0_201, %c0_202] : memref<1x32xf32, #tpu.memory_space<vmem>>, vector<1x32xf32>
    %250 = vector.broadcast %249 : vector<1x32xf32> to vector<4x32xf32>
    %251 = arith.addf %248, %250 : vector<4x32xf32>
    %cst_203 = arith.constant 0.000000e+00 : f32
    %252 = vector.broadcast %cst_203 : f32 to vector<4x32xf32>
    %253 = arith.maximumf %251, %252 : vector<4x32xf32>
    %254 = arith.truncf %253 : vector<4x32xf32> to vector<4x32xbf16>
    %c0_204 = arith.constant 0 : index
    %c0_205 = arith.constant 0 : index
    %255 = vector.load %arg12[%c0_204, %c0_205] : memref<32x10xbf16, #tpu.memory_space<vmem>>, vector<32x10xbf16>
    %cst_206 = arith.constant dense<0.000000e+00> : vector<4x10xf32>
    %256 = tpu.matmul %254, %255, %cst_206 {dimension_numbers = #tpu.dot_dimension_numbers<[1], [0], [0], [1], [0, 0, 1, 1], [], []>} : vector<4x32xbf16>, vector<32x10xbf16>, vector<4x10xf32> -> vector<4x10xf32>
    %c0_207 = arith.constant 0 : index
    %c0_208 = arith.constant 0 : index
    %257 = vector.load %arg13[%c0_207, %c0_208] : memref<1x10xf32, #tpu.memory_space<vmem>>, vector<1x10xf32>
    %258 = vector.broadcast %257 : vector<1x10xf32> to vector<4x10xf32>
    %259 = arith.addf %256, %258 : vector<4x10xf32>
    %c0_209 = arith.constant 0 : index
    %c0_210 = arith.constant 0 : index
    %c0_211 = arith.constant 0 : index
    %260 = vector.load %arg14[%c0_209, %c0_210, %c0_211] : memref<1x4x10xf32, #tpu.memory_space<vmem>>, vector<1x4x10xf32>
    %261 = vector.shape_cast %260 : vector<1x4x10xf32> to vector<4x10xf32>
    %262 = vector.shape_cast %259 : vector<4x10xf32> to vector<1x4x10xf32>
    tpu.vector_store %arg14[%c0_209, %c0_210, %c0_211], %262 {strides = array<i32>} : memref<1x4x10xf32, #tpu.memory_space<vmem>>, vector<1x4x10xf32>,
    return
  }
  func.func @transform_0(%arg0: i32) -> (i32, i32, i32, i32) {
    %c0_i32 = arith.constant 0 : i32
    %c0_i32_0 = arith.constant 0 : i32
    %c0_i32_1 = arith.constant 0 : i32
    %c0_i32_2 = arith.constant 0 : i32
    return %arg0, %c0_i32, %c0_i32_0, %c0_i32_1 : i32, i32, i32, i32
  }
  func.func @transform_1(%arg0: i32) -> (i32, i32) {
    %c0_i32 = arith.constant 0 : i32
    %c0_i32_0 = arith.constant 0 : i32
    %c0_i32_1 = arith.constant 0 : i32
    return %c0_i32, %c0_i32_0 : i32, i32
  }
  func.func @transform_2(%arg0: i32) -> (i32, i32) {
    %c0_i32 = arith.constant 0 : i32
    %c0_i32_0 = arith.constant 0 : i32
    %c0_i32_1 = arith.constant 0 : i32
    return %c0_i32, %c0_i32_0 : i32, i32
  }
  func.func @transform_3(%arg0: i32) -> (i32, i32, i32) {
    %c0_i32 = arith.constant 0 : i32
    %c0_i32_0 = arith.constant 0 : i32
    %c0_i32_1 = arith.constant 0 : i32
    %c0_i32_2 = arith.constant 0 : i32
    return %c0_i32, %c0_i32_0, %c0_i32_1 : i32, i32, i32
  }
  func.func @transform_4(%arg0: i32) -> (i32, i32) {
    %c0_i32 = arith.constant 0 : i32
    %c0_i32_0 = arith.constant 0 : i32
    %c0_i32_1 = arith.constant 0 : i32
    return %c0_i32, %c0_i32_0 : i32, i32
  }
  func.func @transform_5(%arg0: i32) -> (i32, i32, i32) {
    %c0_i32 = arith.constant 0 : i32
    %c0_i32_0 = arith.constant 0 : i32
    %c0_i32_1 = arith.constant 0 : i32
    %c0_i32_2 = arith.constant 0 : i32
    return %c0_i32, %c0_i32_0, %c0_i32_1 : i32, i32, i32
  }
  func.func @transform_6(%arg0: i32) -> (i32, i32) {
    %c0_i32 = arith.constant 0 : i32
    %c0_i32_0 = arith.constant 0 : i32
    %c0_i32_1 = arith.constant 0 : i32
    return %c0_i32, %c0_i32_0 : i32, i32
  }
  func.func @transform_7(%arg0: i32) -> (i32, i32, i32) {
    %c0_i32 = arith.constant 0 : i32
    %c0_i32_0 = arith.constant 0 : i32
    %c0_i32_1 = arith.constant 0 : i32
    %c0_i32_2 = arith.constant 0 : i32
    return %c0_i32, %c0_i32_0, %c0_i32_1 : i32, i32, i32
  }
  func.func @transform_8(%arg0: i32) -> (i32, i32) {
    %c0_i32 = arith.constant 0 : i32
    %c0_i32_0 = arith.constant 0 : i32
    %c0_i32_1 = arith.constant 0 : i32
    return %c0_i32, %c0_i32_0 : i32, i32
  }
  func.func @transform_9(%arg0: i32) -> (i32, i32) {
    %c0_i32 = arith.constant 0 : i32
    %c0_i32_0 = arith.constant 0 : i32
    %c0_i32_1 = arith.constant 0 : i32
    return %c0_i32, %c0_i32_0 : i32, i32
  }
  func.func @transform_10(%arg0: i32) -> (i32, i32) {
    %c0_i32 = arith.constant 0 : i32
    %c0_i32_0 = arith.constant 0 : i32
    %c0_i32_1 = arith.constant 0 : i32
    return %c0_i32, %c0_i32_0 : i32, i32
  }
  func.func @transform_11(%arg0: i32) -> (i32, i32) {
    %c0_i32 = arith.constant 0 : i32
    %c0_i32_0 = arith.constant 0 : i32
    %c0_i32_1 = arith.constant 0 : i32
    return %c0_i32, %c0_i32_0 : i32, i32
  }
  func.func @transform_12(%arg0: i32) -> (i32, i32) {
    %c0_i32 = arith.constant 0 : i32
    %c0_i32_0 = arith.constant 0 : i32
    %c0_i32_1 = arith.constant 0 : i32
    return %c0_i32, %c0_i32_0 : i32, i32
  }
  func.func @transform_13(%arg0: i32) -> (i32, i32, i32) {
    %c0_i32 = arith.constant 0 : i32
    %c0_i32_0 = arith.constant 0 : i32
    %c0_i32_1 = arith.constant 0 : i32
    return %arg0, %c0_i32, %c0_i32_0 : i32, i32, i32
  }
}

</mosaic_0001>

<bundles_post_ra>
// kernel: fingerprint_forward.1
= control target key start
LH: loop header
LB: loop body
LE: loop exit
PB: predicated region body
PF: predicated region fallthrough
CT: control target
= control target key end

     0   :  { %s9048_s0 = inlined_call_operand.vmem [shape: f32[2,4,132,1], index: 0, kind: input, shape index: {}]   ;;  %s9049_s1 = inlined_call_operand.vmem [shape: f32[5,32], index: 1, kind: input, shape index: {}]   ;;  %s9050_s2 = inlined_call_operand.vmem [shape: f32[1,32], index: 2, kind: input, shape index: {}]   ;;  %s9051_s3 = inlined_call_operand.vmem [shape: bf16[3,32,64], index: 3, kind: input, shape index: {}]   ;;  %s9052_s4 = inlined_call_operand.vmem [shape: f32[1,64], index: 4, kind: input, shape index: {}]   ;;  %s9053_s5 = inlined_call_operand.vmem [shape: bf16[3,64,128], index: 5, kind: input, shape index: {}]   ;;  %s9054_s6 = inlined_call_operand.vmem [shape: f32[1,128], index: 6, kind: input, shape index: {}]   ;;  %s9055_s7 = inlined_call_operand.vmem [shape: bf16[16,128,64], index: 7, kind: input, shape index: {}]   ;;  %s9056_s8 = inlined_call_operand.vmem [shape: f32[1,64], index: 8, kind: input, shape index: {}]   ;;  %s9057_s9 = inlined_call_operand.vmem [shape: bf16[64,32], index: 9, kind: input, shape index: {}]   ;;  %s9058_s10 = inlined_call_operand.vmem [shape: f32[1,32], index: 10, kind: input, shape index: {}]   ;;  %s9059_s11 = inlined_call_operand.vmem [shape: bf16[32,10], index: 11, kind: input, shape index: {}]   ;;  %s9060_s12 = inlined_call_operand.vmem [shape: f32[1,10], index: 12, kind: input, shape index: {}]   ;;  %s9061_s13 = inlined_call_operand.hbm [shape: f32[2,4,10], index: 13, kind: output, shape index: {}]  }
   0x1   :  { %9064 = sst [smem:[#allocation14_spill]] %s9048_s0 }
   0x2   :  { %9065 = sst [smem:[#allocation15_spill]] %s9049_s1 }
   0x3   :  { %9066 = sst [smem:[#allocation16_spill]] %s9050_s2 }
   0x4   :  { %9067 = sst [smem:[#allocation17_spill]] %s9051_s3 }
   0x5   :  { %9068 = sst [smem:[#allocation18_spill]] %s9052_s4 }
   0x6   :  { %18 = vsyncpa [#allocation6], 0 }
   0x7   :  { %20 = vsyncpa [#allocation6 + $0x1], 0  ;;  %s6946_s25 = smov 0   ;;  %s6948_s26 = smov 0  }
   0x8   :  { %s6950_s27 = smov 0   ;;  %s6952_s28 = smov 0  }
   0x9 LB: > { %s6967_s29 = sadd.s32 4294967295, %s6872_s28   ;;  %s5403_s30 = sadd.s32 4294967294, %s6872_s28   ;;  %s6872_s28 = sphi %s6952_s28, %s9092_s28   ;;  %s6868_s27 = sphi %s6950_s27, %s9091_s27   ;;  %s6864_s26 = sphi %s6948_s26, %s9090_s26   ;;  %s6860_s25 = sphi %s6946_s25, %s9089_s25  }
   0xa   : > { %s6971_s14 = sadd.s32 1, %s6872_s28   ;;  %s311_s15 = sadd.s32 1, %s6868_s27 }
   0xb   : > { %s308_s16 = ssub.s32 %s6872_s28, %s6971_s14  ;;  %p321_p0 = scmp.ne.s32.totalorder %s6868_s27, %s6864_s26 }
   0xc   : > { %p309_p1 = scmp.eq.s32.totalorder %s308_s16, 0  ;;  %p322_p2 = scmp.eq.s32.totalorder %s6967_s29, 1 }
   0xd   : > { %p327_p3 = scmp.ne.s32.totalorder %s6864_s26, %s6860_s25  ;;  %p328_p4 = scmp.eq.s32.totalorder %s5403_s30, 1 }
   0xe   : > { %s6982_s17 = scalar_select %p309_p1, %s6868_s27, %s311_s15  }
   0xf   : > { %p6984_p5 = por %p322_p2, %p321_p0  ;;  %p6988_p6 = por %p328_p4, %p327_p3 }
  0x10   : > { %p5406_p7 = scmp.ge.s32.totalorder %s6872_s28, 1  ;;  %p390_p8 = scmp.lt.s32.totalorder %s6872_s28, 3 }
  0x12   : > { %p391_p9 = pnand %p5406_p7, %p390_p8 }
  0x14   : > { %394 = sbr.rel (%p391_p9) target bundleno = 1829 (0x725), region = 72 }
  0x19   : > { %p434_p10 = scmp.lt.s32.totalorder %s6967_s29, 1  ;;  %v6874_v0 = vmov 0   ;;  %s9071_s0 = sld [smem:[#allocation14_spill]]  ;;  %vm2465_vm0 = vcmask 261120   ;;  %v9062_v60 = vmov 0.0   ;;  %vm3195_vm1 = vcmask 523264  }
  0x1a   : > { %6801 = vset.pattern.permute.xlu2 %v6874_v0  ;;  %6800 = vset.pattern.permute.xlu1 %v6874_v0  ;;  %2467 = vst.msk [vmem:[#allocation2 + $0x8] sm:$0xff] %vm2465_vm0, %v9062_v60  ;;  %s9072_s1 = sld [smem:[#allocation15_spill]]  ;;  %vm3723_vm2 = vcmask 1041409   ;;  %vm3726_vm3 = vcmask 1042434   ;;  %vm3729_vm4 = vcmask 1043459   ;;  %vm5326_vm5 = vcmask 76800  }
  0x1b   : > { %6799 = vset.pattern.permute.xlu0 %v6874_v0  ;;  %s435_s20 = scalar_select %p434_p10, %s6967_s29, 1  ;;  %2466 = vst.msk [vmem:[#allocation2] sm:$0xff] %vm2465_vm0, %v9062_v60 }
  0x1c   : > { %2468 = vst.msk [vmem:[#allocation2 + $0x10] sm:$0xff] %vm2465_vm0, %v9062_v60  ;;  %s9073_s3 = sld [smem:[#allocation17_spill]] }
  0x1d   : > { %s6757_s21 = smul.u32 544, %s435_s20  ;;  %2469 = vst.msk [vmem:[#allocation2 + $0x18] sm:$0xff] %vm2465_vm0, %v9062_v60  ;;  %s9074_s2 = sld [smem:[#allocation16_spill]] }
  0x1e   : > { %2470 = vst.msk [vmem:[#allocation2 + $0x20] sm:$0xff] %vm2465_vm0, %v9062_v60  ;;  %s9082_s4 = sld [smem:[#allocation18_spill]] }
  0x1f   : > { %s6999_s24 = scalar_lea.vmem %s9071_s0, %s6757_s21  ;;  %2471 = vst.msk [vmem:[#allocation2 + $0x28] sm:$0xff] %vm2465_vm0, %v9062_v60  ;;  %s6579_s21 = sshll.u32 %s6967_s29, 2 }
  0x20   : > { %v5440_v1 = vld [vmem:[%s6999_s24 + $0x1] ss:$2 sm:$0xff]  ;;  %v5410_v2 = vld [vmem:[%s6999_s24 + $0x20] ss:$2 sm:$0xff]  ;;  %v5441_v4 = vld [vmem:[%s6999_s24 + $0x11] ss:$2 sm:$0xff]  ;;  %s5339_s15 = scalar_lea.hbm %s9061_s13, %s6579_s21 }
  0x21   : > { %v441_v3 = vld [vmem:[%s6999_s24] ss:$2 sm:$0xff]  ;;  %1019 = vperm.xlu2 %6801, %v5440_v1   ;;  %836 = vperm.xlu1 %6800, %v5410_v2   ;;  %v5411_v5 = vld [vmem:[%s6999_s24 + $0x30] ss:$2 sm:$0xff]  ;;  %v5443_v8 = vld [vmem:[%s6999_s24 + $0x31] ss:$2 sm:$0xff] }
  0x22   : > { %826 = vperm.xlu0 %6799, %v441_v3   ;;  %v5409_v6 = vld [vmem:[%s6999_s24 + $0x10] ss:$2 sm:$0xff]  ;;  %v5442_v9 = vld [vmem:[%s6999_s24 + $0x21] ss:$2 sm:$0xff]  ;;  %v5414_v25 = vld [vmem:[%s6999_s24 + $0x60] ss:$2 sm:$0xff] }
  0x23   : > { %v5472_v7 = vld [vmem:[%s6999_s24 + $0x2] ss:$2 sm:$0xff]  ;;  %v5475_v10 = vld [vmem:[%s6999_s24 + $0x32] ss:$2 sm:$0xff]  ;;  %v5506_v13 = vld [vmem:[%s6999_s24 + $0x23] ss:$2 sm:$0xff] }
  0x24   : > { %v5474_v11 = vld [vmem:[%s6999_s24 + $0x22] ss:$2 sm:$0xff]  ;;  %v5473_v12 = vld [vmem:[%s6999_s24 + $0x12] ss:$2 sm:$0xff]  ;;  %v5505_v14 = vld [vmem:[%s6999_s24 + $0x13] ss:$2 sm:$0xff] }
  0x25   : > { %v5504_v15 = vld [vmem:[%s6999_s24 + $0x3] ss:$2 sm:$0xff]  ;;  %v5537_v16 = vld [vmem:[%s6999_s24 + $0x14] ss:$2 sm:$0xff]  ;;  %v5536_v17 = vld [vmem:[%s6999_s24 + $0x4] ss:$2 sm:$0xff] }
  0x26   : > { %v5507_v18 = vld [vmem:[%s6999_s24 + $0x33] ss:$2 sm:$0xff]  ;;  %v5539_v20 = vld [vmem:[%s6999_s24 + $0x34] ss:$2 sm:$0xff]  ;;  %v5538_v21 = vld [vmem:[%s6999_s24 + $0x24] ss:$2 sm:$0xff] }
  0x27   : > { %v5568_v19 = vld [vmem:[%s6999_s24 + $0x5] ss:$2 sm:$0xff]  ;;  %v5571_v22 = vld [vmem:[%s6999_s24 + $0x35] ss:$2 sm:$0xff]  ;;  %v5413_v26 = vld [vmem:[%s6999_s24 + $0x50] ss:$2 sm:$0xff] }
  0x28   : > { %v5570_v23 = vld [vmem:[%s6999_s24 + $0x25] ss:$2 sm:$0xff]  ;;  %v5569_v24 = vld [vmem:[%s6999_s24 + $0x15] ss:$2 sm:$0xff]  ;;  %v5412_v27 = vld [vmem:[%s6999_s24 + $0x40] ss:$2 sm:$0xff] }
  0x29   : > { %1024 = vperm.xlu2 %6801, %v5441_v4   ;;  %841 = vperm.xlu1 %6800, %v5411_v5   ;;  %v5445_v28 = vld [vmem:[%s6999_s24 + $0x51] ss:$2 sm:$0xff]  ;;  %v5444_v29 = vld [vmem:[%s6999_s24 + $0x41] ss:$2 sm:$0xff]  ;;  %v5415_v30 = vld [vmem:[%s6999_s24 + $0x70] ss:$2 sm:$0xff] }
  0x2a   : > { %831 = vperm.xlu0 %6799, %v5409_v6   ;;  %v5476_v31 = vld [vmem:[%s6999_s24 + $0x42] ss:$2 sm:$0xff]  ;;  %v5447_v32 = vld [vmem:[%s6999_s24 + $0x71] ss:$2 sm:$0xff]  ;;  %v5446_v33 = vld [vmem:[%s6999_s24 + $0x61] ss:$2 sm:$0xff] }
  0x2b   : > { %v5479_v34 = vld [vmem:[%s6999_s24 + $0x72] ss:$2 sm:$0xff]  ;;  %v5478_v35 = vld [vmem:[%s6999_s24 + $0x62] ss:$2 sm:$0xff]  ;;  %v5510_v38 = vld [vmem:[%s6999_s24 + $0x63] ss:$2 sm:$0xff] }
  0x2c   : > { %v5477_v36 = vld [vmem:[%s6999_s24 + $0x52] ss:$2 sm:$0xff]  ;;  %v5509_v39 = vld [vmem:[%s6999_s24 + $0x53] ss:$2 sm:$0xff]  ;;  %v5508_v40 = vld [vmem:[%s6999_s24 + $0x43] ss:$2 sm:$0xff] }
  0x2d   : > { %v5541_v42 = vld [vmem:[%s6999_s24 + $0x54] ss:$2 sm:$0xff]  ;;  %v5540_v43 = vld [vmem:[%s6999_s24 + $0x44] ss:$2 sm:$0xff]  ;;  %v5511_v44 = vld [vmem:[%s6999_s24 + $0x73] ss:$2 sm:$0xff] }
  0x2e   : > { %v5572_v46 = vld [vmem:[%s6999_s24 + $0x45] ss:$2 sm:$0xff]  ;;  %v5543_v47 = vld [vmem:[%s6999_s24 + $0x74] ss:$2 sm:$0xff]  ;;  %v5542_v48 = vld [vmem:[%s6999_s24 + $0x64] ss:$2 sm:$0xff] }
  0x2f   : > { %v5575_v52 = vld [vmem:[%s6999_s24 + $0x75] ss:$2 sm:$0xff]  ;;  %v5574_v53 = vld [vmem:[%s6999_s24 + $0x65] ss:$2 sm:$0xff]  ;;  %v5418_v58 = vld [vmem:[%s6999_s24 + $0xa8] ss:$2 sm:$0xff] }
  0x30   : > { %v5573_v54 = vld [vmem:[%s6999_s24 + $0x55] ss:$2 sm:$0xff]  ;;  %v5417_v59 = vld [vmem:[%s6999_s24 + $0x98] ss:$2 sm:$0xff]  ;;  %v5416_v61 = vld [vmem:[%s6999_s24 + $0x88] ss:$2 sm:$0xff] }
  0x31   : > { %1276 = vperm.xlu2 %6801, %v5472_v7   ;;  %1034 = vperm.xlu1 %6800, %v5443_v8   ;;  %2472 = vst.msk [vmem:[#allocation2 + $0x30] sm:$0xff] %vm2465_vm0, %v9062_v60  ;;  %v5449_v1 = vld [vmem:[%s6999_s24 + $0x99] ss:$2 sm:$0xff]  ;;  %v5448_v2 = vld [vmem:[%s6999_s24 + $0x89] ss:$2 sm:$0xff] }
  0x32   : > { %1029 = vperm.xlu0 %6799, %v5442_v9   ;;  %2473 = vst.msk [vmem:[#allocation2 + $0x38] sm:$0xff] %vm2465_vm0, %v9062_v60  ;;  %v5419_v3 = vld [vmem:[%s6999_s24 + $0xb8] ss:$2 sm:$0xff]  ;;  %v5451_v9 = vld [vmem:[%s6999_s24 + $0xb9] ss:$2 sm:$0xff] }
  0x33   : > { %2474 = vst.msk [vmem:[#allocation2 + $0x40] sm:$0xff] %vm2465_vm0, %v9062_v60  ;;  %v440_v7 = vld [vmem:[%s9072_s1] sm:$0x1f]  ;;  %v5480_v8 = vld [vmem:[%s6999_s24 + $0x8a] ss:$2 sm:$0xff] }
  0x34   : > { %2475 = vst.msk [vmem:[#allocation2 + $0x48] sm:$0xff] %vm2465_vm0, %v9062_v60 }
  0x35   : > { %2476 = vst.msk [vmem:[#allocation2 + $0x50] sm:$0xff] %vm2465_vm0, %v9062_v60 }
  0x36   : > { %2477 = vst.msk [vmem:[#allocation2 + $0x58] sm:$0xff] %vm2465_vm0, %v9062_v60 }
  0x37   : > { %2478 = vst.msk [vmem:[#allocation2 + $0x60] sm:$0xff] %vm2465_vm0, %v9062_v60 }
  0x38   : > { %2479 = vst.msk [vmem:[#allocation2 + $0x68] sm:$0xff] %vm2465_vm0, %v9062_v60 }
  0x39   : > { %1291 = vperm.xlu2 %6801, %v5475_v10   ;;  %1286 = vperm.xlu1 %6800, %v5474_v11   ;;  %2480 = vst.msk [vmem:[#allocation2 + $0x70] sm:$0xff] %vm2465_vm0, %v9062_v60  ;;  %v5450_v10 = vld [vmem:[%s6999_s24 + $0xa9] ss:$2 sm:$0xff]  ;;  %v7127_v11 = vperm.slane %v440_v7, 0 }
  0x3a   : > { %1281 = vperm.xlu0 %6799, %v5473_v12   ;;  %2481 = vst.msk [vmem:[#allocation2 + $0x78] sm:$0xff] %vm2465_vm0, %v9062_v60  ;;  %v7129_v12 = vperm.slane %v440_v7, 1 }
  0x3b   : > { %2482 = vst.msk [vmem:[#allocation2 + $0x80] sm:$0xff] %vm2465_vm0, %v9062_v60 }
  0x3c   : > { %2483 = vst.msk [vmem:[#allocation2 + $0x88] sm:$0xff] %vm2465_vm0, %v9062_v60 }
  0x3d   : > { %2484 = vst.msk [vmem:[#allocation2 + $0x90] sm:$0xff] %vm2465_vm0, %v9062_v60 }
  0x3e   : > { %2485 = vst.msk [vmem:[#allocation2 + $0x98] sm:$0xff] %vm2465_vm0, %v9062_v60 }
  0x3f   : > { %2486 = vst.msk [vmem:[#allocation2 + $0xa0] sm:$0xff] %vm2465_vm0, %v9062_v60 }
  0x40   : > { %2487 = vst.msk [vmem:[#allocation2 + $0xa8] sm:$0xff] %vm2465_vm0, %v9062_v60 }
  0x41   : > { %1575 = vperm.xlu2 %6801, %v5506_v13   ;;  %1570 = vperm.xlu1 %6800, %v5505_v14   ;;  %2488 = vst.msk [vmem:[#allocation2 + $0xb0] sm:$0xff] %vm2465_vm0, %v9062_v60 }
  0x42   : > { %1565 = vperm.xlu0 %6799, %v5504_v15   ;;  %2489 = vst.msk [vmem:[#allocation2 + $0xb8] sm:$0xff] %vm2465_vm0, %v9062_v60 }
  0x43   : > { %2490 = vst.msk [vmem:[#allocation2 + $0xc0] sm:$0xff] %vm2465_vm0, %v9062_v60 }
  0x44   : > { %2491 = vst.msk [vmem:[#allocation2 + $0xc8] sm:$0xff] %vm2465_vm0, %v9062_v60 }
  0x45   : > { %2492 = vst.msk [vmem:[#allocation2 + $0xd0] sm:$0xff] %vm2465_vm0, %v9062_v60 }
  0x46   : > { %2493 = vst.msk [vmem:[#allocation2 + $0xd8] sm:$0xff] %vm2465_vm0, %v9062_v60 }
  0x47   : > { %2494 = vst.msk [vmem:[#allocation2 + $0xe0] sm:$0xff] %vm2465_vm0, %v9062_v60 }
  0x48   : > { %2495 = vst.msk [vmem:[#allocation2 + $0xe8] sm:$0xff] %vm2465_vm0, %v9062_v60 }
  0x49   : > { %1859 = vperm.xlu2 %6801, %v5537_v16   ;;  %1854 = vperm.xlu1 %6800, %v5536_v17   ;;  %2496 = vst.msk [vmem:[#allocation2 + $0xf0] sm:$0xff] %vm2465_vm0, %v9062_v60 }
  0x4a   : > { %1580 = vperm.xlu0 %6799, %v5507_v18   ;;  %v5483_v18 = vld [vmem:[%s6999_s24 + $0xba] ss:$2 sm:$0xff]  ;;  %2497 = vst.msk [vmem:[#allocation2 + $0xf8] sm:$0xff] %vm2465_vm0, %v9062_v60 }
  0x4b   : > { %2498 = vst.msk [vmem:[#allocation2 + $0x100] sm:$0xff] %vm2465_vm0, %v9062_v60 }
  0x4c   : > { %2499 = vst.msk [vmem:[#allocation2 + $0x108] sm:$0xff] %vm2465_vm0, %v9062_v60 }
  0x4d   : > { %2500 = vst.msk [vmem:[#allocation2 + $0x110] sm:$0xff] %vm2465_vm0, %v9062_v60 }
  0x4e   : > { %2501 = vst.msk [vmem:[#allocation2 + $0x118] sm:$0xff] %vm2465_vm0, %v9062_v60 }
  0x4f   : > { %2502 = vst.msk [vmem:[#allocation2 + $0x120] sm:$0xff] %vm2465_vm0, %v9062_v60 }
  0x50   : > { %2503 = vst.msk [vmem:[#allocation2 + $0x128] sm:$0xff] %vm2465_vm0, %v9062_v60 }
  0x51   : > { %2143 = vperm.xlu2 %6801, %v5568_v19   ;;  %1869 = vperm.xlu1 %6800, %v5539_v20   ;;  %v7154_v20 = vperm.slane %v440_v7, 2  ;;  %2504 = vst.msk [vmem:[#allocation2 + $0x130] sm:$0xff] %vm2465_vm0, %v9062_v60 }
  0x52   : > { %1864 = vperm.xlu0 %6799, %v5538_v21   ;;  %2505 = vst.msk [vmem:[#allocation2 + $0x138] sm:$0xff] %vm2465_vm0, %v9062_v60 }
  0x59   : > { %2158 = vperm.xlu2 %6801, %v5571_v22   ;;  %2153 = vperm.xlu1 %6800, %v5570_v23   ;;  %v5482_v22 = vld [vmem:[%s6999_s24 + $0xaa] ss:$2 sm:$0xff]  ;;  %v5481_v23 = vld [vmem:[%s6999_s24 + $0x9a] ss:$2 sm:$0xff] }
  0x5a   : > { %2148 = vperm.xlu0 %6799, %v5569_v24   ;;  %v6585_v24 = vld [vmem:[%s9073_s3 + $0x18] sm:$0xff] }
  0x5b   : > { %2765 = vmatpush.bf16.msra.mxu0 %v6585_v24 }
  0x61   : > { %856 = vperm.xlu2 %6801, %v5414_v25   ;;  %851 = vperm.xlu1 %6800, %v5413_v26   ;;  %v6583_v25 = vld [vmem:[%s9073_s3 + $0x8] sm:$0xff] }
  0x62   : > { %846 = vperm.xlu0 %6799, %v5412_v27   ;;  %v6587_v26 = vld [vmem:[%s9073_s3 + $0x28] sm:$0xff]  ;;  %2890 = vmatpush.bf16.msra.mxu1 %v6583_v25 }
  0x63   : > { %3028 = vmatpush.bf16.msra.mxu2 %v6587_v26 }
  0x69   : > { %1044 = vperm.xlu2 %6801, %v5445_v28   ;;  %1039 = vperm.xlu1 %6800, %v5444_v29   ;;  %v7173_v28 = vperm.slane %v440_v7, 3 }
  0x6a   : > { %861 = vperm.xlu0 %6799, %v5415_v30   ;;  %v7178_v30 = vperm.slane %v440_v7, 4 }
  0x71   : > { %1296 = vperm.xlu2 %6801, %v5476_v31   ;;  %1054 = vperm.xlu1 %6800, %v5447_v32  }
  0x72   : > { %1049 = vperm.xlu0 %6799, %v5446_v33  }
  0x79   : > { %1311 = vperm.xlu2 %6801, %v5479_v34   ;;  %1306 = vperm.xlu1 %6800, %v5478_v35  }
  0x7a   : > { %1301 = vperm.xlu0 %6799, %v5477_v36  }
  0x7b   : > { %v7037_v37 = vpop.permute.xlu2 %1019 }
  0x7c   : > { %v1210_v15 = vmul.f32 %v7129_v12, %v7037_v37  ;;  %v1177_v19 = vmul.f32 %v7037_v37, %v7127_v11 }
  0x81   : > { %1595 = vperm.xlu2 %6801, %v5510_v38   ;;  %1590 = vperm.xlu1 %6800, %v5509_v39  }
  0x82   : > { %1585 = vperm.xlu0 %6799, %v5508_v40  }
  0x83   : > { %v7042_v41 = vpop.permute.xlu2 %1024 }
  0x89   : > { %1879 = vperm.xlu2 %6801, %v5541_v42   ;;  %1874 = vperm.xlu1 %6800, %v5540_v43   ;;  %v6584_v43 = vld [vmem:[%s9073_s3 + $0x10] sm:$0xff] }
  0x8a   : > { %1600 = vperm.xlu0 %6799, %v5511_v44   ;;  %v6582_v44 = vld [vmem:[%s9073_s3] sm:$0xff]  ;;  %2766 = vmatpush.bf16.msra.mxu0 %v6584_v43 }
  0x8b   : > { %v7047_v45 = vpop.permute.xlu2 %1276  ;;  %2891 = vmatpush.bf16.msra.mxu1 %v6582_v44 }
  0x8c   : > { %v1434_v21 = vmul.f32 %v7047_v45, %v7129_v12  ;;  %v1499_v32 = vmul.f32 %v7154_v20, %v7047_v45  ;;  %v6586_v45 = vld [vmem:[%s9073_s3 + $0x20] sm:$0xff] }
  0x8d   : > { %3029 = vmatpush.bf16.msra.mxu2 %v6586_v45 }
  0x8e   : > { %v1466_v31 = vadd.f32 %v1434_v21, %v1177_v19 }
  0x91   : > { %2163 = vperm.xlu2 %6801, %v5572_v46   ;;  %1889 = vperm.xlu1 %6800, %v5543_v47   ;;  %v1178_v46 = vmul.f32 %v7042_v41, %v7127_v11  ;;  %v1211_v47 = vmul.f32 %v7129_v12, %v7042_v41 }
  0x92   : > { %1884 = vperm.xlu0 %6799, %v5542_v48  }
  0x93   : > { %v7052_v49 = vpop.permute.xlu2 %1291  ;;  %v7054_v50 = vpop.permute.xlu1 %836 }
  0x94   : > { %v7056_v51 = vpop.permute.xlu0 %826  ;;  %v1437_v41 = vmul.f32 %v7052_v49, %v7129_v12 }
  0x95   : > { %v985_v16 = vmul.f32 %v7127_v11, %v7056_v51 }
  0x97   : > { %v1242_v27 = vadd.f32 %v1210_v15, %v985_v16 }
  0x99   : > { %2178 = vperm.xlu2 %6801, %v5575_v52   ;;  %2173 = vperm.xlu1 %6800, %v5574_v53   ;;  %v1531_v37 = vadd.f32 %v1499_v32, %v1242_v27 }
  0x9a   : > { %2168 = vperm.xlu0 %6799, %v5573_v54  }
  0x9b   : > { %v7061_v55 = vpop.permute.xlu2 %1575  ;;  %v7063_v56 = vpop.permute.xlu1 %841 }
  0x9c   : > { %v7065_v57 = vpop.permute.xlu0 %831  ;;  %v988_v48 = vmul.f32 %v7127_v11, %v7063_v56 }
  0xa1   : > { %876 = vperm.xlu2 %6801, %v5418_v58   ;;  %871 = vperm.xlu1 %6800, %v5417_v59   ;;  %v5514_v58 = vld [vmem:[%s6999_s24 + $0xab] ss:$2 sm:$0xff]  ;;  %v5513_v59 = vld [vmem:[%s6999_s24 + $0x9b] ss:$2 sm:$0xff] }
  0xa2   : > { %866 = vperm.xlu0 %6799, %v5416_v61  }
  0xa3   : > { %v7080_v62 = vpop.permute.xlu2 %1859  ;;  %v7082_v63 = vpop.permute.xlu1 %1034 }
  0xa4   : > { %v7086_v0 = vpop.permute.xlu0 %1029  ;;  %v1213_v34 = vmul.f32 %v7129_v12, %v7082_v63  ;;  %v1180_v51 = vmul.f32 %v7082_v63, %v7127_v11  ;;  %v5512_v63 = vld [vmem:[%s6999_s24 + $0x8b] ss:$2 sm:$0xff] }
  0xa5   : > { %v1212_v61 = vmul.f32 %v7129_v12, %v7086_v0 }
  0xa6   : > { %v1245_v56 = vadd.f32 %v1213_v34, %v988_v48 }
  0xa9   : > { %1064 = vperm.xlu2 %6801, %v5449_v1   ;;  %1059 = vperm.xlu1 %6800, %v5448_v2   ;;  %v1502_v1 = vmul.f32 %v7154_v20, %v7052_v49  ;;  %v7234_v2 = vld [vmem:[%s9074_s2] ss:$0 sm:$0xff] }
  0xaa   : > { %881 = vperm.xlu0 %6799, %v5419_v3  }
  0xab   : > { %v7105_v4 = vpop.permute.xlu2 %2143  ;;  %v7107_v5 = vpop.permute.xlu1 %1286 }
  0xac   : > { %v7111_v6 = vpop.permute.xlu0 %1281  ;;  %v2301_v52 = vmul.f32 %v7105_v4, %v7178_v30  ;;  %v1436_v49 = vmul.f32 %v7107_v5, %v7129_v12 }
  0xad   : > { %v1500_v27 = vmul.f32 %v7154_v20, %v7111_v6 }
  0xb1   : > { %1316 = vperm.xlu2 %6801, %v5480_v8   ;;  %1074 = vperm.xlu1 %6800, %v5451_v9   ;;  %v987_v8 = vmul.f32 %v7127_v11, %v7054_v50  ;;  %v986_v9 = vmul.f32 %v7127_v11, %v7065_v57  ;;  %v1179_v50 = vmul.f32 %v7086_v0, %v7127_v11 }
  0xb2   : > { %1069 = vperm.xlu0 %6799, %v5450_v10   ;;  %v1469_v10 = vadd.f32 %v1437_v41, %v1180_v51 }
  0xb3   : > { %v7137_v13 = vpop.permute.xlu2 %2158  ;;  %v7139_v14 = vpop.permute.xlu1 %1570  ;;  %v1244_v57 = vadd.f32 %v1212_v61, %v987_v8  ;;  %v1468_v26 = vadd.f32 %v1436_v49, %v1179_v50  ;;  %v5576_v49 = vld [vmem:[%s6999_s24 + $0x8d] ss:$2 sm:$0xff]  ;;  %v5546_v50 = vld [vmem:[%s6999_s24 + $0xac] ss:$2 sm:$0xff] }
  0xb4   : > { %v1566_v17 = vpop.permute.xlu0 %1565 }
  0xb5   : > { %v1723_v29 = vmul.f32 %v1566_v17, %v7154_v20  ;;  %v1788_v33 = vmul.f32 %v7173_v28, %v1566_v17  ;;  %v1435_v17 = vmul.f32 %v7111_v6, %v7129_v12  ;;  %v1243_v6 = vadd.f32 %v1211_v47, %v986_v9 }
  0xb7   : > { %v1755_v38 = vadd.f32 %v1723_v29, %v1466_v31  ;;  %v1820_v53 = vadd.f32 %v1788_v33, %v1531_v37  ;;  %v1724_v29 = vmul.f32 %v7139_v14, %v7154_v20  ;;  %v2304_v31 = vmul.f32 %v7137_v13, %v7178_v30  ;;  %v5544_v37 = vld [vmem:[%s6999_s24 + $0x8c] ss:$2 sm:$0xff] }
  0xb8   : > { %v1532_v48 = vadd.f32 %v1500_v27, %v1243_v6  ;;  %v5577_v27 = vld [vmem:[%s6999_s24 + $0x9d] ss:$2 sm:$0xff] }
  0xb9   : > { %1331 = vperm.xlu2 %6801, %v5483_v18   ;;  %1326 = vperm.xlu1 %6800, %v5482_v22   ;;  %v1534_v18 = vadd.f32 %v1502_v1, %v1245_v56  ;;  %v1501_v22 = vmul.f32 %v7154_v20, %v7107_v5  ;;  %v2078_v1 = vmul.f32 %v7178_v30, %v7080_v62 }
  0xba   : > { %1321 = vperm.xlu0 %6799, %v5481_v23  }
  0xbb   : > { %v7189_v35 = vpop.permute.xlu2 %856  ;;  %v1855_v36 = vpop.permute.xlu1 %1854  ;;  %v1533_v43 = vadd.f32 %v1501_v22, %v1244_v57 }
  0xbc   : > { %v2012_v39 = vmul.f32 %v1855_v36, %v7173_v28  ;;  %v2077_v40 = vmul.f32 %v7178_v30, %v1855_v36  ;;  %v1581_v42 = vpop.permute.xlu0 %1580  ;;  %v5545_v36 = vld [vmem:[%s6999_s24 + $0x9c] ss:$2 sm:$0xff] }
  0xbd   : > { %v1726_v7 = vmul.f32 %v1581_v42, %v7154_v20  ;;  %v1791_v16 = vmul.f32 %v7173_v28, %v1581_v42  ;;  %v5515_v42 = vld [vmem:[%s6999_s24 + $0xbb] ss:$2 sm:$0xff] }
  0xbe   : > { %v2044_v54 = vadd.f32 %v2012_v39, %v1755_v38  ;;  %v2109_v3 = vadd.f32 %v2077_v40, %v1820_v53  ;;  %v1725_v38 = vmul.f32 %v7061_v55, %v7154_v20  ;;  %v1467_v39 = vadd.f32 %v1435_v17, %v1178_v46 }
  0xbf   : > { %v1758_v0 = vadd.f32 %v1726_v7, %v1469_v10  ;;  %v1823_v33 = vadd.f32 %v1791_v16, %v1534_v18  ;;  %v1789_v40 = vmul.f32 %v7173_v28, %v7139_v14  ;;  %v2013_v14 = vmul.f32 %v7080_v62, %v7173_v28  ;;  %v5547_v10 = vld [vmem:[%s6999_s24 + $0xbc] ss:$2 sm:$0xff] }
  0xc0   : > { %v2333_v4 = vadd.f32 %v2301_v52, %v2044_v54  ;;  %v1756_v51 = vadd.f32 %v1724_v29, %v1467_v39  ;;  %v1790_v52 = vmul.f32 %v7173_v28, %v7061_v55  ;;  %v1757_v46 = vadd.f32 %v1725_v38, %v1468_v26  ;;  %v5578_v26 = vld [vmem:[%s6999_s24 + $0xad] ss:$2 sm:$0xff] }
  0xc1   : > { %1615 = vperm.xlu2 %6801, %v5514_v58   ;;  %1610 = vperm.xlu1 %6800, %v5513_v59   ;;  %v1821_v54 = vadd.f32 %v1789_v40, %v1532_v48  ;;  %v5422_v40 = vld [vmem:[%s6999_s24 + $0xe8] ss:$2 sm:$0xff] }
  0xc2   : > { %v2365_v15 = vmax.f32 %v2109_v3, %v2333_v4  ;;  %1605 = vperm.xlu0 %6799, %v5512_v63   ;;  %v1822_v56 = vadd.f32 %v1790_v52, %v1533_v43  ;;  %v2045_v3 = vadd.f32 %v2013_v14, %v1756_v51  ;;  %v5421_v43 = vld [vmem:[%s6999_s24 + $0xd8] ss:$2 sm:$0xff]  ;;  %v5453_v51 = vld [vmem:[%s6999_s24 + $0xd9] ss:$2 sm:$0xff]  ;;  %v5452_v52 = vld [vmem:[%s6999_s24 + $0xc9] ss:$2 sm:$0xff] }
  0xc3   : > { %v7256_v19 = vpop.permute.xlu2 %1044  ;;  %v1870_v21 = vpop.permute.xlu1 %1869 }
  0xc4   : > { %v2401_v23 = vadd.f32 %v7234_v2, %v2365_v15  ;;  %v2015_v24 = vmul.f32 %v1870_v21, %v7173_v28  ;;  %v1865_v25 = vpop.permute.xlu0 %1864  ;;  %v2080_v5 = vmul.f32 %v7178_v30, %v1870_v21  ;;  %v2110_v15 = vadd.f32 %v2078_v1, %v1821_v54  ;;  %v5484_v54 = vld [vmem:[%s6999_s24 + $0xca] ss:$2 sm:$0xff] }
  0xc5   : > { %v2014_v13 = vmul.f32 %v1865_v25, %v7173_v28  ;;  %v2079_v53 = vmul.f32 %v7178_v30, %v1865_v25  ;;  %v5579_v25 = vld [vmem:[%s6999_s24 + $0xbd] ss:$2 sm:$0xff] }
  0xc6   : > { %v2433_v32 = vmax.f32 %v2401_v23, 0.0  ;;  %v2047_v34 = vadd.f32 %v2015_v24, %v1758_v0  ;;  %v2112_v44 = vadd.f32 %v2080_v5, %v1823_v33 }
  0xc7   : > { %v2046_v61 = vadd.f32 %v2014_v13, %v1757_v46  ;;  %v2111_v8 = vadd.f32 %v2079_v53, %v1822_v56 }
  0xc8   : > { %2506 = vst.msk [vmem:[#allocation2 + $0x8] sm:$0xff] %vm2465_vm0, %v2433_v32  ;;  %v2336_v45 = vadd.f32 %v2304_v31, %v2047_v34 }
  0xc9   : > { %1899 = vperm.xlu2 %6801, %v5545_v36   ;;  %1894 = vperm.xlu1 %6800, %v5544_v37  }
  0xca   : > { %v2368_v47 = vmax.f32 %v2112_v44, %v2336_v45  ;;  %1620 = vperm.xlu0 %6799, %v5515_v42   ;;  %v5420_v44 = vld [vmem:[%s6999_s24 + $0xc8] ss:$2 sm:$0xff] }
  0xcb   : > { %v7287_v58 = vpop.permute.xlu2 %1296  ;;  %v2154_v59 = vpop.permute.xlu1 %2153 }
  0xcc   : > { %v2404_v41 = vadd.f32 %v7234_v2, %v2368_v47  ;;  %v2303_v55 = vmul.f32 %v2154_v59, %v7178_v30  ;;  %v2149_v63 = vpop.permute.xlu0 %2148  ;;  %v5423_v47 = vld [vmem:[%s6999_s24 + $0xf8] ss:$2 sm:$0xff]  ;;  %v5455_v59 = vld [vmem:[%s6999_s24 + $0xf9] ss:$2 sm:$0xff] }
  0xcd   : > { %v2302_v4 = vmul.f32 %v2149_v63, %v7178_v30 }
  0xce   : > { %v2436_v7 = vmax.f32 %v2404_v41, 0.0  ;;  %v2335_v9 = vadd.f32 %v2303_v55, %v2046_v61  ;;  %v5454_v41 = vld [vmem:[%s6999_s24 + $0xe9] ss:$2 sm:$0xff] }
  0xcf   : > { %v2334_v16 = vadd.f32 %v2302_v4, %v2045_v3  ;;  %v5487_v4 = vld [vmem:[%s6999_s24 + $0xfa] ss:$2 sm:$0xff] }
  0xd0   : > { %2509 = vst.msk [vmem:[#allocation2 + $0x20] sm:$0xff] %vm2465_vm0, %v2436_v7  ;;  %v2367_v57 = vmax.f32 %v2111_v8, %v2335_v9  ;;  %v1438_v7 = vmul.f32 %v7287_v58, %v7129_v12 }
  0xd1   : > { %v2366_v17 = vmax.f32 %v2110_v15, %v2334_v16  ;;  %2183 = vperm.xlu2 %6801, %v5576_v49   ;;  %1909 = vperm.xlu1 %6800, %v5547_v10   ;;  %v5486_v49 = vld [vmem:[%s6999_s24 + $0xea] ss:$2 sm:$0xff]  ;;  %v5485_v10 = vld [vmem:[%s6999_s24 + $0xda] ss:$2 sm:$0xff]  ;;  %v1503_v15 = vmul.f32 %v7154_v20, %v7287_v58 }
  0xd2   : > { %v2403_v62 = vadd.f32 %v7234_v2, %v2367_v57  ;;  %1904 = vperm.xlu0 %6799, %v5546_v50  }
  0xd3   : > { %v2402_v18 = vadd.f32 %v7234_v2, %v2366_v17  ;;  %v7300_v21 = vpop.permute.xlu2 %1311  ;;  %v7302_v22 = vpop.permute.xlu1 %851 }
  0xd4   : > { %v2435_v23 = vmax.f32 %v2403_v62, 0.0  ;;  %v847_v0 = vpop.permute.xlu0 %846 }
  0xd5   : > { %v2434_v24 = vmax.f32 %v2402_v18, 0.0  ;;  %v989_v1 = vmul.f32 %v7127_v11, %v847_v0 }
  0xd6   : > { %2508 = vst.msk [vmem:[#allocation2 + $0x18] sm:$0xff] %vm2465_vm0, %v2435_v23 }
  0xd7   : > { %2507 = vst.msk [vmem:[#allocation2 + $0x10] sm:$0xff] %vm2465_vm0, %v2434_v24 }
  0xd9   : > { %2198 = vperm.xlu2 %6801, %v5579_v25   ;;  %2193 = vperm.xlu1 %6800, %v5578_v26  }
  0xda   : > { %2188 = vperm.xlu0 %6799, %v5577_v27  }
  0xdb   : > { %v7309_v29 = vpop.permute.xlu2 %1595  ;;  %v1040_v5 = vpop.permute.xlu1 %1039 }
  0xdc   : > { %v7311_v31 = vpop.permute.xlu0 %861  ;;  %v1214_v55 = vmul.f32 %v7129_v12, %v1040_v5  ;;  %v1181_v3 = vmul.f32 %v1040_v5, %v7127_v11 }
  0xdd   : > { %v2573_v32 = vld [vmem:[#allocation2 + $0x18] ss:$2 sm:$0xff]  ;;  %v2605_v33 = vld [vmem:[#allocation2 + $0x19] ss:$2 sm:$0xff]  ;;  %v992_v25 = vmul.f32 %v7127_v11, %v7311_v31  ;;  %v1441_v31 = vmul.f32 %v7300_v21, %v7129_v12 }
  0xde   : > { %v2571_v34 = vld [vmem:[#allocation2 + $0x8] ss:$2 sm:$0xff]  ;;  %v2539_v36 = vld [vmem:[#allocation2 + $0x7] ss:$2 sm:$0xff]  ;;  %v2541_v37 = vld [vmem:[#allocation2 + $0x17] ss:$2 sm:$0xff]  ;;  %v1246_v8 = vadd.f32 %v1214_v55, %v989_v1  ;;  %v1470_v16 = vadd.f32 %v1438_v7, %v1181_v3 }
  0xdf   : > { %v7313_v38 = vpack.c.bf16 %v2573_v32, %v2571_v34  ;;  %v2666_v6 = vpack.c.bf16 %v2541_v37, %v2539_v36  ;;  %v2603_v39 = vld [vmem:[#allocation2 + $0x9] ss:$2 sm:$0xff]  ;;  %v1182_v34 = vmul.f32 %v7256_v19, %v7127_v11 }
  0xe0   : > { %v7316_v42 = vpack.c.bf16 %v2605_v33, %v2603_v39  ;;  %v1535_v18 = vadd.f32 %v1503_v15, %v1246_v8  ;;  %v991_v33 = vmul.f32 %v7127_v11, %v7189_v35  ;;  %v1215_v35 = vmul.f32 %v7129_v12, %v7256_v19 }
  0xe1   : > { %5612 = vmatmul.msk.bf16.vlgmr.msra.gmra.mxu0 %vm2465_vm0, %v7313_v38  ;;  %5636 = vmatmul.msk.bf16.vlgmr.msra.gmra.mxu1 %vm2465_vm0, %v2666_v6  ;;  %v5518_v6 = vld [vmem:[%s6999_s24 + $0xeb] ss:$2 sm:$0xff] }
  0xe2   : > { %5664 = vmatmul.msk.bf16.vlgmr.msra.gmra.mxu2 %vm2465_vm0, %v7316_v42  ;;  %896 = vperm.xlu2 %6801, %v5422_v40  }
  0xe3   : > { %891 = vperm.xlu1 %6800, %v5421_v43   ;;  %886 = vperm.xlu0 %6799, %v5420_v44   ;;  %v7325_v45 = vpop.permute.xlu2 %1879  ;;  %v1055_v13 = vpop.permute.xlu1 %1054  ;;  %v5517_v44 = vld [vmem:[%s6999_s24 + $0xdb] ss:$2 sm:$0xff] }
  0xe4   : > { %v7327_v48 = vpop.permute.xlu0 %1049  ;;  %v1217_v57 = vmul.f32 %v7129_v12, %v1055_v13  ;;  %v1184_v26 = vmul.f32 %v1055_v13, %v7127_v11  ;;  %v5516_v13 = vld [vmem:[%s6999_s24 + $0xcb] ss:$2 sm:$0xff] }
  0xe5   : > { %v1216_v37 = vmul.f32 %v7129_v12, %v7327_v48 }
  0xe6   : > { %v1249_v36 = vadd.f32 %v1217_v57, %v992_v25 }
  0xe7   : > { %v1248_v55 = vadd.f32 %v1216_v37, %v991_v33 }
  0xea   : > { %1084 = vperm.xlu2 %6801, %v5453_v51   ;;  %v1506_v51 = vmul.f32 %v7154_v20, %v7300_v21 }
  0xeb   : > { %1079 = vperm.xlu1 %6800, %v5452_v52   ;;  %901 = vperm.xlu0 %6799, %v5423_v47   ;;  %v2164_v46 = vpop.permute.xlu2 %2163  ;;  %v7332_v53 = vpop.permute.xlu1 %1306  ;;  %v990_v52 = vmul.f32 %v7127_v11, %v7302_v22 }
  0xec   : > { %v7334_v14 = vpop.permute.xlu0 %1301  ;;  %v2305_v27 = vmul.f32 %v2164_v46, %v7178_v30  ;;  %v1440_v47 = vmul.f32 %v7332_v53, %v7129_v12  ;;  %v1473_v46 = vadd.f32 %v1441_v31, %v1184_v26  ;;  %v1505_v1 = vmul.f32 %v7154_v20, %v7332_v53  ;;  %v5519_v26 = vld [vmem:[%s6999_s24 + $0xfb] ss:$2 sm:$0xff] }
  0xed   : > { %v1439_v19 = vmul.f32 %v7334_v14, %v7129_v12  ;;  %v1247_v57 = vadd.f32 %v1215_v35, %v990_v52 }
  0xf2   : > { %1336 = vperm.xlu2 %6801, %v5484_v54   ;;  %v1183_v54 = vmul.f32 %v7327_v48, %v7127_v11 }
  0xf3   : > { %1094 = vperm.xlu1 %6800, %v5455_v59   ;;  %1089 = vperm.xlu0 %6799, %v5454_v41   ;;  %v7339_v56 = vpop.permute.xlu2 %2178  ;;  %v7341_v61 = vpop.permute.xlu1 %1590 }
  0xf4   : > { %v1586_v63 = vpop.permute.xlu0 %1585  ;;  %v1472_v8 = vadd.f32 %v1440_v47, %v1183_v54  ;;  %v2308_v53 = vmul.f32 %v7339_v56, %v7178_v30  ;;  %v5548_v56 = vld [vmem:[%s6999_s24 + $0xcc] ss:$2 sm:$0xff] }
  0xf5   : > { %v1727_v9 = vmul.f32 %v1586_v63, %v7154_v20  ;;  %v1792_v50 = vmul.f32 %v7173_v28, %v1586_v63  ;;  %v1538_v63 = vadd.f32 %v1506_v51, %v1249_v36  ;;  %v2017_v36 = vmul.f32 %v7325_v45, %v7173_v28 }
  0xf7   : > { %v1759_v23 = vadd.f32 %v1727_v9, %v1470_v16  ;;  %v1824_v5 = vadd.f32 %v1792_v50, %v1535_v18  ;;  %v1504_v9 = vmul.f32 %v7154_v20, %v7334_v14  ;;  %v1471_v18 = vadd.f32 %v1439_v19, %v1182_v34  ;;  %v5551_v19 = vld [vmem:[%s6999_s24 + $0xfc] ss:$2 sm:$0xff] }
  0xf8   : > { %v1793_v14 = vmul.f32 %v7173_v28, %v7341_v61 }
  0xfa   : > { %1351 = vperm.xlu2 %6801, %v5487_v4  }
  0xfb   : > { %1346 = vperm.xlu1 %6800, %v5486_v49   ;;  %1341 = vperm.xlu0 %6799, %v5485_v10   ;;  %v7356_v17 = vpop.permute.xlu2 %876  ;;  %v1875_v62 = vpop.permute.xlu1 %1874  ;;  %v1728_v49 = vmul.f32 %v7341_v61, %v7154_v20 }
  0xfc   : > { %v2016_v0 = vmul.f32 %v1875_v62, %v7173_v28  ;;  %v2081_v24 = vmul.f32 %v7178_v30, %v1875_v62  ;;  %v1601_v58 = vpop.permute.xlu0 %1600  ;;  %v1729_v62 = vmul.f32 %v7309_v29, %v7154_v20 }
  0xfd   : > { %v1730_v43 = vmul.f32 %v1601_v58, %v7154_v20  ;;  %v1795_v41 = vmul.f32 %v7173_v28, %v1601_v58 }
  0xfe   : > { %v2048_v32 = vadd.f32 %v2016_v0, %v1759_v23  ;;  %v2113_v39 = vadd.f32 %v2081_v24, %v1824_v5  ;;  %v5549_v23 = vld [vmem:[%s6999_s24 + $0xdc] ss:$2 sm:$0xff]  ;;  %v1537_v0 = vadd.f32 %v1505_v1, %v1248_v55  ;;  %v1760_v5 = vadd.f32 %v1728_v49, %v1471_v18  ;;  %v5582_v49 = vld [vmem:[%s6999_s24 + $0xed] ss:$2 sm:$0xff] }
  0xff   : > { %v1762_v48 = vadd.f32 %v1730_v43, %v1473_v46  ;;  %v1827_v16 = vadd.f32 %v1795_v41, %v1538_v63  ;;  %v1761_v61 = vadd.f32 %v1729_v62, %v1472_v8  ;;  %v5580_v41 = vld [vmem:[%s6999_s24 + $0xcd] ss:$2 sm:$0xff]  ;;  %v5550_v63 = vld [vmem:[%s6999_s24 + $0xec] ss:$2 sm:$0xff] }
 0x100   : > { %v2337_v40 = vadd.f32 %v2305_v27, %v2048_v32  ;;  %v1536_v27 = vadd.f32 %v1504_v9, %v1247_v57  ;;  %v1794_v32 = vmul.f32 %v7173_v28, %v7309_v29  ;;  %v2049_v35 = vadd.f32 %v2017_v36, %v1760_v5  ;;  %v5583_v9 = vld [vmem:[%s6999_s24 + $0xfd] ss:$2 sm:$0xff] }
 0x102   : > { %v2369_v59 = vmax.f32 %v2113_v39, %v2337_v40  ;;  %1635 = vperm.xlu2 %6801, %v5518_v6   ;;  %v1825_v37 = vadd.f32 %v1793_v14, %v1536_v27  ;;  %v1826_v40 = vadd.f32 %v1794_v32, %v1537_v0 }
 0x103   : > { %1630 = vperm.xlu1 %6800, %v5517_v44   ;;  %1625 = vperm.xlu0 %6799, %v5516_v13   ;;  %v7389_v21 = vpop.permute.xlu2 %1064  ;;  %v1890_v22 = vpop.permute.xlu1 %1889  ;;  %v2082_v13 = vmul.f32 %v7178_v30, %v7325_v45 }
 0x104   : > { %v2405_v3 = vadd.f32 %v7234_v2, %v2369_v59  ;;  %v2019_v4 = vmul.f32 %v1890_v22, %v7173_v28  ;;  %v1885_v7 = vpop.permute.xlu0 %1884  ;;  %v2084_v10 = vmul.f32 %v7178_v30, %v1890_v22 }
 0x105   : > { %v2018_v25 = vmul.f32 %v1885_v7, %v7173_v28  ;;  %v2083_v34 = vmul.f32 %v7178_v30, %v1885_v7  ;;  %v2114_v54 = vadd.f32 %v2082_v13, %v1825_v37 }
 0x106   : > { %v2437_v15 = vmax.f32 %v2405_v3, 0.0  ;;  %v2051_v50 = vadd.f32 %v2019_v4, %v1762_v48  ;;  %v2116_v24 = vadd.f32 %v2084_v10, %v1827_v16  ;;  %v5581_v10 = vld [vmem:[%s6999_s24 + $0xdd] ss:$2 sm:$0xff] }
 0x107   : > { %v2050_v29 = vadd.f32 %v2018_v25, %v1761_v61  ;;  %v2115_v47 = vadd.f32 %v2083_v34, %v1826_v40  ;;  %v5456_v34 = vld [vmem:[%s6999_s24 + $0x111] ss:$2 sm:$0xff]  ;;  %v5427_v61 = vld [vmem:[%s6999_s24 + $0x140] ss:$2 sm:$0xff]  ;;  %v5459_v40 = vld [vmem:[%s6999_s24 + $0x141] ss:$2 sm:$0xff] }
 0x108   : > { %2510 = vst.msk [vmem:[#allocation2 + $0x28] sm:$0xff] %vm2465_vm0, %v2437_v15  ;;  %v2340_v58 = vadd.f32 %v2308_v53, %v2051_v50 }
 0x10a   : > { %v2372_v33 = vmax.f32 %v2116_v24, %v2340_v58  ;;  %1919 = vperm.xlu2 %6801, %v5549_v23   ;;  %v5426_v58 = vld [vmem:[%s6999_s24 + $0x130] ss:$2 sm:$0xff] }
 0x10b   : > { %1914 = vperm.xlu1 %6800, %v5548_v56   ;;  %1640 = vperm.xlu0 %6799, %v5519_v26   ;;  %v7416_v6 = vpop.permute.xlu2 %1316  ;;  %v2174_v31 = vpop.permute.xlu1 %2173  ;;  %v5425_v56 = vld [vmem:[%s6999_s24 + $0x120] ss:$2 sm:$0xff]  ;;  %v5424_v26 = vld [vmem:[%s6999_s24 + $0x110] ss:$2 sm:$0xff] }
 0x10c   : > { %v2408_v39 = vadd.f32 %v7234_v2, %v2372_v33  ;;  %v2307_v43 = vmul.f32 %v2174_v31, %v7178_v30  ;;  %v2169_v44 = vpop.permute.xlu0 %2168  ;;  %v5457_v33 = vld [vmem:[%s6999_s24 + $0x121] ss:$2 sm:$0xff] }
 0x10d   : > { %v2306_v51 = vmul.f32 %v2169_v44, %v7178_v30 }
 0x10e   : > { %v2440_v52 = vmax.f32 %v2408_v39, 0.0  ;;  %v2339_v46 = vadd.f32 %v2307_v43, %v2050_v29  ;;  %v5488_v39 = vld [vmem:[%s6999_s24 + $0x112] ss:$2 sm:$0xff]  ;;  %v5458_v29 = vld [vmem:[%s6999_s24 + $0x131] ss:$2 sm:$0xff] }
 0x10f   : > { %v2338_v59 = vadd.f32 %v2306_v51, %v2049_v35 }
 0x110   : > { %2513 = vst.msk [vmem:[#allocation2 + $0x40] sm:$0xff] %vm2465_vm0, %v2440_v52  ;;  %v2371_v55 = vmax.f32 %v2115_v47, %v2339_v46  ;;  %v5491_v47 = vld [vmem:[%s6999_s24 + $0x142] ss:$2 sm:$0xff]  ;;  %v1442_v46 = vmul.f32 %v7416_v6, %v7129_v12 }
 0x111   : > { %v2370_v22 = vmax.f32 %v2114_v54, %v2338_v59 }
 0x112   : > { %v2407_v45 = vadd.f32 %v7234_v2, %v2371_v55  ;;  %2203 = vperm.xlu2 %6801, %v5580_v41   ;;  %v5490_v41 = vld [vmem:[%s6999_s24 + $0x132] ss:$2 sm:$0xff]  ;;  %v5489_v55 = vld [vmem:[%s6999_s24 + $0x122] ss:$2 sm:$0xff] }
 0x113   : > { %v2406_v1 = vadd.f32 %v7234_v2, %v2370_v22  ;;  %1929 = vperm.xlu1 %6800, %v5551_v19   ;;  %1924 = vperm.xlu0 %6799, %v5550_v63   ;;  %v7429_v3 = vpop.permute.xlu2 %1331  ;;  %v7431_v48 = vpop.permute.xlu1 %871  ;;  %v1507_v19 = vmul.f32 %v7154_v20, %v7416_v6 }
 0x114   : > { %v2439_v4 = vmax.f32 %v2407_v45, 0.0  ;;  %v867_v7 = vpop.permute.xlu0 %866 }
 0x115   : > { %v2438_v8 = vmax.f32 %v2406_v1, 0.0  ;;  %v993_v51 = vmul.f32 %v7127_v11, %v867_v7 }
 0x116   : > { %2512 = vst.msk [vmem:[#allocation2 + $0x38] sm:$0xff] %vm2465_vm0, %v2439_v4 }
 0x117   : > { %2511 = vst.msk [vmem:[#allocation2 + $0x30] sm:$0xff] %vm2465_vm0, %v2438_v8 }
 0x11a   : > { %2218 = vperm.xlu2 %6801, %v5583_v9  }
 0x11b   : > { %2213 = vperm.xlu1 %6800, %v5582_v49   ;;  %2208 = vperm.xlu0 %6799, %v5581_v10   ;;  %v7438_v53 = vpop.permute.xlu2 %1615  ;;  %v1060_v15 = vpop.permute.xlu1 %1059 }
 0x11c   : > { %v7440_v16 = vpop.permute.xlu0 %881  ;;  %v1218_v13 = vmul.f32 %v7129_v12, %v1060_v15  ;;  %v1185_v52 = vmul.f32 %v1060_v15, %v7127_v11 }
 0x11d   : > { %v2577_v50 = vld [vmem:[#allocation2 + $0x38] ss:$2 sm:$0xff]  ;;  %v2609_v57 = vld [vmem:[#allocation2 + $0x39] ss:$2 sm:$0xff]  ;;  %v996_v10 = vmul.f32 %v7127_v11, %v7440_v16  ;;  %v1445_v16 = vmul.f32 %v7429_v3, %v7129_v12 }
 0x11e   : > { %v2575_v62 = vld [vmem:[#allocation2 + $0x28] ss:$2 sm:$0xff]  ;;  %v2543_v18 = vld [vmem:[#allocation2 + $0x27] ss:$2 sm:$0xff]  ;;  %v2545_v14 = vld [vmem:[#allocation2 + $0x37] ss:$2 sm:$0xff]  ;;  %v1250_v54 = vadd.f32 %v1218_v13, %v993_v51  ;;  %v1474_v63 = vadd.f32 %v1442_v46, %v1185_v52 }
 0x11f   : > { %v7442_v23 = vpack.c.bf16 %v2577_v50, %v2575_v62  ;;  %v2667_v0 = vpack.c.bf16 %v2545_v14, %v2543_v18  ;;  %v2607_v24 = vld [vmem:[#allocation2 + $0x29] ss:$2 sm:$0xff]  ;;  %v995_v18 = vmul.f32 %v7127_v11, %v7356_v17  ;;  %v1186_v14 = vmul.f32 %v7389_v21, %v7127_v11 }
 0x120   : > { %v7445_v25 = vpack.c.bf16 %v2609_v57, %v2607_v24  ;;  %v1539_v4 = vadd.f32 %v1507_v19, %v1250_v54  ;;  %v1510_v17 = vmul.f32 %v7154_v20, %v7429_v3 }
 0x121   : > { %5613 = vmatmul.msk.bf16.gmra.mxu0 %vm2465_vm0, %v7442_v23  ;;  %5637 = vmatmul.msk.bf16.gmra.mxu1 %vm2465_vm0, %v2667_v0  ;;  %v1219_v0 = vmul.f32 %v7129_v12, %v7389_v21 }
 0x122   : > { %5665 = vmatmul.msk.bf16.gmra.mxu2 %vm2465_vm0, %v7445_v25  ;;  %916 = vperm.xlu2 %6801, %v5426_v58   ;;  %v5522_v58 = vld [vmem:[%s6999_s24 + $0x133] ss:$2 sm:$0xff] }
 0x123   : > { %911 = vperm.xlu1 %6800, %v5425_v56   ;;  %906 = vperm.xlu0 %6799, %v5424_v26   ;;  %v7454_v27 = vpop.permute.xlu2 %1899  ;;  %v1075_v5 = vpop.permute.xlu1 %1074 }
 0x124   : > { %v7456_v32 = vpop.permute.xlu0 %1069  ;;  %v1221_v45 = vmul.f32 %v7129_v12, %v1075_v5  ;;  %v1188_v15 = vmul.f32 %v1075_v5, %v7127_v11 }
 0x125   : > { %v1220_v21 = vmul.f32 %v7129_v12, %v7456_v32 }
 0x126   : > { %v1253_v24 = vadd.f32 %v1221_v45, %v996_v10 }
 0x128   : > { %v1542_v51 = vadd.f32 %v1510_v17, %v1253_v24 }
 0x12a   : > { %1104 = vperm.xlu2 %6801, %v5457_v33   ;;  %v5521_v33 = vld [vmem:[%s6999_s24 + $0x123] ss:$2 sm:$0xff] }
 0x12b   : > { %1099 = vperm.xlu1 %6800, %v5456_v34   ;;  %921 = vperm.xlu0 %6799, %v5427_v61   ;;  %v2184_v36 = vpop.permute.xlu2 %2183  ;;  %v1327_v37 = vpop.permute.xlu1 %1326  ;;  %v5520_v34 = vld [vmem:[%s6999_s24 + $0x113] ss:$2 sm:$0xff]  ;;  %v994_v61 = vmul.f32 %v7127_v11, %v7431_v48 }
 0x12c   : > { %v7461_v31 = vpop.permute.xlu0 %1321  ;;  %v2309_v50 = vmul.f32 %v2184_v36, %v7178_v30  ;;  %v1444_v36 = vmul.f32 %v1327_v37, %v7129_v12 }
 0x12d   : > { %v1443_v3 = vmul.f32 %v7461_v31, %v7129_v12 }
 0x132   : > { %1356 = vperm.xlu2 %6801, %v5488_v39   ;;  %v1477_v39 = vadd.f32 %v1445_v16, %v1188_v15 }
 0x133   : > { %1114 = vperm.xlu1 %6800, %v5459_v40   ;;  %1109 = vperm.xlu0 %6799, %v5458_v29   ;;  %v7466_v43 = vpop.permute.xlu2 %2198  ;;  %v7468_v44 = vpop.permute.xlu1 %1610  ;;  %v1187_v40 = vmul.f32 %v7456_v32, %v7127_v11 }
 0x134   : > { %v1606_v35 = vpop.permute.xlu0 %1605  ;;  %v1732_v19 = vmul.f32 %v7468_v44, %v7154_v20 }
 0x135   : > { %v1731_v59 = vmul.f32 %v1606_v35, %v7154_v20  ;;  %v1796_v22 = vmul.f32 %v7173_v28, %v1606_v35  ;;  %v1509_v35 = vmul.f32 %v7154_v20, %v1327_v37  ;;  %v1476_v37 = vadd.f32 %v1444_v36, %v1187_v40 }
 0x137   : > { %v1763_v7 = vadd.f32 %v1731_v59, %v1474_v63  ;;  %v1828_v57 = vadd.f32 %v1796_v22, %v1539_v4  ;;  %v2312_v63 = vmul.f32 %v7466_v43, %v7178_v30  ;;  %v1251_v4 = vadd.f32 %v1219_v0, %v994_v61  ;;  %v5552_v43 = vld [vmem:[%s6999_s24 + $0x114] ss:$2 sm:$0xff] }
 0x138   : > { %v1798_v0 = vmul.f32 %v7173_v28, %v7438_v53  ;;  %v2086_v61 = vmul.f32 %v7178_v30, %v7454_v27 }
 0x13a   : > { %1371 = vperm.xlu2 %6801, %v5491_v47  }
 0x13b   : > { %1366 = vperm.xlu1 %6800, %v5490_v41   ;;  %1361 = vperm.xlu0 %6799, %v5489_v55   ;;  %v1895_v1 = vpop.permute.xlu1 %1894  ;;  %v1252_v41 = vadd.f32 %v1220_v21, %v995_v18  ;;  %v1508_v55 = vmul.f32 %v7154_v20, %v7461_v31  ;;  %v5553_v31 = vld [vmem:[%s6999_s24 + $0x124] ss:$2 sm:$0xff] }
 0x13c   : > { %v7483_v8 = vpop.permute.xlu2 %896  ;;  %v2020_v9 = vmul.f32 %v1895_v1, %v7173_v28  ;;  %v2085_v49 = vmul.f32 %v7178_v30, %v1895_v1  ;;  %v1621_v6 = vpop.permute.xlu0 %1620 }
 0x13d   : > { %v1734_v5 = vmul.f32 %v1621_v6, %v7154_v20  ;;  %v1799_v13 = vmul.f32 %v7173_v28, %v1621_v6  ;;  %v1541_v6 = vadd.f32 %v1509_v35, %v1252_v41 }
 0x13e   : > { %v2052_v62 = vadd.f32 %v2020_v9, %v1763_v7  ;;  %v2117_v56 = vadd.f32 %v2085_v49, %v1828_v57  ;;  %v1733_v7 = vmul.f32 %v7438_v53, %v7154_v20  ;;  %v1475_v9 = vadd.f32 %v1443_v3, %v1186_v14  ;;  %v5523_v57 = vld [vmem:[%s6999_s24 + $0x143] ss:$2 sm:$0xff] }
 0x13f   : > { %v1766_v47 = vadd.f32 %v1734_v5, %v1477_v39  ;;  %v1831_v45 = vadd.f32 %v1799_v13, %v1542_v51  ;;  %v1797_v49 = vmul.f32 %v7173_v28, %v7468_v44  ;;  %v2021_v44 = vmul.f32 %v7454_v27, %v7173_v28  ;;  %v5584_v3 = vld [vmem:[%s6999_s24 + $0x115] ss:$2 sm:$0xff] }
 0x140   : > { %v2341_v26 = vadd.f32 %v2309_v50, %v2052_v62  ;;  %v1540_v62 = vadd.f32 %v1508_v55, %v1251_v4  ;;  %v1764_v18 = vadd.f32 %v1732_v19, %v1475_v9  ;;  %v1765_v14 = vadd.f32 %v1733_v7, %v1476_v37  ;;  %v5587_v19 = vld [vmem:[%s6999_s24 + $0x145] ss:$2 sm:$0xff] }
 0x141   : > { %v1830_v5 = vadd.f32 %v1798_v0, %v1541_v6  ;;  %v5429_v0 = vld [vmem:[%s6999_s24 + $0x160] ss:$2 sm:$0xff] }
 0x142   : > { %v2373_v29 = vmax.f32 %v2117_v56, %v2341_v26  ;;  %1655 = vperm.xlu2 %6801, %v5522_v58   ;;  %v1829_v16 = vadd.f32 %v1797_v49, %v1540_v62  ;;  %v2053_v21 = vadd.f32 %v2021_v44, %v1764_v18  ;;  %v5430_v62 = vld [vmem:[%s6999_s24 + $0x170] ss:$2 sm:$0xff] }
 0x143   : > { %1650 = vperm.xlu1 %6800, %v5521_v33   ;;  %1645 = vperm.xlu0 %6799, %v5520_v34   ;;  %v1910_v48 = vpop.permute.xlu1 %1909 }
 0x144   : > { %v2409_v52 = vadd.f32 %v7234_v2, %v2373_v29  ;;  %v7517_v46 = vpop.permute.xlu2 %1084  ;;  %v2023_v32 = vmul.f32 %v1910_v48, %v7173_v28  ;;  %v2088_v54 = vmul.f32 %v7178_v30, %v1910_v48  ;;  %v1905_v59 = vpop.permute.xlu0 %1904  ;;  %v2118_v13 = vadd.f32 %v2086_v61, %v1829_v16  ;;  %v5555_v48 = vld [vmem:[%s6999_s24 + $0x144] ss:$2 sm:$0xff] }
 0x145   : > { %v2022_v50 = vmul.f32 %v1905_v59, %v7173_v28  ;;  %v2087_v58 = vmul.f32 %v7178_v30, %v1905_v59 }
 0x146   : > { %v2441_v22 = vmax.f32 %v2409_v52, 0.0  ;;  %v2055_v1 = vadd.f32 %v2023_v32, %v1766_v47  ;;  %v2120_v10 = vadd.f32 %v2088_v54, %v1831_v45  ;;  %v5554_v52 = vld [vmem:[%s6999_s24 + $0x134] ss:$2 sm:$0xff] }
 0x147   : > { %v2054_v33 = vadd.f32 %v2022_v50, %v1765_v14  ;;  %v2119_v40 = vadd.f32 %v2087_v58, %v1830_v5  ;;  %v5460_v5 = vld [vmem:[%s6999_s24 + $0x151] ss:$2 sm:$0xff] }
 0x148   : > { %2514 = vst.msk [vmem:[#allocation2 + $0x58] sm:$0xff] %vm2465_vm0, %v2441_v22  ;;  %v2344_v15 = vadd.f32 %v2312_v63, %v2055_v1  ;;  %v5586_v63 = vld [vmem:[%s6999_s24 + $0x135] ss:$2 sm:$0xff]  ;;  %v5585_v22 = vld [vmem:[%s6999_s24 + $0x125] ss:$2 sm:$0xff] }
 0x14a   : > { %v2376_v24 = vmax.f32 %v2120_v10, %v2344_v15  ;;  %1939 = vperm.xlu2 %6801, %v5553_v31  }
 0x14b   : > { %1934 = vperm.xlu1 %6800, %v5552_v43   ;;  %1660 = vperm.xlu0 %6799, %v5523_v57   ;;  %v2194_v56 = vpop.permute.xlu1 %2193 }
 0x14c   : > { %v2412_v26 = vadd.f32 %v7234_v2, %v2376_v24  ;;  %v7542_v53 = vpop.permute.xlu2 %1336  ;;  %v2311_v34 = vmul.f32 %v2194_v56, %v7178_v30  ;;  %v2189_v17 = vpop.permute.xlu0 %2188  ;;  %v5428_v24 = vld [vmem:[%s6999_s24 + $0x150] ss:$2 sm:$0xff] }
 0x14d   : > { %v2310_v36 = vmul.f32 %v2189_v17, %v7178_v30 }
 0x14e   : > { %v2444_v39 = vmax.f32 %v2412_v26, 0.0  ;;  %v2343_v29 = vadd.f32 %v2311_v34, %v2054_v33  ;;  %v5461_v26 = vld [vmem:[%s6999_s24 + $0x161] ss:$2 sm:$0xff]  ;;  %v5431_v33 = vld [vmem:[%s6999_s24 + $0x180] ss:$2 sm:$0xff] }
 0x14f   : > { %v2342_v35 = vadd.f32 %v2310_v36, %v2053_v21  ;;  %v5492_v21 = vld [vmem:[%s6999_s24 + $0x152] ss:$2 sm:$0xff]  ;;  %v5463_v36 = vld [vmem:[%s6999_s24 + $0x181] ss:$2 sm:$0xff] }
 0x150   : > { %2517 = vst.msk [vmem:[#allocation2 + $0x70] sm:$0xff] %vm2465_vm0, %v2444_v39  ;;  %v2375_v51 = vmax.f32 %v2119_v40, %v2343_v29  ;;  %v5462_v39 = vld [vmem:[%s6999_s24 + $0x171] ss:$2 sm:$0xff] }
 0x151   : > { %v2374_v47 = vmax.f32 %v2118_v13, %v2342_v35 }
 0x152   : > { %v2411_v27 = vadd.f32 %v7234_v2, %v2375_v51  ;;  %2223 = vperm.xlu2 %6801, %v5584_v3   ;;  %v5495_v3 = vld [vmem:[%s6999_s24 + $0x182] ss:$2 sm:$0xff] }
 0x153   : > { %v2410_v32 = vadd.f32 %v7234_v2, %v2374_v47  ;;  %1949 = vperm.xlu1 %6800, %v5555_v48   ;;  %1944 = vperm.xlu0 %6799, %v5554_v52   ;;  %v5494_v52 = vld [vmem:[%s6999_s24 + $0x172] ss:$2 sm:$0xff]  ;;  %v5493_v47 = vld [vmem:[%s6999_s24 + $0x162] ss:$2 sm:$0xff] }
 0x154   : > { %v2443_v54 = vmax.f32 %v2411_v27, 0.0  ;;  %v7554_v59 = vpop.permute.xlu2 %1351  ;;  %v1446_v27 = vmul.f32 %v7542_v53, %v7129_v12 }
 0x155   : > { %v2442_v41 = vmax.f32 %v2410_v32, 0.0  ;;  %v7556_v37 = vpop.permute.xlu1 %891  ;;  %v887_v55 = vpop.permute.xlu0 %886 }
 0x156   : > { %2516 = vst.msk [vmem:[#allocation2 + $0x68] sm:$0xff] %vm2465_vm0, %v2443_v54  ;;  %v997_v51 = vmul.f32 %v7127_v11, %v887_v55 }
 0x157   : > { %2515 = vst.msk [vmem:[#allocation2 + $0x60] sm:$0xff] %vm2465_vm0, %v2442_v41  ;;  %v1511_v41 = vmul.f32 %v7154_v20, %v7542_v53  ;;  %v998_v53 = vmul.f32 %v7127_v11, %v7556_v37  ;;  %v1223_v37 = vmul.f32 %v7129_v12, %v7517_v46 }
 0x15a   : > { %2238 = vperm.xlu2 %6801, %v5587_v19  }
 0x15b   : > { %2233 = vperm.xlu1 %6800, %v5586_v63   ;;  %2228 = vperm.xlu0 %6799, %v5585_v22  }
 0x15c   : > { %v7563_v2 = vpop.permute.xlu2 %1635 }
 0x15d   : > { %v1080_v45 = vpop.permute.xlu1 %1079  ;;  %v7565_v1 = vpop.permute.xlu0 %901  ;;  %v2581_v4 = vld [vmem:[#allocation2 + $0x68] ss:$2 sm:$0xff]  ;;  %v2613_v7 = vld [vmem:[#allocation2 + $0x69] ss:$2 sm:$0xff] }
 0x15e   : > { %v2768_v9 = vpop.f32.mrf.mxu0  ;;  %v2893_v49 = vpop.f32.mrf.mxu1  ;;  %v2579_v31 = vld [vmem:[#allocation2 + $0x58] ss:$2 sm:$0xff]  ;;  %v2547_v6 = vld [vmem:[#allocation2 + $0x57] ss:$2 sm:$0xff]  ;;  %v2549_v10 = vld [vmem:[#allocation2 + $0x67] ss:$2 sm:$0xff]  ;;  %v1222_v13 = vmul.f32 %v7129_v12, %v1080_v45  ;;  %v1189_v48 = vmul.f32 %v1080_v45, %v7127_v11 }
 0x15f   : > { %v2894_v15 = vadd.f32 %v2893_v49, %v2768_v9  ;;  %v7567_v50 = vpack.c.bf16 %v2581_v4, %v2579_v31  ;;  %v2668_v43 = vpack.c.bf16 %v2549_v10, %v2547_v6  ;;  %v2611_v57 = vld [vmem:[#allocation2 + $0x59] ss:$2 sm:$0xff]  ;;  %v1000_v6 = vmul.f32 %v7127_v11, %v7565_v1 }
 0x160   : > { %v7570_v18 = vpack.c.bf16 %v2613_v7, %v2611_v57  ;;  %v1254_v32 = vadd.f32 %v1222_v13, %v997_v51  ;;  %v1478_v19 = vadd.f32 %v1446_v27, %v1189_v48  ;;  %v5526_v10 = vld [vmem:[%s6999_s24 + $0x173] ss:$2 sm:$0xff]  ;;  %v1449_v1 = vmul.f32 %v7554_v59, %v7129_v12  ;;  %v7652_v27 = vld [vmem:[%s9074_s2] ss:$0 sm:$0xff] }
 0x161   : > { %5614 = vmatmul.msk.bf16.gmra.mxu0 %vm2465_vm0, %v7567_v50  ;;  %5638 = vmatmul.msk.bf16.gmra.mxu1 %vm2465_vm0, %v2668_v43 }
 0x162   : > { %5666 = vmatmul.msk.bf16.gmra.mxu2 %vm2465_vm0, %v7570_v18  ;;  %936 = vperm.xlu2 %6801, %v5430_v62   ;;  %v1543_v4 = vadd.f32 %v1511_v41, %v1254_v32 }
 0x163   : > { %931 = vperm.xlu1 %6800, %v5429_v0   ;;  %926 = vperm.xlu0 %6799, %v5428_v24   ;;  %v5525_v0 = vld [vmem:[%s6999_s24 + $0x163] ss:$2 sm:$0xff]  ;;  %v5524_v24 = vld [vmem:[%s6999_s24 + $0x153] ss:$2 sm:$0xff] }
 0x164   : > { %v7579_v14 = vpop.permute.xlu2 %1919 }
 0x165   : > { %v1095_v58 = vpop.permute.xlu1 %1094  ;;  %v3031_v44 = vpop.f32.mrf.mxu2 }
 0x166   : > { %v7581_v16 = vadd.f32 %v3031_v44, %v2894_v15  ;;  %v7583_v56 = vpop.permute.xlu0 %1089  ;;  %v1225_v22 = vmul.f32 %v7129_v12, %v1095_v58  ;;  %v1192_v15 = vmul.f32 %v1095_v58, %v7127_v11  ;;  %v999_v44 = vmul.f32 %v7127_v11, %v7483_v8 }
 0x167   : > { %v1224_v8 = vmul.f32 %v7129_v12, %v7583_v56  ;;  %v1191_v51 = vmul.f32 %v7583_v56, %v7127_v11 }
 0x16a   : > { %1124 = vperm.xlu2 %6801, %v5461_v26   ;;  %v1190_v26 = vmul.f32 %v7517_v46, %v7127_v11  ;;  %v1255_v46 = vadd.f32 %v1223_v37, %v998_v53  ;;  %v5556_v53 = vld [vmem:[%s6999_s24 + $0x154] ss:$2 sm:$0xff] }
 0x16b   : > { %1119 = vperm.xlu1 %6800, %v5460_v5   ;;  %941 = vperm.xlu0 %6799, %v5431_v33   ;;  %v1257_v5 = vadd.f32 %v1225_v22, %v1000_v6  ;;  %v5527_v6 = vld [vmem:[%s6999_s24 + $0x183] ss:$2 sm:$0xff] }
 0x16c   : > { %v2204_v34 = vpop.permute.xlu2 %2203 }
 0x16d   : > { %v7588_v17 = vpop.permute.xlu1 %1346  ;;  %v2313_v43 = vmul.f32 %v2204_v34, %v7178_v30 }
 0x16e   : > { %v7590_v61 = vpop.permute.xlu0 %1341 }
 0x16f   : > { %v1447_v48 = vmul.f32 %v7590_v61, %v7129_v12  ;;  %v1512_v22 = vmul.f32 %v7154_v20, %v7590_v61 }
 0x172   : > { %1376 = vperm.xlu2 %6801, %v5492_v21   ;;  %v1514_v21 = vmul.f32 %v7154_v20, %v7554_v59  ;;  %v1513_v59 = vmul.f32 %v7154_v20, %v7588_v17 }
 0x173   : > { %1134 = vperm.xlu1 %6800, %v5463_v36   ;;  %1129 = vperm.xlu0 %6799, %v5462_v39   ;;  %v1448_v36 = vmul.f32 %v7588_v17, %v7129_v12  ;;  %v1481_v39 = vadd.f32 %v1449_v1, %v1192_v15  ;;  %v2025_v1 = vmul.f32 %v7579_v14, %v7173_v28 }
 0x174   : > { %v7595_v40 = vpop.permute.xlu2 %2218 }
 0x175   : > { %v7597_v29 = vpop.permute.xlu1 %1630 }
 0x176   : > { %v1626_v35 = vpop.permute.xlu0 %1625  ;;  %v1801_v61 = vmul.f32 %v7173_v28, %v7597_v29 }
 0x177   : > { %v1735_v54 = vmul.f32 %v1626_v35, %v7154_v20  ;;  %v1800_v55 = vmul.f32 %v7173_v28, %v1626_v35 }
 0x179   : > { %v1767_v7 = vadd.f32 %v1735_v54, %v1478_v19  ;;  %v1832_v57 = vadd.f32 %v1800_v55, %v1543_v4  ;;  %v1256_v19 = vadd.f32 %v1224_v8, %v999_v44  ;;  %v1480_v55 = vadd.f32 %v1448_v36, %v1191_v51  ;;  %v5557_v4 = vld [vmem:[%s6999_s24 + $0x164] ss:$2 sm:$0xff] }
 0x17a   : > { %1391 = vperm.xlu2 %6801, %v5495_v3   ;;  %v1802_v44 = vmul.f32 %v7173_v28, %v7563_v2 }
 0x17b   : > { %1386 = vperm.xlu1 %6800, %v5494_v52   ;;  %1381 = vperm.xlu0 %6799, %v5493_v47   ;;  %v1546_v52 = vadd.f32 %v1514_v21, %v1257_v5  ;;  %v1545_v15 = vadd.f32 %v1513_v59, %v1256_v19 }
 0x17c   : > { %v7611_v63 = vpop.permute.xlu2 %916 }
 0x17d   : > { %v1915_v45 = vpop.permute.xlu1 %1914  ;;  %v1834_v21 = vadd.f32 %v1802_v44, %v1545_v15 }
 0x17e   : > { %v2024_v9 = vmul.f32 %v1915_v45, %v7173_v28  ;;  %v2089_v49 = vmul.f32 %v7178_v30, %v1915_v45  ;;  %v1641_v31 = vpop.permute.xlu0 %1640  ;;  %v1736_v45 = vmul.f32 %v7597_v29, %v7154_v20 }
 0x17f   : > { %v1738_v34 = vmul.f32 %v1641_v31, %v7154_v20  ;;  %v1803_v35 = vmul.f32 %v7173_v28, %v1641_v31 }
 0x180   : > { %v2056_v62 = vadd.f32 %v2024_v9, %v1767_v7  ;;  %v2121_v58 = vadd.f32 %v2089_v49, %v1832_v57  ;;  %v2316_v7 = vmul.f32 %v7595_v40, %v7178_v30  ;;  %v1544_v40 = vadd.f32 %v1512_v22, %v1255_v46  ;;  %v7694_v22 = vpop.f32.mrf.mxu0 }
 0x181   : > { %v1770_v54 = vadd.f32 %v1738_v34, %v1481_v39  ;;  %v1835_v49 = vadd.f32 %v1803_v35, %v1546_v52  ;;  %v2090_v46 = vmul.f32 %v7178_v30, %v7579_v14  ;;  %v5588_v35 = vld [vmem:[%s6999_s24 + $0x155] ss:$2 sm:$0xff]  ;;  %v5559_v52 = vld [vmem:[%s6999_s24 + $0x184] ss:$2 sm:$0xff] }
 0x182   : > { %v2345_v33 = vadd.f32 %v2313_v43, %v2056_v62  ;;  %1675 = vperm.xlu2 %6801, %v5526_v10   ;;  %v1737_v10 = vmul.f32 %v7563_v2, %v7154_v20  ;;  %v1479_v43 = vadd.f32 %v1447_v48, %v1190_v26 }
 0x183   : > { %1670 = vperm.xlu1 %6800, %v5525_v0   ;;  %1665 = vperm.xlu0 %6799, %v5524_v24  }
 0x184   : > { %v2377_v13 = vmax.f32 %v2121_v58, %v2345_v33  ;;  %v7641_v3 = vpop.permute.xlu2 %1104  ;;  %v1768_v24 = vadd.f32 %v1736_v45, %v1479_v43  ;;  %v1769_v26 = vadd.f32 %v1737_v10, %v1480_v55  ;;  %v1833_v58 = vadd.f32 %v1801_v61, %v1544_v40  ;;  %v7705_v10 = vpop.f32.mrf.mxu2  ;;  %v5434_v40 = vld [vmem:[%s6999_s24 + $0x1b8] ss:$2 sm:$0xff] }
 0x185   : > { %v1930_v47 = vpop.permute.xlu1 %1929 }
 0x186   : > { %v2413_v32 = vadd.f32 %v7652_v27, %v2377_v13  ;;  %v2027_v56 = vmul.f32 %v1930_v47, %v7173_v28  ;;  %v2092_v41 = vmul.f32 %v7178_v30, %v1930_v47  ;;  %v1925_v17 = vpop.permute.xlu0 %1924  ;;  %v2057_v39 = vadd.f32 %v2025_v1, %v1768_v24  ;;  %v5558_v47 = vld [vmem:[%s6999_s24 + $0x174] ss:$2 sm:$0xff] }
 0x187   : > { %v2026_v0 = vmul.f32 %v1925_v17, %v7173_v28  ;;  %v2091_v5 = vmul.f32 %v7178_v30, %v1925_v17 }
 0x188   : > { %v2445_v9 = vmax.f32 %v2413_v32, 0.0  ;;  %v2059_v31 = vadd.f32 %v2027_v56, %v1770_v54  ;;  %v2124_v57 = vadd.f32 %v2092_v41, %v1835_v49  ;;  %v2122_v32 = vadd.f32 %v2090_v46, %v1833_v58  ;;  %v5591_v49 = vld [vmem:[%s6999_s24 + $0x185] ss:$2 sm:$0xff] }
 0x189   : > { %v2058_v8 = vadd.f32 %v2026_v0, %v1769_v26  ;;  %v2123_v59 = vadd.f32 %v2091_v5, %v1834_v21  ;;  %v5432_v21 = vld [vmem:[%s6999_s24 + $0x198] ss:$2 sm:$0xff] }
 0x18a   : > { %2518 = vst.msk [vmem:[#allocation2 + $0x78] sm:$0xff] %vm2465_vm0, %v2445_v9  ;;  %v2348_v62 = vadd.f32 %v2316_v7, %v2059_v31  ;;  %1959 = vperm.xlu2 %6801, %v5557_v4   ;;  %v7696_v7 = vpop.f32.mrf.mxu1  ;;  %v5590_v31 = vld [vmem:[%s6999_s24 + $0x175] ss:$2 sm:$0xff] }
 0x18b   : > { %1954 = vperm.xlu1 %6800, %v5556_v53   ;;  %1680 = vperm.xlu0 %6799, %v5527_v6   ;;  %v5589_v53 = vld [vmem:[%s6999_s24 + $0x165] ss:$2 sm:$0xff] }
 0x18c   : > { %v2380_v37 = vmax.f32 %v2124_v57, %v2348_v62  ;;  %v7675_v29 = vpop.permute.xlu2 %1356 }
 0x18d   : > { %v2214_v33 = vpop.permute.xlu1 %2213 }
 0x18e   : > { %v2416_v34 = vadd.f32 %v7652_v27, %v2380_v37  ;;  %v2315_v2 = vmul.f32 %v2214_v33, %v7178_v30  ;;  %v2209_v36 = vpop.permute.xlu0 %2208  ;;  %v5433_v33 = vld [vmem:[%s6999_s24 + $0x1a8] ss:$2 sm:$0xff] }
 0x18f   : > { %v2314_v13 = vmul.f32 %v2209_v36, %v7178_v30 }
 0x190   : > { %v2448_v51 = vmax.f32 %v2416_v34, 0.0  ;;  %v2347_v48 = vadd.f32 %v2315_v2, %v2058_v8 }
 0x191   : > { %v2346_v54 = vadd.f32 %v2314_v13, %v2057_v39  ;;  %v5465_v13 = vld [vmem:[%s6999_s24 + $0x1a9] ss:$2 sm:$0xff] }
 0x192   : > { %2521 = vst.msk [vmem:[#allocation2 + $0x90] sm:$0xff] %vm2465_vm0, %v2448_v51  ;;  %v2379_v56 = vmax.f32 %v2123_v59, %v2347_v48  ;;  %2243 = vperm.xlu2 %6801, %v5588_v35   ;;  %v5464_v35 = vld [vmem:[%s6999_s24 + $0x199] ss:$2 sm:$0xff]  ;;  %v5435_v51 = vld [vmem:[%s6999_s24 + $0x1c8] ss:$2 sm:$0xff] }
 0x193   : > { %v2378_v41 = vmax.f32 %v2122_v32, %v2346_v54  ;;  %1969 = vperm.xlu1 %6800, %v5559_v52   ;;  %1964 = vperm.xlu0 %6799, %v5558_v47   ;;  %v5496_v47 = vld [vmem:[%s6999_s24 + $0x19a] ss:$2 sm:$0xff]  ;;  %v5467_v32 = vld [vmem:[%s6999_s24 + $0x1c9] ss:$2 sm:$0xff]  ;;  %v5466_v54 = vld [vmem:[%s6999_s24 + $0x1b9] ss:$2 sm:$0xff] }
 0x194   : > { %v2415_v14 = vadd.f32 %v7652_v27, %v2379_v56  ;;  %v7689_v17 = vpop.permute.xlu2 %1371 }
 0x195   : > { %v2414_v19 = vadd.f32 %v7652_v27, %v2378_v41  ;;  %v7692_v55 = vpop.permute.xlu1 %911 }
 0x196   : > { %v2447_v45 = vmax.f32 %v2415_v14, 0.0  ;;  %v907_v4 = vpop.permute.xlu0 %906 }
 0x197   : > { %v2446_v9 = vmax.f32 %v2414_v19, 0.0 }
 0x198   : > { %2520 = vst.msk [vmem:[#allocation2 + $0x88] sm:$0xff] %vm2465_vm0, %v2447_v45  ;;  %v5499_v45 = vld [vmem:[%s6999_s24 + $0x1ca] ss:$2 sm:$0xff] }
 0x199   : > { %2519 = vst.msk [vmem:[#allocation2 + $0x80] sm:$0xff] %vm2465_vm0, %v2446_v9  ;;  %v1001_v9 = vmul.f32 %v7127_v11, %v907_v4 }
 0x19a   : > { %2258 = vperm.xlu2 %6801, %v5591_v49  }
 0x19b   : > { %2253 = vperm.xlu1 %6800, %v5590_v31   ;;  %2248 = vperm.xlu0 %6799, %v5589_v53   ;;  %v5498_v31 = vld [vmem:[%s6999_s24 + $0x1ba] ss:$2 sm:$0xff]  ;;  %v1450_v53 = vmul.f32 %v7675_v29, %v7129_v12 }
 0x19c   : > { %v7703_v6 = vpop.permute.xlu2 %1655 }
 0x19d   : > { %v1100_v15 = vpop.permute.xlu1 %1099 }
 0x19e   : > { %v7707_v43 = vpop.permute.xlu0 %921  ;;  %v2773_v61 = vpop.f32.mrf.mxu0  ;;  %v1226_v14 = vmul.f32 %v7129_v12, %v1100_v15  ;;  %v1193_v49 = vmul.f32 %v1100_v15, %v7127_v11 }
 0x19f   : > { %v2898_v57 = vpop.f32.mrf.mxu1  ;;  %v2585_v62 = vld [vmem:[#allocation2 + $0x88] ss:$2 sm:$0xff]  ;;  %v2617_v0 = vld [vmem:[#allocation2 + $0x89] ss:$2 sm:$0xff] }
 0x1a0   : > { %v2899_v24 = vadd.f32 %v2898_v57, %v2773_v61  ;;  %v2583_v44 = vld [vmem:[#allocation2 + $0x78] ss:$2 sm:$0xff]  ;;  %v2551_v37 = vld [vmem:[#allocation2 + $0x77] ss:$2 sm:$0xff]  ;;  %v2553_v26 = vld [vmem:[#allocation2 + $0x87] ss:$2 sm:$0xff]  ;;  %v1258_v61 = vadd.f32 %v1226_v14, %v1001_v9 }
 0x1a1   : > { %v7710_v5 = vpack.c.bf16 %v2585_v62, %v2583_v44  ;;  %v2669_v1 = vpack.c.bf16 %v2553_v26, %v2551_v37  ;;  %v2615_v58 = vld [vmem:[#allocation2 + $0x79] ss:$2 sm:$0xff]  ;;  %v5497_v62 = vld [vmem:[%s6999_s24 + $0x1aa] ss:$2 sm:$0xff] }
 0x1a2   : > { %v7713_v34 = vpack.c.bf16 %v2617_v0, %v2615_v58  ;;  %956 = vperm.xlu2 %6801, %v5434_v40   ;;  %v1515_v0 = vmul.f32 %v7154_v20, %v7675_v29  ;;  %v1482_v40 = vadd.f32 %v1450_v53, %v1193_v49  ;;  %v1002_v29 = vmul.f32 %v7127_v11, %v7692_v55 }
 0x1a3   : > { %5615 = vmatmul.msk.bf16.gmra.mxu0 %vm2465_vm0, %v7710_v5  ;;  %5639 = vmatmul.msk.bf16.gmra.mxu1 %vm2465_vm0, %v2669_v1  ;;  %v1453_v55 = vmul.f32 %v7689_v17, %v7129_v12 }
 0x1a4   : > { %5667 = vmatmul.msk.bf16.gmra.mxu2 %vm2465_vm0, %v7713_v34  ;;  %951 = vperm.xlu1 %6800, %v5433_v33   ;;  %v7721_v8 = vpop.permute.xlu2 %1939  ;;  %v1547_v37 = vadd.f32 %v1515_v0, %v1258_v61 }
 0x1a5   : > { %946 = vperm.xlu0 %6799, %v5432_v21   ;;  %v1115_v2 = vpop.permute.xlu1 %1114  ;;  %v3036_v36 = vpop.f32.mrf.mxu2  ;;  %v1004_v21 = vmul.f32 %v7127_v11, %v7707_v43 }
 0x1a6   : > { %v7723_v46 = vadd.f32 %v3036_v36, %v2899_v24  ;;  %v7725_v39 = vpop.permute.xlu0 %1109  ;;  %v1229_v15 = vmul.f32 %v7129_v12, %v1115_v2  ;;  %v5530_v36 = vld [vmem:[%s6999_s24 + $0x1bb] ss:$2 sm:$0xff] }
 0x1a7   : > { %v1228_v49 = vmul.f32 %v7129_v12, %v7725_v39 }
 0x1a8   : > { %v1261_v14 = vadd.f32 %v1229_v15, %v1004_v21  ;;  %v5561_v21 = vld [vmem:[%s6999_s24 + $0x1ac] ss:$2 sm:$0xff] }
 0x1aa   : > { %1144 = vperm.xlu2 %6801, %v5465_v13   ;;  %v1196_v13 = vmul.f32 %v1115_v2, %v7127_v11  ;;  %v5528_v2 = vld [vmem:[%s6999_s24 + $0x19b] ss:$2 sm:$0xff] }
 0x1ac   : > { %1139 = vperm.xlu1 %6800, %v5464_v35   ;;  %v2224_v59 = vpop.permute.xlu2 %2223  ;;  %v1485_v61 = vadd.f32 %v1453_v55, %v1196_v13 }
 0x1ad   : > { %961 = vperm.xlu0 %6799, %v5435_v51   ;;  %v1367_v48 = vpop.permute.xlu1 %1366  ;;  %v2317_v35 = vmul.f32 %v2224_v59, %v7178_v30  ;;  %v1194_v59 = vmul.f32 %v7641_v3, %v7127_v11 }
 0x1ae   : > { %v7730_v52 = vpop.permute.xlu0 %1361 }
 0x1b2   : > { %1396 = vperm.xlu2 %6801, %v5496_v47  }
 0x1b4   : > { %1154 = vperm.xlu1 %6800, %v5467_v32   ;;  %v7735_v56 = vpop.permute.xlu2 %2238  ;;  %v1003_v32 = vmul.f32 %v7127_v11, %v7611_v63  ;;  %v1518_v63 = vmul.f32 %v7154_v20, %v7689_v17  ;;  %v1451_v17 = vmul.f32 %v7730_v52, %v7129_v12 }
 0x1b5   : > { %1149 = vperm.xlu0 %6799, %v5466_v54   ;;  %v7737_v41 = vpop.permute.xlu1 %1650  ;;  %v1227_v54 = vmul.f32 %v7129_v12, %v7641_v3  ;;  %v1195_v3 = vmul.f32 %v7725_v39, %v7127_v11  ;;  %v1516_v39 = vmul.f32 %v7154_v20, %v7730_v52  ;;  %v5560_v52 = vld [vmem:[%s6999_s24 + $0x19c] ss:$2 sm:$0xff] }
 0x1b6   : > { %v1646_v19 = vpop.permute.xlu0 %1645 }
 0x1b7   : > { %v1739_v57 = vmul.f32 %v1646_v19, %v7154_v20  ;;  %v1804_v24 = vmul.f32 %v7173_v28, %v1646_v19  ;;  %v5529_v19 = vld [vmem:[%s6999_s24 + $0x1ab] ss:$2 sm:$0xff]  ;;  %v1259_v53 = vadd.f32 %v1227_v54, %v1002_v29 }
 0x1b9   : > { %v1771_v26 = vadd.f32 %v1739_v57, %v1482_v40  ;;  %v1836_v51 = vadd.f32 %v1804_v24, %v1547_v37  ;;  %v1517_v40 = vmul.f32 %v7154_v20, %v1367_v48  ;;  %v1550_v24 = vadd.f32 %v1518_v63, %v1261_v14 }
 0x1ba   : > { %1411 = vperm.xlu2 %6801, %v5499_v45   ;;  %v1805_v14 = vmul.f32 %v7173_v28, %v7737_v41 }
 0x1bc   : > { %1406 = vperm.xlu1 %6800, %v5498_v31   ;;  %v7751_v4 = vpop.permute.xlu2 %936  ;;  %v1452_v31 = vmul.f32 %v1367_v48, %v7129_v12  ;;  %v1740_v48 = vmul.f32 %v7737_v41, %v7154_v20 }
 0x1bd   : > { %1401 = vperm.xlu0 %6799, %v5497_v62   ;;  %v1935_v44 = vpop.permute.xlu1 %1934 }
 0x1be   : > { %v2028_v1 = vmul.f32 %v1935_v44, %v7173_v28  ;;  %v2093_v58 = vmul.f32 %v7178_v30, %v1935_v44  ;;  %v1661_v33 = vpop.permute.xlu0 %1660  ;;  %v1484_v29 = vadd.f32 %v1452_v31, %v1195_v3  ;;  %v2029_v31 = vmul.f32 %v7721_v8, %v7173_v28 }
 0x1bf   : > { %v1742_v9 = vmul.f32 %v1661_v33, %v7154_v20  ;;  %v1807_v62 = vmul.f32 %v7173_v28, %v1661_v33  ;;  %v1260_v33 = vadd.f32 %v1228_v49, %v1003_v32  ;;  %v1483_v32 = vadd.f32 %v1451_v17, %v1194_v59 }
 0x1c0   : > { %v2060_v47 = vadd.f32 %v2028_v1, %v1771_v26  ;;  %v2125_v45 = vadd.f32 %v2093_v58, %v1836_v51  ;;  %v2094_v17 = vmul.f32 %v7178_v30, %v7721_v8 }
 0x1c1   : > { %v1774_v37 = vadd.f32 %v1742_v9, %v1485_v61  ;;  %v1549_v54 = vadd.f32 %v1517_v40, %v1260_v33  ;;  %v1772_v9 = vadd.f32 %v1740_v48, %v1483_v32  ;;  %v5562_v48 = vld [vmem:[%s6999_s24 + $0x1bc] ss:$2 sm:$0xff]  ;;  %v7829_v32 = vpop.f32.mrf.mxu1 }
 0x1c2   : > { %v2349_v43 = vadd.f32 %v2317_v35, %v2060_v47  ;;  %1695 = vperm.xlu2 %6801, %v5530_v36   ;;  %v2320_v36 = vmul.f32 %v7735_v56, %v7178_v30  ;;  %v1839_v35 = vadd.f32 %v1807_v62, %v1550_v24  ;;  %v1741_v47 = vmul.f32 %v7703_v6, %v7154_v20  ;;  %v5531_v56 = vld [vmem:[%s6999_s24 + $0x1cb] ss:$2 sm:$0xff] }
 0x1c3   : > { %v2061_v24 = vadd.f32 %v2029_v31, %v1772_v9  ;;  %v5438_v31 = vld [vmem:[%s6999_s24 + $0x1f8] ss:$2 sm:$0xff] }
 0x1c4   : > { %v2381_v57 = vmax.f32 %v2125_v45, %v2349_v43  ;;  %1690 = vperm.xlu1 %6800, %v5529_v19   ;;  %v7780_v0 = vpop.permute.xlu2 %1124  ;;  %v1548_v43 = vadd.f32 %v1516_v39, %v1259_v53  ;;  %v1773_v49 = vadd.f32 %v1741_v47, %v1484_v29  ;;  %v5563_v29 = vld [vmem:[%s6999_s24 + $0x1cc] ss:$2 sm:$0xff] }
 0x1c5   : > { %1685 = vperm.xlu0 %6799, %v5528_v2   ;;  %v1950_v15 = vpop.permute.xlu1 %1949  ;;  %v1806_v2 = vmul.f32 %v7173_v28, %v7703_v6 }
 0x1c6   : > { %v2417_v44 = vadd.f32 %v7652_v27, %v2381_v57  ;;  %v2031_v26 = vmul.f32 %v1950_v15, %v7173_v28  ;;  %v2096_v1 = vmul.f32 %v7178_v30, %v1950_v15  ;;  %v1945_v58 = vpop.permute.xlu0 %1944  ;;  %v1837_v61 = vadd.f32 %v1805_v14, %v1548_v43 }
 0x1c7   : > { %v2030_v45 = vmul.f32 %v1945_v58, %v7173_v28  ;;  %v2095_v59 = vmul.f32 %v7178_v30, %v1945_v58  ;;  %v1838_v62 = vadd.f32 %v1806_v2, %v1549_v54 }
 0x1c8   : > { %v2449_v13 = vmax.f32 %v2417_v44, 0.0  ;;  %v2063_v51 = vadd.f32 %v2031_v26, %v1774_v37  ;;  %v2128_v19 = vadd.f32 %v2096_v1, %v1839_v35  ;;  %v5592_v44 = vld [vmem:[%s6999_s24 + $0x19d] ss:$2 sm:$0xff]  ;;  %v2126_v58 = vadd.f32 %v2094_v17, %v1837_v61  ;;  %v5437_v17 = vld [vmem:[%s6999_s24 + $0x1e8] ss:$2 sm:$0xff] }
 0x1c9   : > { %v2062_v3 = vadd.f32 %v2030_v45, %v1773_v49  ;;  %v2127_v26 = vadd.f32 %v2095_v59, %v1838_v62 }
 0x1ca   : > { %2522 = vst.msk [vmem:[#allocation2 + $0xa8] sm:$0xff] %vm2465_vm0, %v2449_v13  ;;  %v2352_v55 = vadd.f32 %v2320_v36, %v2063_v51  ;;  %1979 = vperm.xlu2 %6801, %v5561_v21   ;;  %v7827_v51 = vpop.f32.mrf.mxu0 }
 0x1cc   : > { %v2384_v63 = vmax.f32 %v2128_v19, %v2352_v55  ;;  %1974 = vperm.xlu1 %6800, %v5560_v52   ;;  %v7808_v41 = vpop.permute.xlu2 %1376  ;;  %v5595_v52 = vld [vmem:[%s6999_s24 + $0x1cd] ss:$2 sm:$0xff]  ;;  %v5594_v19 = vld [vmem:[%s6999_s24 + $0x1bd] ss:$2 sm:$0xff] }
 0x1cd   : > { %1700 = vperm.xlu0 %6799, %v5531_v56   ;;  %v2234_v57 = vpop.permute.xlu1 %2233  ;;  %v5593_v55 = vld [vmem:[%s6999_s24 + $0x1ad] ss:$2 sm:$0xff]  ;;  %v7838_v56 = vpop.f32.mrf.mxu2 }
 0x1ce   : > { %v2420_v53 = vadd.f32 %v7652_v27, %v2384_v63  ;;  %v2319_v6 = vmul.f32 %v2234_v57, %v7178_v30  ;;  %v2229_v40 = vpop.permute.xlu0 %2228 }
 0x1cf   : > { %v2318_v15 = vmul.f32 %v2229_v40, %v7178_v30 }
 0x1d0   : > { %v2452_v37 = vmax.f32 %v2420_v53, 0.0  ;;  %v2351_v1 = vadd.f32 %v2319_v6, %v2062_v3 }
 0x1d1   : > { %v2350_v33 = vadd.f32 %v2318_v15, %v2061_v24  ;;  %v5436_v15 = vld [vmem:[%s6999_s24 + $0x1d8] ss:$2 sm:$0xff] }
 0x1d2   : > { %2525 = vst.msk [vmem:[#allocation2 + $0xc0] sm:$0xff] %vm2465_vm0, %v2452_v37  ;;  %v2383_v39 = vmax.f32 %v2127_v26, %v2351_v1  ;;  %2263 = vperm.xlu2 %6801, %v5592_v44  }
 0x1d3   : > { %v2382_v21 = vmax.f32 %v2126_v58, %v2350_v33  ;;  %v5469_v33 = vld [vmem:[%s6999_s24 + $0x1e9] ss:$2 sm:$0xff] }
 0x1d4   : > { %v2419_v8 = vadd.f32 %v7652_v27, %v2383_v39  ;;  %1989 = vperm.xlu1 %6800, %v5563_v29   ;;  %v7822_v36 = vpop.permute.xlu2 %1391  ;;  %v5468_v29 = vld [vmem:[%s6999_s24 + $0x1d9] ss:$2 sm:$0xff]  ;;  %v5439_v39 = vld [vmem:[%s6999_s24 + $0x208] ss:$2 sm:$0xff] }
 0x1d5   : > { %v2418_v13 = vadd.f32 %v7652_v27, %v2382_v21  ;;  %1984 = vperm.xlu0 %6799, %v5562_v48   ;;  %v7825_v35 = vpop.permute.xlu1 %931 }
 0x1d6   : > { %v2451_v47 = vmax.f32 %v2419_v8, 0.0  ;;  %v927_v54 = vpop.permute.xlu0 %926 }
 0x1d7   : > { %v2450_v14 = vmax.f32 %v2418_v13, 0.0  ;;  %v5500_v13 = vld [vmem:[%s6999_s24 + $0x1da] ss:$2 sm:$0xff] }
 0x1d8   : > { %2524 = vst.msk [vmem:[#allocation2 + $0xb8] sm:$0xff] %vm2465_vm0, %v2451_v47  ;;  %v5471_v47 = vld [vmem:[%s6999_s24 + $0x209] ss:$2 sm:$0xff] }
 0x1d9   : > { %2523 = vst.msk [vmem:[#allocation2 + $0xb0] sm:$0xff] %vm2465_vm0, %v2450_v14  ;;  %v5470_v14 = vld [vmem:[%s6999_s24 + $0x1f9] ss:$2 sm:$0xff] }
 0x1da   : > { %2278 = vperm.xlu2 %6801, %v5595_v52  }
 0x1dc   : > { %2273 = vperm.xlu1 %6800, %v5594_v19   ;;  %v7836_v45 = vpop.permute.xlu2 %1675 }
 0x1dd   : > { %2268 = vperm.xlu0 %6799, %v5593_v55   ;;  %v1120_v43 = vpop.permute.xlu1 %1119 }
 0x1de   : > { %v7840_v9 = vpop.permute.xlu0 %941  ;;  %v2778_v2 = vpop.f32.mrf.mxu0  ;;  %v1230_v55 = vmul.f32 %v7129_v12, %v1120_v43 }
 0x1df   : > { %v2903_v63 = vpop.f32.mrf.mxu1  ;;  %v2589_v49 = vld [vmem:[#allocation2 + $0xb8] ss:$2 sm:$0xff]  ;;  %v2621_v59 = vld [vmem:[#allocation2 + $0xb9] ss:$2 sm:$0xff] }
 0x1e0   : > { %v2904_v61 = vadd.f32 %v2903_v63, %v2778_v2  ;;  %v2587_v57 = vld [vmem:[#allocation2 + $0xa8] ss:$2 sm:$0xff]  ;;  %v2555_v53 = vld [vmem:[#allocation2 + $0xa7] ss:$2 sm:$0xff]  ;;  %v2557_v62 = vld [vmem:[#allocation2 + $0xb7] ss:$2 sm:$0xff] }
 0x1e1   : > { %v7843_v3 = vpack.c.bf16 %v2589_v49, %v2587_v57  ;;  %v2670_v6 = vpack.c.bf16 %v2557_v62, %v2555_v53  ;;  %v2619_v40 = vld [vmem:[#allocation2 + $0xa9] ss:$2 sm:$0xff]  ;;  %v5503_v63 = vld [vmem:[%s6999_s24 + $0x20a] ss:$2 sm:$0xff]  ;;  %v1005_v49 = vmul.f32 %v7127_v11, %v927_v54 }
 0x1e2   : > { %v7846_v24 = vpack.c.bf16 %v2621_v59, %v2619_v40  ;;  %976 = vperm.xlu2 %6801, %v5438_v31   ;;  %v1197_v59 = vmul.f32 %v1120_v43, %v7127_v11  ;;  %v5502_v31 = vld [vmem:[%s6999_s24 + $0x1fa] ss:$2 sm:$0xff]  ;;  %v5501_v62 = vld [vmem:[%s6999_s24 + $0x1ea] ss:$2 sm:$0xff] }
 0x1e3   : > { %5616 = vmatmul.msk.bf16.gmra.mxu0 %vm2465_vm0, %v7843_v3  ;;  %5640 = vmatmul.msk.bf16.gmra.mxu1 %vm2465_vm0, %v2670_v6  ;;  %v1262_v57 = vadd.f32 %v1230_v55, %v1005_v49  ;;  %v1519_v6 = vmul.f32 %v7154_v20, %v7808_v41 }
 0x1e4   : > { %5668 = vmatmul.msk.bf16.gmra.mxu2 %vm2465_vm0, %v7846_v24  ;;  %971 = vperm.xlu1 %6800, %v5437_v17   ;;  %v7854_v44 = vpop.permute.xlu2 %1959 }
 0x1e5   : > { %966 = vperm.xlu0 %6799, %v5436_v15   ;;  %v1135_v37 = vpop.permute.xlu1 %1134  ;;  %v3041_v26 = vpop.f32.mrf.mxu2 }
 0x1e6   : > { %v7856_v1 = vadd.f32 %v3041_v26, %v2904_v61  ;;  %v7858_v58 = vpop.permute.xlu0 %1129  ;;  %v1454_v61 = vmul.f32 %v7808_v41, %v7129_v12  ;;  %v1233_v43 = vmul.f32 %v7129_v12, %v1135_v37  ;;  %v1551_v26 = vadd.f32 %v1519_v6, %v1262_v57  ;;  %v5533_v57 = vld [vmem:[%s6999_s24 + $0x1eb] ss:$2 sm:$0xff] }
 0x1e7   : > { %v1006_v41 = vmul.f32 %v7127_v11, %v7825_v35  ;;  %v1200_v55 = vmul.f32 %v1135_v37, %v7127_v11  ;;  %v1457_v35 = vmul.f32 %v7822_v36, %v7129_v12  ;;  %v5532_v37 = vld [vmem:[%s6999_s24 + $0x1db] ss:$2 sm:$0xff]  ;;  %v1232_v6 = vmul.f32 %v7129_v12, %v7858_v58 }
 0x1e8   : > { %v1486_v40 = vadd.f32 %v1454_v61, %v1197_v59  ;;  %v1007_v59 = vmul.f32 %v7127_v11, %v7751_v4  ;;  %v1522_v4 = vmul.f32 %v7154_v20, %v7822_v36 }
 0x1ea   : > { %1164 = vperm.xlu2 %6801, %v5469_v33  }
 0x1ec   : > { %1159 = vperm.xlu1 %6800, %v5468_v29   ;;  %v2244_v48 = vpop.permute.xlu2 %2243 }
 0x1ed   : > { %981 = vperm.xlu0 %6799, %v5439_v39   ;;  %v1387_v21 = vpop.permute.xlu1 %1386 }
 0x1ee   : > { %v7863_v8 = vpop.permute.xlu0 %1381 }
 0x1ef   : > { %v1455_v36 = vmul.f32 %v7863_v8, %v7129_v12 }
 0x1f2   : > { %1416 = vperm.xlu2 %6801, %v5500_v13  }
 0x1f4   : > { %1174 = vperm.xlu1 %6800, %v5471_v47   ;;  %v7868_v52 = vpop.permute.xlu2 %2258  ;;  %v1008_v47 = vmul.f32 %v7127_v11, %v7840_v9 }
 0x1f5   : > { %1169 = vperm.xlu0 %6799, %v5470_v14   ;;  %v7870_v19 = vpop.permute.xlu1 %1670  ;;  %v5534_v14 = vld [vmem:[%s6999_s24 + $0x1fb] ss:$2 sm:$0xff] }
 0x1f6   : > { %v1666_v2 = vpop.permute.xlu0 %1665  ;;  %v1265_v61 = vadd.f32 %v1233_v43, %v1008_v47  ;;  %v1489_v43 = vadd.f32 %v1457_v35, %v1200_v55 }
 0x1f7   : > { %v1743_v53 = vmul.f32 %v1666_v2, %v7154_v20  ;;  %v1808_v17 = vmul.f32 %v7173_v28, %v1666_v2  ;;  %v2321_v2 = vmul.f32 %v2244_v48, %v7178_v30  ;;  %v1198_v48 = vmul.f32 %v7780_v0, %v7127_v11 }
 0x1f9   : > { %v1775_v33 = vadd.f32 %v1743_v53, %v1486_v40  ;;  %v1456_v40 = vmul.f32 %v1387_v21, %v7129_v12 }
 0x1fa   : > { %1431 = vperm.xlu2 %6801, %v5503_v63   ;;  %v1840_v63 = vadd.f32 %v1808_v17, %v1551_v26 }
 0x1fc   : > { %1426 = vperm.xlu1 %6800, %v5502_v31   ;;  %v7884_v54 = vpop.permute.xlu2 %956  ;;  %v1231_v31 = vmul.f32 %v7129_v12, %v7780_v0  ;;  %v1199_v0 = vmul.f32 %v7858_v58, %v7127_v11  ;;  %v1520_v58 = vmul.f32 %v7154_v20, %v7863_v8  ;;  %v5564_v8 = vld [vmem:[%s6999_s24 + $0x1dc] ss:$2 sm:$0xff] }
 0x1fd   : > { %1421 = vperm.xlu0 %6799, %v5501_v62   ;;  %v1955_v15 = vpop.permute.xlu1 %1954 }
 0x1fe   : > { %v2032_v29 = vmul.f32 %v1955_v15, %v7173_v28  ;;  %v2097_v39 = vmul.f32 %v7178_v30, %v1955_v15  ;;  %v1681_v13 = vpop.permute.xlu0 %1680  ;;  %v1263_v17 = vadd.f32 %v1231_v31, %v1006_v41  ;;  %v5565_v31 = vld [vmem:[%s6999_s24 + $0x1ec] ss:$2 sm:$0xff] }
 0x1ff   : > { %v1746_v62 = vmul.f32 %v1681_v13, %v7154_v20  ;;  %v1811_v26 = vmul.f32 %v7173_v28, %v1681_v13 }
 0x200   : > { %v2064_v49 = vadd.f32 %v2032_v29, %v1775_v33  ;;  %v2129_v53 = vadd.f32 %v2097_v39, %v1840_v63  ;;  %v1521_v29 = vmul.f32 %v7154_v20, %v1387_v21  ;;  %v1554_v39 = vadd.f32 %v1522_v4, %v1265_v61 }
 0x201   : > { %v1264_v63 = vadd.f32 %v1232_v6, %v1007_v59  ;;  %v1744_v21 = vmul.f32 %v7870_v19, %v7154_v20  ;;  %v2324_v61 = vmul.f32 %v7868_v52, %v7178_v30  ;;  %v1487_v59 = vadd.f32 %v1455_v36, %v1198_v48  ;;  %v5535_v52 = vld [vmem:[%s6999_s24 + $0x20b] ss:$2 sm:$0xff] }
 0x202   : > { %v2353_v9 = vadd.f32 %v2321_v2, %v2064_v49  ;;  %1715 = vperm.xlu2 %6801, %v5534_v14   ;;  %v1778_v14 = vadd.f32 %v1746_v62, %v1489_v43  ;;  %v1488_v49 = vadd.f32 %v1456_v40, %v1199_v0  ;;  %v1843_v35 = vadd.f32 %v1811_v26, %v1554_v39 }
 0x203   : > { %v1553_v62 = vadd.f32 %v1521_v29, %v1264_v63  ;;  %v1552_v43 = vadd.f32 %v1520_v58, %v1263_v17  ;;  %v1810_v26 = vmul.f32 %v7173_v28, %v7836_v45  ;;  %v2033_v36 = vmul.f32 %v7854_v44, %v7173_v28 }
 0x204   : > { %v2385_v15 = vmax.f32 %v2129_v53, %v2353_v9  ;;  %1710 = vperm.xlu1 %6800, %v5533_v57   ;;  %v7913_v33 = vpop.permute.xlu2 %1144  ;;  %v1745_v9 = vmul.f32 %v7836_v45, %v7154_v20 }
 0x205   : > { %1705 = vperm.xlu0 %6799, %v5532_v37   ;;  %v1970_v47 = vpop.permute.xlu1 %1969  ;;  %v1809_v37 = vmul.f32 %v7173_v28, %v7870_v19 }
 0x206   : > { %v2421_v41 = vadd.f32 %v7652_v27, %v2385_v15  ;;  %v2035_v13 = vmul.f32 %v1970_v47, %v7173_v28  ;;  %v2100_v55 = vmul.f32 %v7178_v30, %v1970_v47  ;;  %v1965_v2 = vpop.permute.xlu0 %1964  ;;  %v1776_v15 = vadd.f32 %v1744_v21, %v1487_v59 }
 0x207   : > { %v2034_v40 = vmul.f32 %v1965_v2, %v7173_v28  ;;  %v1777_v29 = vadd.f32 %v1745_v9, %v1488_v49  ;;  %v2099_v48 = vmul.f32 %v7178_v30, %v1965_v2  ;;  %v1841_v39 = vadd.f32 %v1809_v37, %v1552_v43  ;;  %v5596_v49 = vld [vmem:[%s6999_s24 + $0x1dd] ss:$2 sm:$0xff]  ;;  %v5566_v9 = vld [vmem:[%s6999_s24 + $0x1fc] ss:$2 sm:$0xff]  ;;  %v7961_v43 = vpop.f32.mrf.mxu0 }
 0x208   : > { %v2453_v57 = vmax.f32 %v2421_v41, 0.0  ;;  %v2067_v53 = vadd.f32 %v2035_v13, %v1778_v14  ;;  %v2132_v4 = vadd.f32 %v2100_v55, %v1843_v35  ;;  %v1842_v41 = vadd.f32 %v1810_v26, %v1553_v62  ;;  %v5567_v35 = vld [vmem:[%s6999_s24 + $0x20c] ss:$2 sm:$0xff]  ;;  %v5598_v26 = vld [vmem:[%s6999_s24 + $0x1fd] ss:$2 sm:$0xff] }
 0x209   : > { %v2066_v14 = vadd.f32 %v2034_v40, %v1777_v29  ;;  %v2098_v55 = vmul.f32 %v7178_v30, %v7854_v44  ;;  %v2065_v2 = vadd.f32 %v2033_v36, %v1776_v15  ;;  %v7963_v15 = vpop.f32.mrf.mxu1  ;;  %v7971_v36 = vpop.f32.mrf.mxu2 }
 0x20a   : > { %2526 = vst.msk [vmem:[#allocation2 + $0xc8] sm:$0xff] %vm2465_vm0, %v2453_v57  ;;  %v2356_v6 = vadd.f32 %v2324_v61, %v2067_v53  ;;  %1999 = vperm.xlu2 %6801, %v5565_v31   ;;  %v2131_v21 = vadd.f32 %v2099_v48, %v1842_v41 }
 0x20b   : > { %v2130_v61 = vadd.f32 %v2098_v55, %v1841_v39  ;;  %9075 = vst [vmem:[#allocation8_spill] sm:$0xff] %v7971_v36 }
 0x20c   : > { %v2388_v0 = vmax.f32 %v2132_v4, %v2356_v6  ;;  %1994 = vperm.xlu1 %6800, %v5564_v8   ;;  %v7941_v19 = vpop.permute.xlu2 %1396 }
 0x20d   : > { %1720 = vperm.xlu0 %6799, %v5535_v52   ;;  %v2254_v47 = vpop.permute.xlu1 %2253  ;;  %v5599_v52 = vld [vmem:[%s6999_s24 + $0x20d] ss:$2 sm:$0xff] }
 0x20e   : > { %v2424_v17 = vadd.f32 %v7652_v27, %v2388_v0  ;;  %v2323_v45 = vmul.f32 %v2254_v47, %v7178_v30  ;;  %v2249_v13 = vpop.permute.xlu0 %2248  ;;  %v5597_v0 = vld [vmem:[%s6999_s24 + $0x1ed] ss:$2 sm:$0xff]  ;;  %s431_s24 = sand.u32 1, %s6864_s26  }
 0x20f   : > { %v2322_v63 = vmul.f32 %v2249_v13, %v7178_v30  ;;  %s5407_s22 = sshll.u32 %s431_s24, 2  ;;  %s5329_s29 = scalar_lea.sflag [#allocation6], %s431_s24 }
 0x210   : > { %v2456_v58 = vmax.f32 %v2424_v17, 0.0  ;;  %v2355_v31 = vadd.f32 %v2323_v45, %v2066_v14  ;;  %s433_s16 = scalar_lea.vmem [#allocation5], %s5407_s22  ;;  %s6830_s22 = scalar_lea.hbm %s9061_s13, 8 }
 0x211   : > { %v2354_v57 = vadd.f32 %v2322_v63, %v2065_v2  ;;  %s5341_s20 = sshll.u32 %s433_s16, 4  ;;  %s5342_s20 = int_to_ptr.vmem [resolvable:$true] %s5341_s20 }
 0x212   : > { %2529 = vst.msk [vmem:[#allocation2 + $0xe0] sm:$0xff] %vm2465_vm0, %v2456_v58  ;;  %v2387_v53 = vmax.f32 %v2131_v21, %v2355_v31  ;;  %2283 = vperm.xlu2 %6801, %v5596_v49  }
 0x213   : > { %v2386_v62 = vmax.f32 %v2130_v61, %v2354_v57 }
 0x214   : > { %v2423_v44 = vadd.f32 %v7652_v27, %v2387_v53  ;;  %2009 = vperm.xlu1 %6800, %v5567_v35   ;;  %v7955_v59 = vpop.permute.xlu2 %1411 }
 0x215   : > { %v2422_v37 = vadd.f32 %v7652_v27, %v2386_v62  ;;  %2004 = vperm.xlu0 %6799, %v5566_v9  }
 0x216   : > { %v2455_v8 = vmax.f32 %v2423_v44, 0.0  ;;  %v7958_v4 = vpop.permute.xlu1 %951 }
 0x217   : > { %v2454_v6 = vmax.f32 %v2422_v37, 0.0  ;;  %v947_v40 = vpop.permute.xlu0 %946 }
 0x218   : > { %2528 = vst.msk [vmem:[#allocation2 + $0xd8] sm:$0xff] %vm2465_vm0, %v2455_v8 }
 0x219   : > { %2527 = vst.msk [vmem:[#allocation2 + $0xd0] sm:$0xff] %vm2465_vm0, %v2454_v6 }
 0x21a   : > { %2298 = vperm.xlu2 %6801, %v5599_v52  }
 0x21c   : > { %2293 = vperm.xlu1 %6800, %v5598_v26   ;;  %v7969_v29 = vpop.permute.xlu2 %1695  ;;  %v1009_v26 = vmul.f32 %v7127_v11, %v947_v40 }
 0x21d   : > { %2288 = vperm.xlu0 %6799, %v5597_v0  }
 0x21e   : > { %v1140_v48 = vpop.permute.xlu1 %1139 }
 0x21f   : > { %v962_v39 = vpop.permute.xlu0 %961  ;;  %v2593_v47 = vld [vmem:[#allocation2 + $0xd8] ss:$2 sm:$0xff]  ;;  %v2625_v17 = vld [vmem:[#allocation2 + $0xd9] ss:$2 sm:$0xff]  ;;  %v1234_v6 = vmul.f32 %v7129_v12, %v1140_v48  ;;  %v1201_v0 = vmul.f32 %v1140_v48, %v7127_v11 }
 0x220   : > { %v2783_v41 = vpop.f32.mrf.mxu0  ;;  %v2908_v14 = vpop.f32.mrf.mxu1  ;;  %v2591_v45 = vld [vmem:[#allocation2 + $0xc8] ss:$2 sm:$0xff]  ;;  %v2559_v13 = vld [vmem:[#allocation2 + $0xc7] ss:$2 sm:$0xff]  ;;  %v2561_v55 = vld [vmem:[#allocation2 + $0xd7] ss:$2 sm:$0xff] }
 0x221   : > { %v2909_v2 = vadd.f32 %v2908_v14, %v2783_v41  ;;  %v7973_v63 = vpack.c.bf16 %v2593_v47, %v2591_v45  ;;  %v2623_v49 = vld [vmem:[#allocation2 + $0xc9] ss:$2 sm:$0xff]  ;;  %v2671_v58 = vpack.c.bf16 %v2561_v55, %v2559_v13  ;;  %v1458_v47 = vmul.f32 %v7941_v19, %v7129_v12 }
 0x222   : > { %v7975_v21 = vpack.c.bf16 %v2625_v17, %v2623_v49  ;;  %v1266_v17 = vadd.f32 %v1234_v6, %v1009_v26  ;;  %v1523_v14 = vmul.f32 %v7154_v20, %v7941_v19  ;;  %v1012_v6 = vmul.f32 %v7127_v11, %v962_v39 }
 0x223   : > { %5617 = vmatmul.msk.bf16.gmra.mxu0 %vm2465_vm0, %v7973_v63  ;;  %5641 = vmatmul.msk.bf16.gmra.mxu1 %vm2465_vm0, %v2671_v58  ;;  %v1490_v45 = vadd.f32 %v1458_v47, %v1201_v0  ;;  %v1011_v47 = vmul.f32 %v7127_v11, %v7884_v54 }
 0x224   : > { %5669 = vmatmul.msk.bf16.gmra.mxu2 %vm2465_vm0, %v7975_v21  ;;  %v7982_v31 = vpop.permute.xlu2 %1979  ;;  %v1555_v49 = vadd.f32 %v1523_v14, %v1266_v17  ;;  %v1202_v17 = vmul.f32 %v7913_v33, %v7127_v11  ;;  %v1461_v14 = vmul.f32 %v7955_v59, %v7129_v12 }
 0x226   : > { %v1155_v61 = vpop.permute.xlu1 %1154 }
 0x227   : > { %v3046_v57 = vpop.f32.mrf.mxu2  ;;  %v1150_v35 = vpop.permute.xlu0 %1149  ;;  %v1237_v55 = vmul.f32 %v7129_v12, %v1155_v61  ;;  %v1204_v60 = vmul.f32 %v1155_v61, %v7127_v11  ;;  %v1235_v61 = vmul.f32 %v7129_v12, %v7913_v33 }
 0x228   : > { %v7984_v53 = vadd.f32 %v3046_v57, %v2909_v2 }
 0x22a   : > { %9076 = vst [vmem:[#allocation9_spill] sm:$0xff] %v7984_v53 }
 0x22c   : > { %v2264_v9 = vpop.permute.xlu2 %2263 }
 0x22d   : > { %v2325_v19 = vmul.f32 %v2264_v9, %v7178_v30  ;;  %v1526_v9 = vmul.f32 %v7154_v20, %v7955_v59 }
 0x22e   : > { %v1407_v62 = vpop.permute.xlu1 %1406 }
 0x22f   : > { %v1402_v44 = vpop.permute.xlu0 %1401  ;;  %v1460_v54 = vmul.f32 %v1407_v62, %v7129_v12 }
 0x230   : > { %v1459_v33 = vmul.f32 %v1402_v44, %v7129_v12 }
 0x234   : > { %v2279_v37 = vpop.permute.xlu2 %2278 }
 0x236   : > { %v1691_v8 = vpop.permute.xlu1 %1690 }
 0x237   : > { %v1686_v52 = vpop.permute.xlu0 %1685 }
 0x238   : > { %v1747_v41 = vmul.f32 %v1686_v52, %v7154_v20  ;;  %v1812_v13 = vmul.f32 %v7173_v28, %v1686_v52 }
 0x23a   : > { %v1779_v58 = vadd.f32 %v1747_v41, %v1490_v45  ;;  %v1844_v0 = vadd.f32 %v1812_v13, %v1555_v49  ;;  %v1269_v41 = vadd.f32 %v1237_v55, %v1012_v6  ;;  %v1236_v13 = vmul.f32 %v7129_v12, %v1150_v35 }
 0x23b   : > { %v1010_v55 = vmul.f32 %v7127_v11, %v7958_v4  ;;  %v1493_v49 = vadd.f32 %v1461_v14, %v1204_v60  ;;  %v1525_v6 = vmul.f32 %v7154_v20, %v1407_v62  ;;  %v2328_v62 = vmul.f32 %v2279_v37, %v7178_v30 }
 0x23c   : > { %v7999_v26 = vpop.permute.xlu2 %976  ;;  %v1268_v60 = vadd.f32 %v1236_v13, %v1011_v47 }
 0x23e   : > { %v1975_v2 = vpop.permute.xlu1 %1974  ;;  %v1557_v47 = vadd.f32 %v1525_v6, %v1268_v60 }
 0x23f   : > { %v2036_v40 = vmul.f32 %v1975_v2, %v7173_v28  ;;  %v2101_v48 = vmul.f32 %v7178_v30, %v1975_v2  ;;  %v1701_v57 = vpop.permute.xlu0 %1700 }
 0x240   : > { %v1750_v2 = vmul.f32 %v1701_v57, %v7154_v20 }
 0x241   : > { %v2068_v52 = vadd.f32 %v2036_v40, %v1779_v58  ;;  %v2133_v45 = vadd.f32 %v2101_v48, %v1844_v0  ;;  %v1815_v40 = vmul.f32 %v7173_v28, %v1701_v57  ;;  %v1203_v48 = vmul.f32 %v1150_v35, %v7127_v11 }
 0x242   : > { %v1524_v57 = vmul.f32 %v7154_v20, %v1402_v44  ;;  %v1748_v35 = vmul.f32 %v1691_v8, %v7154_v20 }
 0x243   : > { %v2357_v39 = vadd.f32 %v2325_v19, %v2068_v52  ;;  %v1558_v19 = vadd.f32 %v1526_v9, %v1269_v41  ;;  %v1782_v52 = vadd.f32 %v1750_v2, %v1493_v49  ;;  %v1492_v14 = vadd.f32 %v1460_v54, %v1203_v48 }
 0x244   : > { %v1267_v9 = vadd.f32 %v1235_v61, %v1010_v55  ;;  %v1491_v2 = vadd.f32 %v1459_v33, %v1202_v17  ;;  %v1813_v49 = vmul.f32 %v7173_v28, %v1691_v8  ;;  %v2037_v8 = vmul.f32 %v7982_v31, %v7173_v28 }
 0x245   : > { %v2389_v58 = vmax.f32 %v2133_v45, %v2357_v39  ;;  %v1847_v39 = vadd.f32 %v1815_v40, %v1558_v19 }
 0x246   : > { %v1990_v0 = vpop.permute.xlu1 %1989  ;;  %v1556_v37 = vadd.f32 %v1524_v57, %v1267_v9  ;;  %v1780_v48 = vadd.f32 %v1748_v35, %v1491_v2 }
 0x247   : > { %v2425_v59 = vadd.f32 %v7652_v27, %v2389_v58  ;;  %v2039_v53 = vmul.f32 %v1990_v0, %v7173_v28  ;;  %v2104_v36 = vmul.f32 %v7178_v30, %v1990_v0  ;;  %v1985_v4 = vpop.permute.xlu0 %1984  ;;  %v1749_v27 = vmul.f32 %v7969_v29, %v7154_v20  ;;  %v8031_v58 = vpop.permute.xlu2 %1164 }
 0x248   : > { %v2038_v54 = vmul.f32 %v1985_v4, %v7173_v28  ;;  %v2103_v17 = vmul.f32 %v7178_v30, %v1985_v4  ;;  %v1845_v40 = vadd.f32 %v1813_v49, %v1556_v37  ;;  %v2069_v4 = vadd.f32 %v2037_v8, %v1780_v48 }
 0x249   : > { %v2457_v45 = vmax.f32 %v2425_v59, 0.0  ;;  %v2071_v41 = vadd.f32 %v2039_v53, %v1782_v52  ;;  %v2136_v44 = vadd.f32 %v2104_v36, %v1847_v39  ;;  %v1814_v53 = vmul.f32 %v7173_v28, %v7969_v29  ;;  %v8043_v36 = vld [vmem:[%s9074_s2] ss:$0 sm:$0xff]  ;;  %s5343_s2 = sshll.u32 %s5339_s15, 4  ;;  %s5344_s2 = int_to_ptr.hbm [resolvable:$true] %s5343_s2 }
 0x24a   : > { %v1781_v55 = vadd.f32 %v1749_v27, %v1492_v14  ;;  %v2102_v52 = vmul.f32 %v7178_v30, %v7982_v31  ;;  %s6824_s3 = sshra.s32 %s5344_s2, 4  ;;  %s6825_s3 = int_to_ptr.hbm [resolvable:$true] %s6824_s3 }
 0x24b   : > { %2530 = vst.msk [vmem:[#allocation2 + $0xf8] sm:$0xff] %vm2465_vm0, %v2457_v45  ;;  %v2360_v13 = vadd.f32 %v2328_v62, %v2071_v41  ;;  %v1846_v19 = vadd.f32 %v1814_v53, %v1557_v47  ;;  %v8061_v53 = vpop.f32.mrf.mxu2  ;;  %p6831_p0 = scmp.lt.s32.totalorder %s6825_s3, %s9061_s13 }
 0x24c   : > { %v2070_v0 = vadd.f32 %v2038_v54, %v1781_v55  ;;  %v2134_v62 = vadd.f32 %v2102_v52, %v1845_v40  ;;  %9079 = vst [vmem:[#allocation12_spill] sm:$0xff] %v8061_v53 }
 0x24d   : > { %v2392_v61 = vmax.f32 %v2136_v44, %v2360_v13  ;;  %v2135_v57 = vadd.f32 %v2103_v17, %v1846_v19  ;;  %v8055_v44 = vpop.f32.mrf.mxu0  ;;  %v8057_v13 = vpop.f32.mrf.mxu1 }
 0x24e   : > { %v2274_v6 = vpop.permute.xlu1 %2273  ;;  %9077 = vst [vmem:[#allocation10_spill] sm:$0xff] %v8055_v44 }
 0x24f   : > { %v2428_v33 = vadd.f32 %v8043_v36, %v2392_v61  ;;  %v2327_v29 = vmul.f32 %v2274_v6, %v7178_v30  ;;  %v2269_v59 = vpop.permute.xlu0 %2268  ;;  %v1417_v41 = vpop.permute.xlu2 %1416  ;;  %9078 = vst [vmem:[#allocation11_spill] sm:$0xff] %v8057_v13 }
 0x250   : > { %v2326_v60 = vmul.f32 %v2269_v59, %v7178_v30 }
 0x251   : > { %v2460_v14 = vmax.f32 %v2428_v33, 0.0  ;;  %v2359_v35 = vadd.f32 %v2327_v29, %v2070_v0 }
 0x252   : > { %v2358_v45 = vadd.f32 %v2326_v60, %v2069_v4 }
 0x253   : > { %2533 = vst.msk [vmem:[#allocation2 + $0x110] sm:$0xff] %vm2465_vm0, %v2460_v14  ;;  %v2391_v39 = vmax.f32 %v2135_v57, %v2359_v35 }
 0x254   : > { %v2390_v9 = vmax.f32 %v2134_v62, %v2358_v45 }
 0x255   : > { %v2427_v27 = vadd.f32 %v8043_v36, %v2391_v39 }
 0x256   : > { %v2426_v2 = vadd.f32 %v8043_v36, %v2390_v9  ;;  %v8053_v49 = vpop.permute.xlu1 %971 }
 0x257   : > { %v2459_v31 = vmax.f32 %v2427_v27, 0.0  ;;  %v967_v47 = vpop.permute.xlu0 %966  ;;  %v1432_v37 = vpop.permute.xlu2 %1431 }
 0x258   : > { %v2458_v54 = vmax.f32 %v2426_v2, 0.0 }
 0x259   : > { %2532 = vst.msk [vmem:[#allocation2 + $0x108] sm:$0xff] %vm2465_vm0, %v2459_v31 }
 0x25a   : > { %2531 = vst.msk [vmem:[#allocation2 + $0x100] sm:$0xff] %vm2465_vm0, %v2458_v54  ;;  %v1013_v54 = vmul.f32 %v7127_v11, %v967_v47 }
 0x25e   : > { %v1160_v48 = vpop.permute.xlu1 %1159 }
 0x25f   : > { %v982_v61 = vpop.permute.xlu0 %981  ;;  %v8072_v35 = vpop.permute.xlu2 %1715  ;;  %v1238_v2 = vmul.f32 %v7129_v12, %v1160_v48 }
 0x260   : > { %v2788_v55 = vpop.f32.mrf.mxu0  ;;  %v2913_v17 = vpop.f32.mrf.mxu1  ;;  %v2597_v8 = vld [vmem:[#allocation2 + $0x108] ss:$2 sm:$0xff]  ;;  %v2629_v40 = vld [vmem:[#allocation2 + $0x109] ss:$2 sm:$0xff] }
 0x261   : > { %v2914_v6 = vadd.f32 %v2913_v17, %v2788_v55  ;;  %v2595_v33 = vld [vmem:[#allocation2 + $0xf8] ss:$2 sm:$0xff]  ;;  %v2563_v19 = vld [vmem:[#allocation2 + $0xf7] ss:$2 sm:$0xff]  ;;  %v2565_v0 = vld [vmem:[#allocation2 + $0x107] ss:$2 sm:$0xff]  ;;  %v1205_v55 = vmul.f32 %v1160_v48, %v7127_v11  ;;  %v1462_v17 = vmul.f32 %v1417_v41, %v7129_v12 }
 0x262   : > { %v8063_v29 = vpack.c.bf16 %v2597_v8, %v2595_v33  ;;  %v2672_v59 = vpack.c.bf16 %v2565_v0, %v2563_v19  ;;  %v2627_v52 = vld [vmem:[#allocation2 + $0xf9] ss:$2 sm:$0xff]  ;;  %v1270_v8 = vadd.f32 %v1238_v2, %v1013_v54  ;;  %v1016_v2 = vmul.f32 %v7127_v11, %v982_v61 }
 0x263   : > { %v8065_v4 = vpack.c.bf16 %v2629_v40, %v2627_v52  ;;  %v1494_v19 = vadd.f32 %v1462_v17, %v1205_v55  ;;  %v1206_v17 = vmul.f32 %v8031_v58, %v7127_v11  ;;  %v1239_v61 = vmul.f32 %v7129_v12, %v8031_v58 }
 0x264   : > { %5618 = vmatmul.msk.bf16.gmra.mxu0 %vm2465_vm0, %v8063_v29  ;;  %5642 = vmatmul.msk.bf16.gmra.mxu1 %vm2465_vm0, %v2672_v59 }
 0x265   : > { %5670 = vmatmul.msk.bf16.gmra.mxu2 %vm2465_vm0, %v8065_v4 }
 0x266   : > { %v1175_v60 = vpop.permute.xlu1 %1174 }
 0x267   : > { %v3051_v14 = vpop.f32.mrf.mxu2  ;;  %v1170_v57 = vpop.permute.xlu0 %1169  ;;  %v1241_v59 = vmul.f32 %v7129_v12, %v1175_v60  ;;  %v1208_v54 = vmul.f32 %v1175_v60, %v7127_v11  ;;  %v1530_v60 = vmul.f32 %v7154_v20, %v1432_v37 }
 0x268   : > { %v8074_v62 = vadd.f32 %v3051_v14, %v2914_v6  ;;  %v8076_v9 = vpop.permute.xlu2 %1999  ;;  %v1527_v6 = vmul.f32 %v7154_v20, %v1417_v41 }
 0x26a   : > { %9080 = vst [vmem:[#allocation13_spill] sm:$0xff] %v8074_v62  ;;  %v1559_v14 = vadd.f32 %v1527_v6, %v1270_v8  ;;  %v1273_v8 = vadd.f32 %v1241_v59, %v1016_v2 }
 0x26c   : > { %v1562_v2 = vadd.f32 %v1530_v60, %v1273_v8 }
 0x26e   : > { %v1427_v45 = vpop.permute.xlu1 %1426 }
 0x26f   : > { %v1422_v39 = vpop.permute.xlu0 %1421 }
 0x270   : > { %v2284_v33 = vpop.permute.xlu2 %2283 }
 0x271   : > { %v2329_v13 = vmul.f32 %v2284_v33, %v7178_v30  ;;  %v1464_v33 = vmul.f32 %v1427_v45, %v7129_v12 }
 0x276   : > { %v1711_v27 = vpop.permute.xlu1 %1710 }
 0x277   : > { %v1706_v31 = vpop.permute.xlu0 %1705 }
 0x278   : > { %v1751_v40 = vmul.f32 %v1706_v31, %v7154_v20  ;;  %v1816_v0 = vmul.f32 %v7173_v28, %v1706_v31  ;;  %v1015_v31 = vmul.f32 %v7127_v11, %v7999_v26  ;;  %v1014_v26 = vmul.f32 %v7127_v11, %v8053_v49  ;;  %v2299_v58 = vpop.permute.xlu2 %2298 }
 0x27a   : > { %v1783_v62 = vadd.f32 %v1751_v40, %v1494_v19  ;;  %v1848_v41 = vadd.f32 %v1816_v0, %v1559_v14  ;;  %v1465_v40 = vmul.f32 %v1432_v37, %v7129_v12 }
 0x27c   : > { %v1497_v0 = vadd.f32 %v1465_v40, %v1208_v54 }
 0x27e   : > { %v1995_v52 = vpop.permute.xlu1 %1994 }
 0x27f   : > { %v2040_v47 = vmul.f32 %v1995_v52, %v7173_v28  ;;  %v2105_v48 = vmul.f32 %v7178_v30, %v1995_v52  ;;  %v1721_v53 = vpop.permute.xlu0 %1720 }
 0x280   : > { %v1754_v52 = vmul.f32 %v1721_v53, %v7154_v20  ;;  %v1819_v14 = vmul.f32 %v7173_v28, %v1721_v53  ;;  %v1528_v53 = vmul.f32 %v7154_v20, %v1422_v39 }
 0x281   : > { %v2072_v55 = vadd.f32 %v2040_v47, %v1783_v62  ;;  %v2137_v6 = vadd.f32 %v2105_v48, %v1848_v41  ;;  %v1240_v62 = vmul.f32 %v7129_v12, %v1170_v57  ;;  %v1529_v47 = vmul.f32 %v7154_v20, %v1427_v45 }
 0x282   : > { %v1463_v48 = vmul.f32 %v1422_v39, %v7129_v12  ;;  %v1851_v45 = vadd.f32 %v1819_v14, %v1562_v2  ;;  %v1818_v14 = vmul.f32 %v7173_v28, %v8072_v35 }
 0x283   : > { %v2361_v19 = vadd.f32 %v2329_v13, %v2072_v55  ;;  %v1207_v13 = vmul.f32 %v1170_v57, %v7127_v11  ;;  %v1786_v55 = vadd.f32 %v1754_v52, %v1497_v0  ;;  %v1272_v40 = vadd.f32 %v1240_v62, %v1015_v31 }
 0x284   : > { %v1752_v11 = vmul.f32 %v1711_v27, %v7154_v20  ;;  %v2332_v57 = vmul.f32 %v2299_v58, %v7178_v30  ;;  %v1753_v52 = vmul.f32 %v8072_v35, %v7154_v20  ;;  %v1495_v60 = vadd.f32 %v1463_v48, %v1206_v17 }
 0x285   : > { %v2393_v59 = vmax.f32 %v2137_v6, %v2361_v19  ;;  %v1496_v6 = vadd.f32 %v1464_v33, %v1207_v13  ;;  %v1271_v19 = vadd.f32 %v1239_v61, %v1014_v26  ;;  %v1817_v0 = vmul.f32 %v7173_v28, %v1711_v27 }
 0x286   : > { %v2010_v37 = vpop.permute.xlu1 %2009  ;;  %v1784_v13 = vadd.f32 %v1752_v11, %v1495_v60  ;;  %v2041_v20 = vmul.f32 %v8076_v9, %v7173_v28 }
 0x287   : > { %v2429_v41 = vadd.f32 %v8043_v36, %v2393_v59  ;;  %v2043_v44 = vmul.f32 %v2010_v37, %v7173_v28  ;;  %v2108_v49 = vmul.f32 %v7178_v30, %v2010_v37  ;;  %v2005_v54 = vpop.permute.xlu0 %2004  ;;  %v1561_v59 = vadd.f32 %v1529_v47, %v1272_v40 }
 0x288   : > { %v2042_v39 = vmul.f32 %v2005_v54, %v7173_v28  ;;  %v1560_v33 = vadd.f32 %v1528_v53, %v1271_v19  ;;  %v1785_v61 = vadd.f32 %v1753_v52, %v1496_v6  ;;  %v2107_v26 = vmul.f32 %v7178_v30, %v2005_v54  ;;  %v8134_v19 = vpop.f32.mrf.mxu1 }
 0x289   : > { %v2461_v12 = vmax.f32 %v2429_v41, 0.0  ;;  %v2075_v8 = vadd.f32 %v2043_v44, %v1786_v55  ;;  %v2140_v31 = vadd.f32 %v2108_v49, %v1851_v45  ;;  %v1850_v48 = vadd.f32 %v1818_v14, %v1561_v59 }
 0x28a   : > { %v1849_v27 = vadd.f32 %v1817_v0, %v1560_v33  ;;  %v2074_v58 = vadd.f32 %v2042_v39, %v1785_v61  ;;  %v2106_v41 = vmul.f32 %v7178_v30, %v8076_v9  ;;  %v2073_v35 = vadd.f32 %v2041_v20, %v1784_v13  ;;  %v2637_v20 = vld [vmem:[#allocation2 + $0x1a] ss:$2 sm:$0xff] }
 0x28b   : > { %2534 = vst.msk [vmem:[#allocation2 + $0x118] sm:$0xff] %vm2465_vm0, %v2461_v12  ;;  %v2364_v62 = vadd.f32 %v2332_v57, %v2075_v8  ;;  %v2139_v54 = vadd.f32 %v2107_v26, %v1850_v48  ;;  %v8132_v8 = vpop.f32.mrf.mxu0  ;;  %v2641_v48 = vld [vmem:[#allocation2 + $0x3a] ss:$2 sm:$0xff] }
 0x28c   : > { %v2138_v6 = vadd.f32 %v2106_v41, %v1849_v27  ;;  %v2635_v27 = vld [vmem:[#allocation2 + $0xa] ss:$2 sm:$0xff] }
 0x28d   : > { %v2396_v44 = vmax.f32 %v2140_v31, %v2364_v62 }
 0x28e   : > { %v2294_v17 = vpop.permute.xlu1 %2293 }
 0x28f   : > { %v2432_v47 = vadd.f32 %v8043_v36, %v2396_v44  ;;  %v2331_v2 = vmul.f32 %v2294_v17, %v7178_v30  ;;  %v2289_v37 = vpop.permute.xlu0 %2288  ;;  %v2973_v17 = vpack.c.bf16 %v2637_v20, %v2635_v27  ;;  %v6598_v20 = vld [vmem:[%s9053_s5 + $0x50] sm:$0xff] }
 0x290   : > { %v2330_v55 = vmul.f32 %v2289_v37, %v7178_v30  ;;  %v8138_v30 = vpop.f32.mrf.mxu2  ;;  %v2643_v37 = vld [vmem:[#allocation2 + $0x5a] ss:$2 sm:$0xff] }
 0x291   : > { %v2464_v49 = vmax.f32 %v2432_v47, 0.0  ;;  %v2363_v40 = vadd.f32 %v2331_v2, %v2074_v58  ;;  %v2639_v47 = vld [vmem:[#allocation2 + $0x2a] ss:$2 sm:$0xff] }
 0x292   : > { %v2362_v28 = vadd.f32 %v2330_v55, %v2073_v35  ;;  %v2974_v58 = vpack.c.bf16 %v2641_v48, %v2639_v47  ;;  %v2645_v2 = vld [vmem:[#allocation2 + $0x6a] ss:$2 sm:$0xff]  ;;  %v8276_v48 = vld [vmem:[%s9082_s4] ss:$0 sm:$0xff]  ;;  %s6826_s4 = scalar_lea.hbm %s6825_s3, 4 }
 0x293   : > { %2537 = vst.msk [vmem:[#allocation2 + $0x130] sm:$0xff] %vm2465_vm0, %v2464_v49  ;;  %v2395_v53 = vmax.f32 %v2139_v54, %v2363_v40  ;;  %v2975_v41 = vpack.c.bf16 %v2645_v2, %v2643_v37  ;;  %v2649_v35 = vld [vmem:[#allocation2 + $0x8a] ss:$2 sm:$0xff]  ;;  %p6827_p11 = scmp.ne.s32.totalorder %s6825_s3, %s6826_s4  ;;  %p6832_p1 = scmp.lt.s32.totalorder %s6830_s22, %s6826_s4 }
 0x294   : > { %v2394_v11 = vmax.f32 %v2138_v6, %v2362_v28  ;;  %v2653_v6 = vld [vmem:[#allocation2 + $0xba] ss:$2 sm:$0xff]  ;;  %v2651_v28 = vld [vmem:[#allocation2 + $0xaa] ss:$2 sm:$0xff] }
 0x295   : > { %v2431_v57 = vadd.f32 %v8043_v36, %v2395_v53  ;;  %v2977_v53 = vpack.c.bf16 %v2653_v6, %v2651_v28  ;;  %v6593_v37 = vld [vmem:[%s9053_s5 + $0x28] sm:$0xff]  ;;  %p6828_p12 = pnand %p6827_p11, %p6984_p5  ;;  %p6833_p2 = por %p6832_p1, %p6831_p0 }
 0x296   : > { %v2430_v12 = vadd.f32 %v8043_v36, %v2394_v11  ;;  %v2657_v11 = vld [vmem:[#allocation2 + $0xda] ss:$2 sm:$0xff] }
 0x297   : > { %v2463_v45 = vmax.f32 %v2431_v57, 0.0  ;;  %p6829_p13 = pneg %p6828_p12 }
 0x298   : > { %v2462_v9 = vmax.f32 %v2430_v12, 0.0  ;;  %v2659_v12 = vld [vmem:[#allocation2 + $0xfa] ss:$2 sm:$0xff] }
 0x299   : > { %2536 = vst.msk [vmem:[#allocation2 + $0x128] sm:$0xff] %vm2465_vm0, %v2463_v45  ;;  %p6834_p3 = pnand %p6833_p2, %p6829_p13 }
 0x29a   : > { %2535 = vst.msk [vmem:[#allocation2 + $0x120] sm:$0xff] %vm2465_vm0, %v2462_v9 }
 0x2a0   : > { %v2793_v52 = vpop.f32.mrf.mxu0  ;;  %v2601_v60 = vld [vmem:[#allocation2 + $0x128] ss:$2 sm:$0xff]  ;;  %v2633_v0 = vld [vmem:[#allocation2 + $0x129] ss:$2 sm:$0xff]  ;;  %v2918_v59 = vpop.f32.mrf.mxu1 }
 0x2a1   : > { %v2599_v31 = vld [vmem:[#allocation2 + $0x118] ss:$2 sm:$0xff]  ;;  %v2567_v62 = vld [vmem:[#allocation2 + $0x117] ss:$2 sm:$0xff]  ;;  %v2569_v39 = vld [vmem:[#allocation2 + $0x127] ss:$2 sm:$0xff]  ;;  %v2919_v36 = vadd.f32 %v2918_v59, %v2793_v52 }
 0x2a2   : > { %v8140_v33 = vpack.c.bf16 %v2601_v60, %v2599_v31  ;;  %v2673_v13 = vpack.c.bf16 %v2569_v39, %v2567_v62  ;;  %v2631_v14 = vld [vmem:[#allocation2 + $0x119] ss:$2 sm:$0xff]  ;;  %v2663_v9 = vld [vmem:[#allocation2 + $0x11a] ss:$2 sm:$0xff]  ;;  %v2665_v52 = vld [vmem:[#allocation2 + $0x12a] ss:$2 sm:$0xff] }
 0x2a3   : > { %v8142_v44 = vpack.c.bf16 %v2633_v0, %v2631_v14  ;;  %v9081_v60 = vmov 0.0   ;;  %v2980_v59 = vpack.c.bf16 %v2665_v52, %v2663_v9  ;;  %v2901_v52 = vadd.f32 %v7829_v32, %v7827_v51 }
 0x2a4   : > { %5619 = vmatmul.msk.bf16.gmra.mxu0 %vm2465_vm0, %v8140_v33  ;;  %5643 = vmatmul.msk.bf16.gmra.mxu1 %vm2465_vm0, %v2673_v13  ;;  %3197 = vst.msk [vmem:[#allocation3 + $0x8] sm:$0xff] %vm3195_vm1, %v9081_v60 }
 0x2a5   : > { %5671 = vmatmul.msk.bf16.gmra.mxu2 %vm2465_vm0, %v8142_v44  ;;  %3196 = vst.msk [vmem:[#allocation3] sm:$0xff] %vm3195_vm1, %v9081_v60 }
 0x2a6   : > { %3198 = vst.msk [vmem:[#allocation3 + $0x10] sm:$0xff] %vm3195_vm1, %v9081_v60 }
 0x2a7   : > { %v3056_v61 = vpop.f32.mrf.mxu2  ;;  %3199 = vst.msk [vmem:[#allocation3 + $0x18] sm:$0xff] %vm3195_vm1, %v9081_v60 }
 0x2a8   : > { %v8149_v26 = vadd.f32 %v3056_v61, %v2919_v36  ;;  %3200 = vst.msk [vmem:[#allocation3 + $0x20] sm:$0xff] %vm3195_vm1, %v9081_v60  ;;  %v6594_v61 = vld [vmem:[%s9053_s5 + $0x30] sm:$0xff] }
 0x2a9   : > { %3201 = vst.msk [vmem:[#allocation3 + $0x28] sm:$0xff] %vm3195_vm1, %v9081_v60 }
 0x2aa   : > { %3202 = vst.msk [vmem:[#allocation3 + $0x30] sm:$0xff] %vm3195_vm1, %v9081_v60 }
 0x2ab   : > { %3203 = vst.msk [vmem:[#allocation3 + $0x38] sm:$0xff] %vm3195_vm1, %v9081_v60 }
 0x2ac   : > { %3204 = vst.msk [vmem:[#allocation3 + $0x40] sm:$0xff] %vm3195_vm1, %v9081_v60 }
 0x2ad   : > { %3205 = vst.msk [vmem:[#allocation3 + $0x48] sm:$0xff] %vm3195_vm1, %v9081_v60 }
 0x2ae   : > { %3206 = vst.msk [vmem:[#allocation3 + $0x50] sm:$0xff] %vm3195_vm1, %v9081_v60 }
 0x2af   : > { %3207 = vst.msk [vmem:[#allocation3 + $0x58] sm:$0xff] %vm3195_vm1, %v9081_v60 }
 0x2b0   : > { %3208 = vst.msk [vmem:[#allocation3 + $0x60] sm:$0xff] %vm3195_vm1, %v9081_v60 }
 0x2b1   : > { %3209 = vst.msk [vmem:[#allocation3 + $0x68] sm:$0xff] %vm3195_vm1, %v9081_v60 }
 0x2b2   : > { %3210 = vst.msk [vmem:[#allocation3 + $0x70] sm:$0xff] %vm3195_vm1, %v9081_v60 }
 0x2b3   : > { %3211 = vst.msk [vmem:[#allocation3 + $0x78] sm:$0xff] %vm3195_vm1, %v9081_v60 }
 0x2b4   : > { %5620 = vmatmul.msk.bf16.gmra.mxu0 %vm2465_vm0, %v7316_v42  ;;  %5644 = vmatmul.msk.bf16.gmra.mxu1 %vm2465_vm0, %v7313_v38  ;;  %v8166_v38 = vpop.f32.mrf.mxu0  ;;  %v8168_v42 = vpop.f32.mrf.mxu1  ;;  %3212 = vst.msk [vmem:[#allocation3 + $0x80] sm:$0xff] %vm3195_vm1, %v9081_v60 }
 0x2b5   : > { %5672 = vmatmul.msk.bf16.gmra.mxu2 %vm2465_vm0, %v2973_v17  ;;  %3213 = vst.msk [vmem:[#allocation3 + $0x88] sm:$0xff] %vm3195_vm1, %v9081_v60 }
 0x2b6   : > { %3214 = vst.msk [vmem:[#allocation3 + $0x90] sm:$0xff] %vm3195_vm1, %v9081_v60 }
 0x2b7   : > { %3215 = vst.msk [vmem:[#allocation3 + $0x98] sm:$0xff] %vm3195_vm1, %v9081_v60 }
 0x2b8   : > { %3216 = vst.msk [vmem:[#allocation3 + $0xa0] sm:$0xff] %vm3195_vm1, %v9081_v60 }
 0x2b9   : > { %3217 = vst.msk [vmem:[#allocation3 + $0xa8] sm:$0xff] %vm3195_vm1, %v9081_v60 }
 0x2ba   : > { %3218 = vst.msk [vmem:[#allocation3 + $0xb0] sm:$0xff] %vm3195_vm1, %v9081_v60 }
 0x2bb   : > { %3219 = vst.msk [vmem:[#allocation3 + $0xb8] sm:$0xff] %vm3195_vm1, %v9081_v60 }
 0x2c4   : > { %5621 = vmatmul.msk.bf16.gmra.mxu0 %vm2465_vm0, %v7445_v25  ;;  %5645 = vmatmul.msk.bf16.gmra.mxu1 %vm2465_vm0, %v7442_v23  ;;  %v8170_v25 = vpop.f32.mrf.mxu2  ;;  %v2647_v23 = vld [vmem:[#allocation2 + $0x7a] ss:$2 sm:$0xff] }
 0x2c5   : > { %5673 = vmatmul.msk.bf16.gmra.mxu2 %vm2465_vm0, %v2974_v58  ;;  %v2976_v40 = vpack.c.bf16 %v2649_v35, %v2647_v23 }
 0x2d4   : > { %5622 = vmatmul.msk.bf16.gmra.mxu0 %vm2465_vm0, %v7570_v18  ;;  %5646 = vmatmul.msk.bf16.gmra.mxu1 %vm2465_vm0, %v7567_v50 }
 0x2d5   : > { %5674 = vmatmul.msk.bf16.gmra.mxu2 %vm2465_vm0, %v2975_v41  ;;  %v6597_v41 = vld [vmem:[%s9053_s5 + $0x48] sm:$0xff] }
 0x2e1   : > { %v2798_v55 = vpop.f32.mrf.mxu0  ;;  %v2923_v49 = vpop.f32.mrf.mxu1 }
 0x2e2   : > { %v2924_v54 = vadd.f32 %v2923_v49, %v2798_v55  ;;  %v6592_v55 = vld [vmem:[%s9053_s5 + $0x20] sm:$0xff] }
 0x2e3   : > { %v6596_v49 = vld [vmem:[%s9053_s5 + $0x40] sm:$0xff] }
 0x2e4   : > { %5623 = vmatmul.msk.bf16.gmra.mxu0 %vm2465_vm0, %v7713_v34  ;;  %5647 = vmatmul.msk.bf16.gmra.mxu1 %vm2465_vm0, %v7710_v5  ;;  %v2655_v34 = vld [vmem:[#allocation2 + $0xca] ss:$2 sm:$0xff] }
 0x2e5   : > { %5675 = vmatmul.msk.bf16.gmra.mxu2 %vm2465_vm0, %v2976_v40  ;;  %v2978_v57 = vpack.c.bf16 %v2657_v11, %v2655_v34  ;;  %v2661_v5 = vld [vmem:[#allocation2 + $0x10a] ss:$2 sm:$0xff] }
 0x2e8   : > { %v3061_v50 = vpop.f32.mrf.mxu2 }
 0x2e9   : > { %v8177_v18 = vadd.f32 %v3061_v50, %v2924_v54  ;;  %v2896_v54 = vadd.f32 %v7696_v7, %v7694_v22 }
 0x2f0   : > { %v8201_v45 = vpop.f32.mrf.mxu2 }
 0x2f4   : > { %5624 = vmatmul.msk.bf16.gmra.mxu0 %vm2465_vm0, %v7846_v24  ;;  %5648 = vmatmul.msk.bf16.gmra.mxu1 %vm2465_vm0, %v7843_v3  ;;  %v6599_v24 = vld [vmem:[%s9053_s5 + $0x58] sm:$0xff]  ;;  %v2979_v3 = vpack.c.bf16 %v2661_v5, %v2659_v12 }
 0x2f5   : > { %5676 = vmatmul.msk.bf16.gmra.mxu2 %vm2465_vm0, %v2977_v53  ;;  %3564 = vmatpush.bf16.msrb.mxu0 %v6599_v24 }
 0x2f9   : > { %3565 = vmatpush.bf16.msrb.mxu0 %v6598_v20 }
 0x2fd   : > { %3566 = vmatpush.bf16.msrb.mxu0 %v6597_v41 }
 0x301   : > { %3567 = vmatpush.bf16.msrb.mxu0 %v6596_v49  ;;  %v9083_v49 = vld [vmem:[#allocation8_spill] sm:$0xff] }
 0x304   : > { %5625 = vmatmul.msk.bf16.gmra.mxu0 %vm2465_vm0, %v7975_v21  ;;  %5649 = vmatmul.msk.bf16.gmra.mxu1 %vm2465_vm0, %v7973_v63  ;;  %v8197_v21 = vpop.f32.mrf.mxu0  ;;  %v8199_v63 = vpop.f32.mrf.mxu1 }
 0x305   : > { %5677 = vmatmul.msk.bf16.gmra.mxu2 %vm2465_vm0, %v2978_v57 }
 0x314   : > { %5626 = vmatmul.msk.bf16.gmra.mxu0 %vm2465_vm0, %v8065_v4  ;;  %5650 = vmatmul.msk.bf16.gmra.mxu1 %vm2465_vm0, %v8063_v29 }
 0x315   : > { %5678 = vmatmul.msk.bf16.gmra.mxu2 %vm2465_vm0, %v2979_v3 }
 0x321   : > { %v2803_v0 = vpop.f32.mrf.mxu0  ;;  %v2928_v4 = vpop.f32.mrf.mxu1 }
 0x322   : > { %v2929_v29 = vadd.f32 %v2928_v4, %v2803_v0 }
 0x324   : > { %5627 = vmatmul.msk.bf16.gmra.mxu0 %vm2465_vm0, %v8142_v44  ;;  %5651 = vmatmul.msk.bf16.gmra.mxu1 %vm2465_vm0, %v8140_v33  ;;  %v6595_v44 = vld [vmem:[%s9053_s5 + $0x38] sm:$0xff] }
 0x325   : > { %5679 = vmatmul.msk.bf16.gmra.mxu2 %vm2465_vm0, %v2980_v59  ;;  %3381 = vmatpush.bf16.msra.mxu3 %v6595_v44 }
 0x328   : > { %v3066_v31 = vpop.f32.mrf.mxu2 }
 0x329   : > { %v8226_v62 = vadd.f32 %v3066_v31, %v2929_v29  ;;  %v8228_v39 = vpop.f32.mrf.mxu0  ;;  %v8230_v36 = vpop.f32.mrf.mxu1  ;;  %3382 = vmatpush.bf16.msra.mxu3 %v6594_v61  ;;  %v3114_v29 = vadd.f32 %v7838_v56, %v2901_v52 }
 0x32d   : > { %3383 = vmatpush.bf16.msra.mxu3 %v6593_v37 }
 0x330   : > { %v8246_v33 = vpop.f32.mrf.mxu2 }
 0x331   : > { %v2808_v13 = vpop.f32.mrf.mxu0  ;;  %v2933_v14 = vpop.f32.mrf.mxu1  ;;  %3384 = vmatpush.bf16.msra.mxu3 %v6592_v55 }
 0x332   : > { %v2934_v27 = vadd.f32 %v2933_v14, %v2808_v13 }
 0x338   : > { %v3071_v17 = vpop.f32.mrf.mxu2 }
 0x339   : > { %v3127_v47 = vadd.f32 %v3071_v17, %v2934_v27  ;;  %v2810_v58 = vpop.f32.mrf.mxu0  ;;  %v2935_v2 = vpop.f32.mrf.mxu1 }
 0x33a   : > { %v2936_v50 = vadd.f32 %v2935_v2, %v2810_v58 }
 0x33b   : > { %v3143_v23 = vmax.f32 %v7581_v16, %v3127_v47  ;;  %v3112_v16 = vadd.f32 %v7705_v10, %v2896_v54  ;;  %v2906_v47 = vadd.f32 %v7963_v15, %v7961_v43 }
 0x33d   : > { %v3163_v35 = vadd.f32 %v8276_v48, %v3143_v23  ;;  %v3116_v54 = vadd.f32 %v9083_v49, %v2906_v47  ;;  %v2916_v47 = vadd.f32 %v8134_v19, %v8132_v8 }
 0x33f   : > { %v3179_v40 = vmax.f32 %v3163_v35, 0.0  ;;  %v3120_v49 = vadd.f32 %v8138_v30, %v2916_v47 }
 0x340   : > { %v3073_v6 = vpop.f32.mrf.mxu2 }
 0x341   : > { %3220 = vst.msk [vmem:[#allocation3 + $0x8] sm:$0xff] %vm3195_vm1, %v3179_v40  ;;  %v3128_v28 = vadd.f32 %v3073_v6, %v2936_v50  ;;  %v2813_v53 = vpop.f32.mrf.mxu0  ;;  %v2938_v34 = vpop.f32.mrf.mxu1 }
 0x342   : > { %v2939_v12 = vadd.f32 %v2938_v34, %v2813_v53 }
 0x343   : > { %v3144_v11 = vmax.f32 %v3112_v16, %v3128_v28 }
 0x345   : > { %v3164_v57 = vadd.f32 %v8276_v48, %v3144_v11 }
 0x347   : > { %v3180_v5 = vmax.f32 %v3164_v57, 0.0 }
 0x348   : > { %v3076_v24 = vpop.f32.mrf.mxu2 }
 0x349   : > { %3221 = vst.msk [vmem:[#allocation3 + $0x10] sm:$0xff] %vm3195_vm1, %v3180_v5  ;;  %v3129_v22 = vadd.f32 %v3076_v24, %v2939_v12  ;;  %v2815_v7 = vpop.f32.mrf.mxu0  ;;  %v2940_v3 = vpop.f32.mrf.mxu1  ;;  %v9084_v12 = vld [vmem:[#allocation9_spill] sm:$0xff] }
 0x34a   : > { %v2941_v0 = vadd.f32 %v2940_v3, %v2815_v7  ;;  %v9085_v7 = vld [vmem:[#allocation10_spill] sm:$0xff]  ;;  %v9086_v3 = vld [vmem:[#allocation11_spill] sm:$0xff] }
 0x34b   : > { %v3145_v9 = vmax.f32 %v7723_v46, %v3129_v22 }
 0x34d   : > { %v3165_v10 = vadd.f32 %v8276_v48, %v3145_v9  ;;  %v2911_v9 = vadd.f32 %v9086_v3, %v9085_v7 }
 0x34f   : > { %v3181_v60 = vmax.f32 %v3165_v10, 0.0 }
 0x350   : > { %v3078_v4 = vpop.f32.mrf.mxu2  ;;  %v3253_v37 = vld [vmem:[#allocation3 + $0x8] ss:$2 sm:$0xff]  ;;  %v3269_v35 = vld [vmem:[#allocation3 + $0x9] ss:$2 sm:$0xff] }
 0x351   : > { %3222 = vst.msk [vmem:[#allocation3 + $0x18] sm:$0xff] %vm3195_vm1, %v3181_v60  ;;  %v3130_v59 = vadd.f32 %v3078_v4, %v2941_v0  ;;  %v2818_v31 = vpop.f32.mrf.mxu0  ;;  %v2943_v13 = vpop.f32.mrf.mxu1  ;;  %v9087_v0 = vld [vmem:[#allocation12_spill] sm:$0xff] }
 0x352   : > { %v2944_v46 = vadd.f32 %v2943_v13, %v2818_v31  ;;  %v3118_v4 = vadd.f32 %v9087_v0, %v2911_v9 }
 0x353   : > { %v3146_v14 = vmax.f32 %v3114_v29, %v3130_v59 }
 0x355   : > { %v3166_v44 = vadd.f32 %v8276_v48, %v3146_v14 }
 0x357   : > { %v3182_v61 = vmax.f32 %v3166_v44, 0.0 }
 0x358   : > { %v3081_v20 = vpop.f32.mrf.mxu2 }
 0x359   : > { %3223 = vst.msk [vmem:[#allocation3 + $0x20] sm:$0xff] %vm3195_vm1, %v3182_v61  ;;  %v3131_v27 = vadd.f32 %v3081_v20, %v2944_v46  ;;  %v2820_v51 = vpop.f32.mrf.mxu0  ;;  %v2945_v32 = vpop.f32.mrf.mxu1 }
 0x35a   : > { %v2946_v2 = vadd.f32 %v2945_v32, %v2820_v51  ;;  %v9088_v32 = vld [vmem:[#allocation13_spill] sm:$0xff] }
 0x35b   : > { %v3147_v17 = vmax.f32 %v7856_v1, %v3131_v27 }
 0x35d   : > { %v3167_v56 = vadd.f32 %v8276_v48, %v3147_v17 }
 0x35f   : > { %v3183_v58 = vmax.f32 %v3167_v56, 0.0 }
 0x360   : > { %v3083_v41 = vpop.f32.mrf.mxu2  ;;  %v3255_v23 = vld [vmem:[#allocation3 + $0x18] ss:$2 sm:$0xff]  ;;  %v3271_v55 = vld [vmem:[#allocation3 + $0x19] ss:$2 sm:$0xff] }
 0x361   : > { %3224 = vst.msk [vmem:[#allocation3 + $0x38] sm:$0xff] %vm3195_vm1, %v3183_v58  ;;  %v3132_v40 = vadd.f32 %v3083_v41, %v2946_v2  ;;  %v2823_v50 = vpop.f32.mrf.mxu0  ;;  %v2948_v6 = vpop.f32.mrf.mxu1  ;;  %v8312_v1 = vpack.c.bf16 %v3255_v23, %v3253_v37  ;;  %v8314_v16 = vpack.c.bf16 %v3271_v55, %v3269_v35 }
 0x362   : > { %v2949_v53 = vadd.f32 %v2948_v6, %v2823_v50 }
 0x363   : > { %v3148_v28 = vmax.f32 %v3116_v54, %v3132_v40  ;;  %5704 = vmatmul.msk.bf16.vlgmr.msra.gmra.mxu3 %vm3195_vm1, %v8312_v1  ;;  %5760 = vmatmul.msk.bf16.vlgmr.msrb.gmra.mxu0 %vm3195_vm1, %v8314_v16 }
 0x365   : > { %v3168_v43 = vadd.f32 %v8276_v48, %v3148_v28 }
 0x367   : > { %v3184_v15 = vmax.f32 %v3168_v43, 0.0 }
 0x368   : > { %v3086_v34 = vpop.f32.mrf.mxu2 }
 0x369   : > { %3225 = vst.msk [vmem:[#allocation3 + $0x40] sm:$0xff] %vm3195_vm1, %v3184_v15  ;;  %v3133_v11 = vadd.f32 %v3086_v34, %v2949_v53  ;;  %v2825_v57 = vpop.f32.mrf.mxu0  ;;  %v2950_v5 = vpop.f32.mrf.mxu1 }
 0x36a   : > { %v2951_v52 = vadd.f32 %v2950_v5, %v2825_v57 }
 0x36b   : > { %v3149_v24 = vmax.f32 %v9084_v12, %v3133_v11  ;;  %v2921_v12 = vadd.f32 %v8168_v42, %v8166_v38 }
 0x36d   : > { %v3169_v22 = vadd.f32 %v8276_v48, %v3149_v24  ;;  %v3122_v3 = vadd.f32 %v8170_v25, %v2921_v12 }
 0x36f   : > { %v3185_v10 = vmax.f32 %v3169_v22, 0.0 }
 0x370   : > { %v3088_v60 = vpop.f32.mrf.mxu2  ;;  %v3257_v37 = vld [vmem:[#allocation3 + $0x38] ss:$2 sm:$0xff]  ;;  %v3273_v35 = vld [vmem:[#allocation3 + $0x39] ss:$2 sm:$0xff] }
 0x371   : > { %3226 = vst.msk [vmem:[#allocation3 + $0x48] sm:$0xff] %vm3195_vm1, %v3185_v10  ;;  %v3134_v29 = vadd.f32 %v3088_v60, %v2951_v52  ;;  %v2828_v59 = vpop.f32.mrf.mxu0  ;;  %v2953_v31 = vpop.f32.mrf.mxu1  ;;  %v6591_v60 = vld [vmem:[%s9053_s5 + $0x18] sm:$0xff] }
 0x372   : > { %v2954_v61 = vadd.f32 %v2953_v31, %v2828_v59  ;;  %3466 = vmatpush.bf16.msrb.mxu3 %v6591_v60 }
 0x373   : > { %v3150_v13 = vmax.f32 %v3118_v4, %v3134_v29 }
 0x375   : > { %v3170_v14 = vadd.f32 %v8276_v48, %v3150_v13 }
 0x377   : > { %v3186_v44 = vmax.f32 %v3170_v14, 0.0  ;;  %v2926_v14 = vadd.f32 %v8199_v63, %v8197_v21  ;;  %v6590_v21 = vld [vmem:[%s9053_s5 + $0x10] sm:$0xff] }
 0x378   : > { %v3091_v46 = vpop.f32.mrf.mxu2  ;;  %3467 = vmatpush.bf16.msrb.mxu3 %v6590_v21  ;;  %v6614_v21 = vld [vmem:[%s9055_s7 + $0x70] sm:$0xff] }
 0x379   : > { %3227 = vst.msk [vmem:[#allocation3 + $0x50] sm:$0xff] %vm3195_vm1, %v3186_v44  ;;  %v3135_v20 = vadd.f32 %v3091_v46, %v2954_v61  ;;  %v2830_v27 = vpop.f32.mrf.mxu0  ;;  %v2955_v51 = vpop.f32.mrf.mxu1 }
 0x37a   : > { %v2956_v2 = vadd.f32 %v2955_v51, %v2830_v27 }
 0x37b   : > { %v3151_v17 = vmax.f32 %v9088_v32, %v3135_v20 }
 0x37d   : > { %v3171_v56 = vadd.f32 %v8276_v48, %v3151_v17  ;;  %v3124_v17 = vadd.f32 %v8201_v45, %v2926_v14 }
 0x37f   : > { %v3187_v58 = vmax.f32 %v3171_v56, 0.0 }
 0x380   : > { %v3093_v41 = vpop.f32.mrf.mxu2  ;;  %v3259_v23 = vld [vmem:[#allocation3 + $0x48] ss:$2 sm:$0xff]  ;;  %v3275_v55 = vld [vmem:[#allocation3 + $0x49] ss:$2 sm:$0xff] }
 0x381   : > { %3228 = vst.msk [vmem:[#allocation3 + $0x68] sm:$0xff] %vm3195_vm1, %v3187_v58  ;;  %v3136_v54 = vadd.f32 %v3093_v41, %v2956_v2  ;;  %v2833_v40 = vpop.f32.mrf.mxu0  ;;  %v2958_v50 = vpop.f32.mrf.mxu1  ;;  %v8336_v6 = vpack.c.bf16 %v3259_v23, %v3257_v37  ;;  %v8338_v28 = vpack.c.bf16 %v3275_v55, %v3273_v35 }
 0x382   : > { %v2959_v30 = vadd.f32 %v2958_v50, %v2833_v40  ;;  %v2931_v50 = vadd.f32 %v8230_v36, %v8228_v39  ;;  %v6589_v36 = vld [vmem:[%s9053_s5 + $0x8] sm:$0xff] }
 0x383   : > { %v3152_v43 = vmax.f32 %v3120_v49, %v3136_v54  ;;  %5705 = vmatmul.msk.bf16.gmra.mxu3 %vm3195_vm1, %v8336_v6  ;;  %5761 = vmatmul.msk.bf16.gmra.mxu0 %vm3195_vm1, %v8338_v28 }
 0x384   : > { %3468 = vmatpush.bf16.msrb.mxu3 %v6589_v36 }
 0x385   : > { %v3172_v8 = vadd.f32 %v8276_v48, %v3152_v43 }
 0x387   : > { %v3188_v19 = vmax.f32 %v3172_v8, 0.0 }
 0x388   : > { %v3096_v15 = vpop.f32.mrf.mxu2 }
 0x389   : > { %3229 = vst.msk [vmem:[#allocation3 + $0x70] sm:$0xff] %vm3195_vm1, %v3188_v19  ;;  %v3137_v53 = vadd.f32 %v3096_v15, %v2959_v30  ;;  %v2835_v34 = vpop.f32.mrf.mxu0  ;;  %v2960_v11 = vpop.f32.mrf.mxu1  ;;  %v3126_v30 = vadd.f32 %v8246_v33, %v2931_v50  ;;  %v3287_v33 = vld [vmem:[#allocation3 + $0x1a] ss:$2 sm:$0xff] }
 0x38a   : > { %v2961_v22 = vadd.f32 %v2960_v11, %v2835_v34 }
 0x38b   : > { %v3153_v57 = vmax.f32 %v8149_v26, %v3137_v53 }
 0x38d   : > { %v3173_v5 = vadd.f32 %v8276_v48, %v3153_v57 }
 0x38f   : > { %v3189_v24 = vmax.f32 %v3173_v5, 0.0 }
 0x390   : > { %v3098_v7 = vpop.f32.mrf.mxu2  ;;  %v3261_v46 = vld [vmem:[#allocation3 + $0x68] ss:$2 sm:$0xff]  ;;  %v3277_v51 = vld [vmem:[#allocation3 + $0x69] ss:$2 sm:$0xff] }
 0x391   : > { %3230 = vst.msk [vmem:[#allocation3 + $0x78] sm:$0xff] %vm3195_vm1, %v3189_v24  ;;  %v3138_v9 = vadd.f32 %v3098_v7, %v2961_v22  ;;  %v2838_v10 = vpop.f32.mrf.mxu0  ;;  %v2963_v52 = vpop.f32.mrf.mxu1  ;;  %v3291_v7 = vld [vmem:[#allocation3 + $0x4a] ss:$2 sm:$0xff] }
 0x392   : > { %v2964_v38 = vadd.f32 %v2963_v52, %v2838_v10  ;;  %v6588_v10 = vld [vmem:[%s9053_s5] sm:$0xff] }
 0x393   : > { %v3154_v26 = vmax.f32 %v3122_v3, %v3138_v9  ;;  %v3289_v3 = vld [vmem:[#allocation3 + $0x3a] ss:$2 sm:$0xff]  ;;  %3469 = vmatpush.bf16.msrb.mxu3 %v6588_v10 }
 0x394   : > { %v3512_v9 = vpack.c.bf16 %v3291_v7, %v3289_v3  ;;  %v6622_v3 = vld [vmem:[%s9055_s7 + $0xb0] sm:$0xff] }
 0x395   : > { %v3174_v0 = vadd.f32 %v8276_v48, %v3154_v26 }
 0x397   : > { %v3190_v4 = vmax.f32 %v3174_v0, 0.0 }
 0x398   : > { %v3101_v42 = vpop.f32.mrf.mxu2  ;;  %v3293_v60 = vld [vmem:[#allocation3 + $0x6a] ss:$2 sm:$0xff] }
 0x399   : > { %3231 = vst.msk [vmem:[#allocation3 + $0x80] sm:$0xff] %vm3195_vm1, %v3190_v4  ;;  %v3139_v29 = vadd.f32 %v3101_v42, %v2964_v38  ;;  %v2840_v25 = vpop.f32.mrf.mxu0  ;;  %v2965_v59 = vpop.f32.mrf.mxu1  ;;  %v3237_v42 = vld [vmem:[#allocation3 + $0x7] ss:$2 sm:$0xff] }
 0x39a   : > { %v2966_v61 = vadd.f32 %v2965_v59, %v2840_v25  ;;  %v3243_v59 = vld [vmem:[#allocation3 + $0x47] ss:$2 sm:$0xff] }
 0x39b   : > { %v3155_v31 = vmax.f32 %v8177_v18, %v3139_v29 }
 0x39d   : > { %v3175_v13 = vadd.f32 %v8276_v48, %v3155_v31  ;;  %v3241_v31 = vld [vmem:[#allocation3 + $0x37] ss:$2 sm:$0xff] }
 0x39f   : > { %v3191_v44 = vmax.f32 %v3175_v13, 0.0  ;;  %v3301_v13 = vpack.c.bf16 %v3243_v59, %v3241_v31 }
 0x3a0   : > { %v3103_v20 = vpop.f32.mrf.mxu2  ;;  %v3263_v27 = vld [vmem:[#allocation3 + $0x78] ss:$2 sm:$0xff]  ;;  %v3279_v32 = vld [vmem:[#allocation3 + $0x79] ss:$2 sm:$0xff] }
 0x3a1   : > { %3232 = vst.msk [vmem:[#allocation3 + $0x98] sm:$0xff] %vm3195_vm1, %v3191_v44  ;;  %v3140_v56 = vadd.f32 %v3103_v20, %v2966_v61  ;;  %v8363_v47 = vpack.c.bf16 %v3263_v27, %v3261_v46  ;;  %v3318_v18 = vpack.c.bf16 %v3279_v32, %v3277_v51  ;;  %v2843_v58 = vpop.f32.mrf.mxu0  ;;  %v2968_v2 = vpop.f32.mrf.mxu1  ;;  %v3295_v52 = vld [vmem:[#allocation3 + $0x7a] ss:$2 sm:$0xff]  ;;  %v3247_v20 = vld [vmem:[#allocation3 + $0x77] ss:$2 sm:$0xff] }
 0x3a2   : > { %v2969_v41 = vadd.f32 %v2968_v2, %v2843_v58  ;;  %v3513_v26 = vpack.c.bf16 %v3295_v52, %v3293_v60  ;;  %v6607_v44 = vld [vmem:[%s9055_s7 + $0x38] sm:$0xff]  ;;  %v3245_v27 = vld [vmem:[#allocation3 + $0x67] ss:$2 sm:$0xff] }
 0x3a3   : > { %v3156_v37 = vmax.f32 %v3124_v17, %v3140_v56  ;;  %5706 = vmatmul.msk.bf16.gmra.mxu3 %vm3195_vm1, %v8363_v47  ;;  %5762 = vmatmul.msk.bf16.gmra.mxu0 %vm3195_vm1, %v3318_v18  ;;  %v6615_v61 = vld [vmem:[%s9055_s7 + $0x78] sm:$0xff]  ;;  %v3302_v51 = vpack.c.bf16 %v3247_v20, %v3245_v27  ;;  %v6606_v2 = vld [vmem:[%s9055_s7 + $0x30] sm:$0xff]  ;;  %v6620_v20 = vld [vmem:[%s9055_s7 + $0xa0] sm:$0xff] }
 0x3a4   : > { %3850 = vmatpush.bf16.msrb.mxu2 %v6607_v44  ;;  %3781 = vmatpush.bf16.msrb.mxu1 %v6615_v61 }
 0x3a5   : > { %v3176_v63 = vadd.f32 %v8276_v48, %v3156_v37 }
 0x3a7   : > { %v3192_v45 = vmax.f32 %v3176_v63, 0.0 }
 0x3a8   : > { %v3106_v23 = vpop.f32.mrf.mxu2  ;;  %3851 = vmatpush.bf16.msrb.mxu2 %v6606_v2  ;;  %3782 = vmatpush.bf16.msrb.mxu1 %v6614_v21 }
 0x3a9   : > { %3233 = vst.msk [vmem:[#allocation3 + $0xa0] sm:$0xff] %vm3195_vm1, %v3192_v45  ;;  %v3141_v35 = vadd.f32 %v3106_v23, %v2969_v41  ;;  %v2845_v49 = vpop.f32.mrf.mxu0  ;;  %v2970_v54 = vpop.f32.mrf.mxu1  ;;  %v6605_v23 = vld [vmem:[%s9055_s7 + $0x28] sm:$0xff] }
 0x3aa   : > { %v2971_v8 = vadd.f32 %v2970_v54, %v2845_v49 }
 0x3ab   : > { %v3157_v55 = vmax.f32 %v8226_v62, %v3141_v35 }
 0x3ac   : > { %3852 = vmatpush.bf16.msrb.mxu2 %v6605_v23 }
 0x3ad   : > { %v3177_v40 = vadd.f32 %v8276_v48, %v3157_v55  ;;  %v6613_v55 = vld [vmem:[%s9055_s7 + $0x68] sm:$0xff] }
 0x3ae   : > { %3783 = vmatpush.bf16.msrb.mxu1 %v6613_v55 }
 0x3af   : > { %v3193_v43 = vmax.f32 %v3177_v40, 0.0  ;;  %v6604_v40 = vld [vmem:[%s9055_s7 + $0x20] sm:$0xff] }
 0x3b0   : > { %v3108_v19 = vpop.f32.mrf.mxu2  ;;  %v3265_v62 = vld [vmem:[#allocation3 + $0x98] ss:$2 sm:$0xff]  ;;  %v3281_v5 = vld [vmem:[#allocation3 + $0x99] ss:$2 sm:$0xff]  ;;  %3853 = vmatpush.bf16.msrb.mxu2 %v6604_v40 }
 0x3b1   : > { %3234 = vst.msk [vmem:[#allocation3 + $0xa8] sm:$0xff] %vm3195_vm1, %v3193_v43  ;;  %v3142_v15 = vadd.f32 %v3108_v19, %v2971_v8  ;;  %v6612_v43 = vld [vmem:[%s9055_s7 + $0x60] sm:$0xff] }
 0x3b2   : > { %3784 = vmatpush.bf16.msrb.mxu1 %v6612_v43 }
 0x3b3   : > { %v3158_v53 = vmax.f32 %v3126_v30, %v3142_v15 }
 0x3b5   : > { %v3178_v34 = vadd.f32 %v8276_v48, %v3158_v53  ;;  %v3285_v48 = vld [vmem:[#allocation3 + $0xa] ss:$2 sm:$0xff] }
 0x3b6   : > { %v3511_v22 = vpack.c.bf16 %v3287_v33, %v3285_v48 }
 0x3b7   : > { %v3194_v11 = vmax.f32 %v3178_v34, 0.0  ;;  %v6603_v34 = vld [vmem:[%s9055_s7 + $0x18] sm:$0xff] }
 0x3b8   : > { %v3297_v0 = vld [vmem:[#allocation3 + $0x9a] ss:$2 sm:$0xff]  ;;  %3854 = vmatpush.bf16.msrb.mxu2 %v6603_v34 }
 0x3b9   : > { %3235 = vst.msk [vmem:[#allocation3 + $0xb0] sm:$0xff] %vm3195_vm1, %v3194_v11 }
 0x3c0   : > { %v3267_v57 = vld [vmem:[#allocation3 + $0xa8] ss:$2 sm:$0xff]  ;;  %v3283_v12 = vld [vmem:[#allocation3 + $0xa9] ss:$2 sm:$0xff] }
 0x3c1   : > { %v8381_v24 = vpack.c.bf16 %v3267_v57, %v3265_v62  ;;  %v3319_v39 = vpack.c.bf16 %v3283_v12, %v3281_v5  ;;  %v3251_v56 = vld [vmem:[#allocation3 + $0xa7] ss:$2 sm:$0xff]  ;;  %v6623_v57 = vld [vmem:[%s9055_s7 + $0xb8] sm:$0xff] }
 0x3c2   : > { %v6611_v5 = vld [vmem:[%s9055_s7 + $0x58] sm:$0xff]  ;;  %3956 = vmatpush.bf16.msra.mxu3 %v6623_v57  ;;  %v6600_v57 = vld [vmem:[%s9055_s7] sm:$0xff] }
 0x3c3   : > { %5707 = vmatmul.msk.bf16.gmra.mxu3 %vm3195_vm1, %v8381_v24  ;;  %5763 = vmatmul.msk.bf16.gmra.mxu0 %vm3195_vm1, %v3319_v39 }
 0x3c4   : > { %3785 = vmatpush.bf16.msrb.mxu1 %v6611_v5  ;;  %v6616_v5 = vld [vmem:[%s9055_s7 + $0x80] sm:$0xff] }
 0x3c6   : > { %3957 = vmatpush.bf16.msra.mxu3 %v6622_v3  ;;  %v6702_v3 = vld [vmem:[%s9055_s7 + $0x330] sm:$0xff] }
 0x3d3   : > { %5708 = vmatmul.msk.bf16.gmra.mxu3 %vm3195_vm1, %v8314_v16  ;;  %5764 = vmatmul.msk.bf16.gmra.mxu0 %vm3195_vm1, %v3511_v22  ;;  %v3299_v16 = vld [vmem:[#allocation3 + $0xaa] ss:$2 sm:$0xff] }
 0x3d4   : > { %v3514_v4 = vpack.c.bf16 %v3299_v16, %v3297_v0 }
 0x3e0   : > { %v3569_v54 = vpop.f32.mrf.mxu0 }
 0x3e3   : > { %5709 = vmatmul.msk.bf16.gmra.mxu3 %vm3195_vm1, %v8338_v28  ;;  %5765 = vmatmul.msk.bf16.gmra.mxu0 %vm3195_vm1, %v3512_v9  ;;  %v3239_v28 = vld [vmem:[#allocation3 + $0x17] ss:$2 sm:$0xff] }
 0x3e4   : > { %v3300_v29 = vpack.c.bf16 %v3239_v28, %v3237_v42  ;;  %v6610_v28 = vld [vmem:[%s9055_s7 + $0x50] sm:$0xff] }
 0x3e5   : > { %3786 = vmatpush.bf16.msrb.mxu1 %v6610_v28  ;;  %v6701_v28 = vld [vmem:[%s9055_s7 + $0x328] sm:$0xff] }
 0x3e6   : > { %v8402_v38 = vpop.f32.mrf.mxu3 }
 0x3ee   : > { %v8405_v25 = vpop.f32.mrf.mxu3 }
 0x3f3   : > { %5710 = vmatmul.msk.bf16.gmra.mxu3 %vm3195_vm1, %v3318_v18  ;;  %5766 = vmatmul.msk.bf16.gmra.mxu0 %vm3195_vm1, %v3513_v26  ;;  %v3249_v18 = vld [vmem:[#allocation3 + $0x97] ss:$2 sm:$0xff] }
 0x3f4   : > { %v3303_v58 = vpack.c.bf16 %v3251_v56, %v3249_v18  ;;  %v6602_v26 = vld [vmem:[%s9055_s7 + $0x10] sm:$0xff]  ;;  %v8507_v56 = vld [vmem:[%s9054_s6] ss:$0 sm:$0xff] }
 0x3f5   : > { %3855 = vmatpush.bf16.msrb.mxu2 %v6602_v26  ;;  %v6630_v26 = vld [vmem:[%s9055_s7 + $0xf0] sm:$0xff] }
 0x403   : > { %5711 = vmatmul.msk.bf16.gmra.mxu3 %vm3195_vm1, %v3319_v39  ;;  %5767 = vmatmul.msk.bf16.gmra.mxu0 %vm3195_vm1, %v3514_v4  ;;  %v6621_v4 = vld [vmem:[%s9055_s7 + $0xa8] sm:$0xff] }
 0x404   : > { %3958 = vmatpush.bf16.msra.mxu3 %v6621_v4 }
 0x406   : > { %v8407_v14 = vpop.f32.mrf.mxu3 }
 0x408   : > { %3959 = vmatpush.bf16.msra.mxu3 %v6620_v20  ;;  %v6700_v20 = vld [vmem:[%s9055_s7 + $0x320] sm:$0xff] }
 0x40e   : > { %v3393_v46 = vpop.f32.mrf.mxu3 }
 0x413   : > { %5728 = vmatmul.msk.bf16.vlgmr.msrb.gmra.mxu3 %vm3195_vm1, %v3300_v29 }
 0x423   : > { %5729 = vmatmul.msk.bf16.gmra.mxu3 %vm3195_vm1, %v3301_v13 }
 0x426   : > { %v8417_v32 = vpop.f32.mrf.mxu3 }
 0x42e   : > { %v3398_v17 = vpop.f32.mrf.mxu3 }
 0x433   : > { %5730 = vmatmul.msk.bf16.gmra.mxu3 %vm3195_vm1, %v3302_v51 }
 0x443   : > { %5731 = vmatmul.msk.bf16.gmra.mxu3 %vm3195_vm1, %v3303_v58 }
 0x446   : > { %v8423_v37 = vpop.f32.mrf.mxu3 }
 0x44e   : > { %v3403_v63 = vpop.f32.mrf.mxu3 }
 0x453   : > { %5732 = vmatmul.msk.bf16.gmra.mxu3 %vm3195_vm1, %v8312_v1 }
 0x456   : > { %v3406_v45 = vpop.f32.mrf.mxu3 }
 0x45e   : > { %v8430_v41 = vpop.f32.mrf.mxu3 }
 0x463   : > { %5733 = vmatmul.msk.bf16.gmra.mxu3 %vm3195_vm1, %v8336_v6 }
 0x466   : > { %v8437_v35 = vpop.f32.mrf.mxu3 }
 0x46e   : > { %v8442_v49 = vpop.f32.mrf.mxu3 }
 0x473   : > { %5734 = vmatmul.msk.bf16.gmra.mxu3 %vm3195_vm1, %v8363_v47  ;;  %v3571_v47 = vpop.f32.mrf.mxu0 }
 0x476   : > { %v8446_v1 = vpop.f32.mrf.mxu3 }
 0x47b   : > { %v8462_v19 = vpop.f32.mrf.mxu0 }
 0x47e   : > { %v8448_v6 = vpop.f32.mrf.mxu3 }
 0x483   : > { %5735 = vmatmul.msk.bf16.gmra.mxu3 %vm3195_vm1, %v8381_v24  ;;  %v3576_v15 = vpop.f32.mrf.mxu0 }
 0x486   : > { %v8455_v50 = vpop.f32.mrf.mxu3 }
 0x48b   : > { %v8467_v11 = vpop.f32.mrf.mxu0 }
 0x48e   : > { %v8460_v8 = vpop.f32.mrf.mxu3 }
 0x493   : > { %v3581_v12 = vpop.f32.mrf.mxu0 }
 0x496   : > { %v3471_v30 = vpop.f32.mrf.mxu3 }
 0x497   : > { %v3472_v13 = vadd.f32 %v3471_v30, %v8402_v38  ;;  %v6601_v30 = vld [vmem:[%s9055_s7 + $0x8] sm:$0xff] }
 0x498   : > { %3856 = vmatpush.bf16.msrb.mxu2 %v6601_v30 }
 0x499   : > { %v3609_v61 = vadd.f32 %v3569_v54, %v3472_v13  ;;  %v6637_v13 = vld [vmem:[%s9055_s7 + $0x128] sm:$0xff] }
 0x49b   : > { %v8477_v33 = vpop.f32.mrf.mxu0 }
 0x49c   : > { %3857 = vmatpush.bf16.msrb.mxu2 %v6600_v57 }
 0x49e   : > { %v3473_v53 = vpop.f32.mrf.mxu3 }
 0x4a3   : > { %v3586_v9 = vpop.f32.mrf.mxu0 }
 0x4a6   : > { %v3476_v62 = vpop.f32.mrf.mxu3 }
 0x4a7   : > { %v3477_v43 = vadd.f32 %v3476_v62, %v8407_v14  ;;  %v6703_v14 = vld [vmem:[%s9055_s7 + $0x338] sm:$0xff]  ;;  %v6608_v62 = vld [vmem:[%s9055_s7 + $0x40] sm:$0xff] }
 0x4a8   : > { %4931 = vmatpush.bf16.msra.mxu0 %v6703_v14  ;;  %v6633_v14 = vld [vmem:[%s9055_s7 + $0x108] sm:$0xff] }
 0x4ab   : > { %v3589_v60 = vpop.f32.mrf.mxu0 }
 0x4ac   : > { %4932 = vmatpush.bf16.msra.mxu0 %v6702_v3 }
 0x4ae   : > { %v3478_v24 = vpop.f32.mrf.mxu3 }
 0x4af   : > { %v3479_v39 = vadd.f32 %v3478_v24, %v3393_v46  ;;  %v3474_v46 = vadd.f32 %v3473_v53, %v8405_v25  ;;  %v6619_v25 = vld [vmem:[%s9055_s7 + $0x98] sm:$0xff]  ;;  %v6617_v53 = vld [vmem:[%s9055_s7 + $0x88] sm:$0xff] }
 0x4b0   : > { %3960 = vmatpush.bf16.msra.mxu3 %v6619_v25  ;;  %v6631_v24 = vld [vmem:[%s9055_s7 + $0xf8] sm:$0xff]  ;;  %4933 = vmatpush.bf16.msra.mxu0 %v6701_v28 }
 0x4b1   : > { %v8475_v36 = vadd.f32 %v3576_v15, %v3479_v39  ;;  %v3610_v38 = vadd.f32 %v3571_v47, %v3474_v46  ;;  %v6609_v15 = vld [vmem:[%s9055_s7 + $0x48] sm:$0xff]  ;;  %v6647_v39 = vld [vmem:[%s9055_s7 + $0x178] sm:$0xff] }
 0x4b2   : > { %3787 = vmatpush.bf16.msrb.mxu1 %v6609_v15 }
 0x4b3   : > { %v3591_v29 = vpop.f32.mrf.mxu0 }
 0x4b4   : > { %4934 = vmatpush.bf16.msra.mxu0 %v6700_v20 }
 0x4b6   : > { %v8479_v48 = vpop.f32.mrf.mxu3  ;;  %3788 = vmatpush.bf16.msrb.mxu1 %v6608_v62 }
 0x4ba   : > { %4043 = vmatpush.bf16.msra.mxu1 %v6631_v24 }
 0x4bb   : > { %v3594_v27 = vpop.f32.mrf.mxu0 }
 0x4be   : > { %v3483_v22 = vpop.f32.mrf.mxu3  ;;  %4044 = vmatpush.bf16.msra.mxu1 %v6630_v26 }
 0x4bf   : > { %v3484_v7 = vadd.f32 %v3483_v22, %v3398_v17 }
 0x4c1   : > { %v8484_v10 = vadd.f32 %v3581_v12, %v3484_v7 }
 0x4c3   : > { %v3596_v40 = vpop.f32.mrf.mxu0 }
 0x4c6   : > { %v8486_v52 = vpop.f32.mrf.mxu3 }
 0x4ce   : > { %v3488_v16 = vpop.f32.mrf.mxu3 }
 0x4cf   : > { %v3489_v0 = vadd.f32 %v3488_v16, %v3403_v63  ;;  %v6646_v16 = vld [vmem:[%s9055_s7 + $0x170] sm:$0xff] }
 0x4d1   : > { %v8497_v42 = vadd.f32 %v3586_v9, %v3489_v0 }
 0x4d6   : > { %v3491_v59 = vpop.f32.mrf.mxu3 }
 0x4d7   : > { %v3492_v31 = vadd.f32 %v3491_v59, %v3406_v45  ;;  %v6618_v45 = vld [vmem:[%s9055_s7 + $0x90] sm:$0xff] }
 0x4d8   : > { %3961 = vmatpush.bf16.msra.mxu3 %v6618_v45  ;;  %v6698_v45 = vld [vmem:[%s9055_s7 + $0x310] sm:$0xff] }
 0x4d9   : > { %v3617_v44 = vadd.f32 %v3589_v60, %v3492_v31  ;;  %v3599_v60 = vpop.f32.mrf.mxu0  ;;  %v6629_v31 = vld [vmem:[%s9055_s7 + $0xe8] sm:$0xff] }
 0x4da   : > { %4045 = vmatpush.bf16.msra.mxu1 %v6629_v31 }
 0x4db   : > { %v3625_v17 = vmax.f32 %v3609_v61, %v3617_v44 }
 0x4dc   : > { %3962 = vmatpush.bf16.msra.mxu3 %v6617_v53  ;;  %v6625_v53 = vld [vmem:[%s9055_s7 + $0xc8] sm:$0xff] }
 0x4dd   : > { %v3637_v2 = vadd.f32 %v8507_v56, %v3625_v17  ;;  %v6628_v17 = vld [vmem:[%s9055_s7 + $0xe0] sm:$0xff] }
 0x4de   : > { %v3493_v51 = vpop.f32.mrf.mxu3  ;;  %4046 = vmatpush.bf16.msra.mxu1 %v6628_v17 }
 0x4df   : > { %v3494_v18 = vadd.f32 %v3493_v51, %v8430_v41  ;;  %v3645_v55 = vmax.f32 %v3637_v2, 0.0  ;;  %v6635_v2 = vld [vmem:[%s9055_s7 + $0x118] sm:$0xff] }
 0x4e0   : > { %3963 = vmatpush.bf16.msra.mxu3 %v6616_v5 }
 0x4e1   : > { %v3618_v58 = vadd.f32 %v3591_v29, %v3494_v18  ;;  %v6644_v18 = vld [vmem:[%s9055_s7 + $0x160] sm:$0xff] }
 0x4e3   : > { %v3626_v21 = vmax.f32 %v3610_v38, %v3618_v58  ;;  %v6627_v58 = vld [vmem:[%s9055_s7 + $0xd8] sm:$0xff] }
 0x4e4   : > { %4239 = vmatpush.bf16.msrb.mxu3 %v6647_v39  ;;  %4047 = vmatpush.bf16.msra.mxu1 %v6627_v58 }
 0x4e5   : > { %v3638_v63 = vadd.f32 %v8507_v56, %v3626_v21  ;;  %v6643_v21 = vld [vmem:[%s9055_s7 + $0x158] sm:$0xff] }
 0x4e6   : > { %v3496_v23 = vpop.f32.mrf.mxu3 }
 0x4e7   : > { %v3646_v41 = vmax.f32 %v3638_v63, 0.0  ;;  %v3497_v54 = vadd.f32 %v3496_v23, %v8437_v35  ;;  %v3611_v35 = vadd.f32 %v8462_v19, %v3477_v43  ;;  %v6639_v19 = vld [vmem:[%s9055_s7 + $0x138] sm:$0xff] }
 0x4e8   : > { %4151 = vmatpush.bf16.msra.mxu2 %v6639_v19  ;;  %4240 = vmatpush.bf16.msrb.mxu3 %v6646_v16 }
 0x4e9   : > { %v6737_v47 = vpack.c.bf16 %v3646_v41, %v3645_v55  ;;  %v3619_v34 = vadd.f32 %v3594_v27, %v3497_v54  ;;  %v3482_v27 = vadd.f32 %v8479_v48, %v8417_v32  ;;  %v6699_v32 = vld [vmem:[%s9055_s7 + $0x318] sm:$0xff]  ;;  %v3601_v48 = vpop.f32.mrf.mxu0  ;;  %v6634_v54 = vld [vmem:[%s9055_s7 + $0x110] sm:$0xff] }
 0x4ea   : > { %4935 = vmatpush.bf16.msra.mxu0 %v6699_v32 }
 0x4eb   : > { %6738 = vst [vmem:[#allocation4] sm:$0xff] %v6737_v47   ;;  %v3627_v22 = vmax.f32 %v3611_v35, %v3619_v34  ;;  %v3613_v25 = vadd.f32 %v8467_v11, %v3482_v27  ;;  %v6626_v11 = vld [vmem:[%s9055_s7 + $0xd0] sm:$0xff]  ;;  %v6641_v35 = vld [vmem:[%s9055_s7 + $0x148] sm:$0xff] }
 0x4ec   : > { %4048 = vmatpush.bf16.msra.mxu1 %v6626_v11 }
 0x4ed   : > { %v3639_v0 = vadd.f32 %v8507_v56, %v3627_v22  ;;  %v6624_v22 = vld [vmem:[%s9055_s7 + $0xc0] sm:$0xff] }
 0x4ee   : > { %v3498_v12 = vpop.f32.mrf.mxu3  ;;  %4936 = vmatpush.bf16.msra.mxu0 %v6698_v45 }
 0x4ef   : > { %v3499_v7 = vadd.f32 %v3498_v12, %v8442_v49  ;;  %v6638_v49 = vld [vmem:[%s9055_s7 + $0x130] sm:$0xff]  ;;  %v3647_v44 = vmax.f32 %v3639_v0, 0.0  ;;  %v6696_v12 = vld [vmem:[%s9055_s7 + $0x300] sm:$0xff] }
 0x4f0   : > { %4152 = vmatpush.bf16.msra.mxu2 %v6638_v49  ;;  %4049 = vmatpush.bf16.msra.mxu1 %v6625_v53 }
 0x4f1   : > { %v3620_v9 = vadd.f32 %v3596_v40, %v3499_v7  ;;  %v6642_v40 = vld [vmem:[%s9055_s7 + $0x150] sm:$0xff]  ;;  %v3487_v7 = vadd.f32 %v8486_v52, %v8423_v37 }
 0x4f2   : > { %v4837_v43 = vld [vmem:[#allocation4 + $0x4] sm:$0x4]  ;;  %v5033_v27 = vld [vmem:[#allocation4 + $0x4] sm:$0x8] }
 0x4f3   : > { %v3628_v4 = vmax.f32 %v8475_v36, %v3620_v9  ;;  %v6645_v36 = vld [vmem:[%s9055_s7 + $0x168] sm:$0xff]  ;;  %v4862_v62 = vunpack.c.l.b16 %v4837_v43  ;;  %v6632_v9 = vld [vmem:[%s9055_s7 + $0x100] sm:$0xff]  ;;  %v3615_v37 = vadd.f32 %v8477_v33, %v3487_v7  ;;  %v5058_v58 = vunpack.c.l.b16 %v5033_v27 }
 0x4f4   : > { %4153 = vmatpush.bf16.msra.mxu2 %v6637_v13  ;;  %4241 = vmatpush.bf16.msrb.mxu3 %v6645_v36 }
 0x4f5   : > { %v3640_v29 = vadd.f32 %v8507_v56, %v3628_v4  ;;  %4050 = vmatpush.bf16.msra.mxu1 %v6624_v22 }
 0x4f6   : > { %v3501_v59 = vpop.f32.mrf.mxu3 }
 0x4f7   : > { %v3648_v61 = vmax.f32 %v3640_v29, 0.0  ;;  %v3502_v46 = vadd.f32 %v3501_v59, %v8446_v1  ;;  %v6636_v1 = vld [vmem:[%s9055_s7 + $0x120] sm:$0xff] }
 0x4f8   : > { %4154 = vmatpush.bf16.msra.mxu2 %v6636_v1  ;;  %4242 = vmatpush.bf16.msrb.mxu3 %v6644_v18 }
 0x4f9   : > { %v6742_v51 = vpack.c.bf16 %v3648_v61, %v3647_v44  ;;  %v3621_v38 = vadd.f32 %v3599_v60, %v3502_v46  ;;  %v6640_v60 = vld [vmem:[%s9055_s7 + $0x140] sm:$0xff] }
 0x4fa   : > { %v3669_v61 = vld [vmem:[#allocation4] sm:$0x1]  ;;  %v3863_v46 = vld [vmem:[#allocation4] sm:$0x2] }
 0x4fb   : > { %6754 = vst [vmem:[#allocation4 + $0x8] sm:$0xff] %v6742_v51   ;;  %v3629_v23 = vmax.f32 %v3613_v25, %v3621_v38  ;;  %v3710_v18 = vunpack.c.l.b16 %v3669_v61 }
 0x4fc   : > { %4155 = vmatpush.bf16.msra.mxu2 %v6635_v2  ;;  %4243 = vmatpush.bf16.msrb.mxu3 %v6643_v21 }
 0x4fd   : > { %v3641_v30 = vadd.f32 %v8507_v56, %v3629_v23 }
 0x4fe   : > { %v3503_v63 = vpop.f32.mrf.mxu3 }
 0x4ff   : > { %v3504_v55 = vadd.f32 %v3503_v63, %v8448_v6  ;;  %v6697_v6 = vld [vmem:[%s9055_s7 + $0x308] sm:$0xff]  ;;  %v3649_v24 = vmax.f32 %v3641_v30, 0.0 }
 0x500   : > { %4156 = vmatpush.bf16.msra.mxu2 %v6634_v54  ;;  %4244 = vmatpush.bf16.msrb.mxu3 %v6642_v40 }
 0x501   : > { %v3622_v41 = vadd.f32 %v3601_v48, %v3504_v55  ;;  %4937 = vmatpush.bf16.msra.mxu0 %v6697_v6  ;;  %v3888_v48 = vunpack.c.l.b16 %v3863_v46  ;;  %v5784_v55 = vunpack.i.l.s16 %v3710_v18 }
 0x502   : > { %v4838_v47 = vld [vmem:[#allocation4 + $0xc] sm:$0x4]  ;;  %v5034_v36 = vld [vmem:[#allocation4 + $0xc] sm:$0x8]  ;;  %v3670_v17 = vld [vmem:[#allocation4 + $0x8] sm:$0x1] }
 0x503   : > { %v3630_v15 = vmax.f32 %v8484_v10, %v3622_v41  ;;  %v4863_v57 = vunpack.c.l.b16 %v4838_v47  ;;  %v3604_v10 = vpop.f32.mrf.mxu0  ;;  %v5059_v1 = vunpack.c.l.b16 %v5034_v36  ;;  %v3711_v25 = vunpack.c.l.b16 %v3670_v17 }
 0x504   : > { %4157 = vmatpush.bf16.msra.mxu2 %v6633_v14  ;;  %4245 = vmatpush.bf16.msrb.mxu3 %v6641_v35  ;;  %v6468_v41 = vunpack.i.l.s16 %v5058_v58  ;;  %v3722_v53 = vrot.slane %v5784_v55, 1 }
 0x505   : > { %v3642_v34 = vadd.f32 %v8507_v56, %v3630_v15  ;;  %v8652_v26 = vunpack.i.l.s16 %v4863_v57  ;;  %4938 = vmatpush.bf16.msra.mxu0 %v6696_v12  ;;  %v6469_v23 = vunpack.i.l.s16 %v5059_v1  ;;  %v5785_v40 = vunpack.i.l.s16 %v3711_v25 }
 0x506   : > { %v3506_v5 = vpop.f32.mrf.mxu3  ;;  %v5158_v12 = vrot.slane %v6468_v41, 7 }
 0x507   : > { %v3650_v19 = vmax.f32 %v3642_v34, 0.0  ;;  %v3507_v39 = vadd.f32 %v3506_v5, %v8455_v50  ;;  %v8650_v50 = vunpack.i.l.s16 %v4862_v62  ;;  %v4963_v16 = vrot.slane %v8652_v26, 4 }
 0x508   : > { %4158 = vmatpush.bf16.msra.mxu2 %v6632_v9  ;;  %4246 = vmatpush.bf16.msrb.mxu3 %v6640_v60  ;;  %v5071_v30 = vrot.slane %v6469_v23, 5  ;;  %v5159_v15 = vrot.slane %v6469_v23, 6  ;;  %v5070_v5 = vrot.slane %v6468_v41, 6  ;;  %v4875_v9 = vrot.slane %v8652_v26, 3 }
 0x509   : > { %v6747_v3 = vpack.c.bf16 %v3650_v19, %v3649_v24  ;;  %v3623_v49 = vadd.f32 %v3604_v10, %v3507_v39  ;;  %v4962_v52 = vrot.slane %v8650_v50, 5  ;;  %v4874_v57 = vrot.slane %v8650_v50, 4  ;;  %v8674_v10 = vld [vmem:[#allocation4] sm:$0x4]  ;;  %v4058_v39 = vld [vmem:[#allocation4 + $0x8] sm:$0x4] }
 0x50a   : > { %v3794_v19 = vrot.slane %v5785_v40, 7  ;;  %v5072_v60 = vsel %vm3723_vm2, %v5071_v30, %v5070_v5  ;;  %v6671_v30 = vld [vmem:[%s9055_s7 + $0x238] sm:$0xff]  ;;  %v6662_v5 = vld [vmem:[%s9055_s7 + $0x1f0] sm:$0xff] }
 0x50b   : > { %6755 = vst [vmem:[#allocation4 + $0x10] sm:$0xff] %v6747_v3   ;;  %v3631_v4 = vmax.f32 %v3615_v37, %v3623_v49  ;;  %v4964_v29 = vsel %vm3723_vm2, %v4963_v16, %v4962_v52  ;;  %v3606_v59 = vpop.f32.mrf.mxu0  ;;  %v5160_v49 = vsel %vm3723_vm2, %v5159_v15, %v5158_v12  ;;  %v4876_v18 = vsel %vm3723_vm2, %v4875_v9, %v4874_v57  ;;  %v6670_v12 = vld [vmem:[%s9055_s7 + $0x230] sm:$0xff]  ;;  %v6653_v9 = vld [vmem:[%s9055_s7 + $0x1a8] sm:$0xff] }
 0x50c   : > { %v3795_v17 = vsel %vm3723_vm2, %v3794_v19, %v5784_v55 }
 0x50d   : > { %v3643_v44 = vadd.f32 %v8507_v56, %v3631_v4 }
 0x50e   : > { %v3508_v0 = vpop.f32.mrf.mxu3 }
 0x50f   : > { %v3509_v28 = vadd.f32 %v3508_v0, %v8460_v8  ;;  %v3864_v8 = vld [vmem:[#allocation4 + $0x8] sm:$0x2]  ;;  %v3651_v38 = vmax.f32 %v3643_v44, 0.0  ;;  %v4082_v0 = vunpack.c.l.b16 %v8674_v10 }
 0x511   : > { %v3624_v31 = vadd.f32 %v3606_v59, %v3509_v28 }
 0x512   : > { %v4839_v13 = vld [vmem:[#allocation4 + $0x14] sm:$0x4]  ;;  %v3671_v63 = vld [vmem:[#allocation4 + $0x10] sm:$0x1]  ;;  %v5035_v45 = vld [vmem:[#allocation4 + $0x14] sm:$0x8] }
 0x513   : > { %v3632_v33 = vmax.f32 %v8497_v42, %v3624_v31  ;;  %v4864_v20 = vunpack.c.l.b16 %v4839_v13  ;;  %v3889_v42 = vunpack.c.l.b16 %v3864_v8  ;;  %v3865_v11 = vld [vmem:[#allocation4 + $0x10] sm:$0x2]  ;;  %v3712_v54 = vunpack.c.l.b16 %v3671_v63  ;;  %v4059_v58 = vld [vmem:[#allocation4 + $0x10] sm:$0x4] }
 0x514   : > { %v5060_v43 = vunpack.c.l.b16 %v5035_v45  ;;  %v3890_v34 = vunpack.c.l.b16 %v3865_v11  ;;  %v4083_v31 = vunpack.c.l.b16 %v4058_v39  ;;  %v3724_v13 = vsel %vm3723_vm2, %v5785_v40, %v3722_v53  ;;  %v6655_v11 = vld [vmem:[%s9055_s7 + $0x1b8] sm:$0xff] }
 0x515   : > { %v3644_v51 = vadd.f32 %v8507_v56, %v3632_v33  ;;  %v8662_v2 = vunpack.i.l.s16 %v4864_v20  ;;  %v8664_v56 = vunpack.i.l.s16 %v3888_v48  ;;  %v8667_v47 = vunpack.i.l.s16 %v3889_v42 }
 0x516   : > { %v6470_v35 = vunpack.i.l.s16 %v5060_v43  ;;  %v5786_v24 = vunpack.i.l.s16 %v3712_v54  ;;  %v8680_v50 = vunpack.i.l.s16 %v3890_v34  ;;  %v6663_v43 = vld [vmem:[%s9055_s7 + $0x1f8] sm:$0xff]  ;;  %v4084_v15 = vunpack.c.l.b16 %v4059_v58 }
 0x517   : > { %v3652_v32 = vmax.f32 %v3644_v51, 0.0  ;;  %v4965_v6 = vrot.slane %v8662_v2, 3  ;;  %v3900_v62 = vrot.slane %v8664_v56, 2  ;;  %v3901_v3 = vrot.slane %v8667_v47, 1 }
 0x518   : > { %v5073_v22 = vrot.slane %v6470_v35, 4  ;;  %v5161_v7 = vrot.slane %v6470_v35, 5  ;;  %v3725_v36 = vrot.slane %v5786_v24, 7  ;;  %v3796_v44 = vrot.slane %v5786_v24, 6  ;;  %v6654_v35 = vld [vmem:[%s9055_s7 + $0x1b0] sm:$0xff] }
 0x519   : > { %v6752_v21 = vpack.c.bf16 %v3652_v32, %v3651_v38  ;;  %v8670_v14 = vsel %vm3726_vm3, %v4965_v6, %v4964_v29  ;;  %v4877_v33 = vrot.slane %v8662_v2, 2  ;;  %v3902_v20 = vsel %vm3723_vm2, %v3901_v3, %v3900_v62 }
 0x51a   : > { %v8684_v4 = vsel %vm3726_vm3, %v5073_v22, %v5072_v60  ;;  %v8687_v28 = vsel %vm3726_vm3, %v5161_v7, %v5160_v49  ;;  %v3903_v1 = vsel %vm3726_vm3, %v8680_v50, %v3902_v20  ;;  %v3727_v25 = vsel %vm3726_vm3, %v3725_v36, %v3724_v13 }
 0x51b   : > { %6756 = vst [vmem:[#allocation4 + $0x18] sm:$0xff] %v6752_v21   ;;  %v3797_v2 = vsel %vm3726_vm3, %v3796_v44, %v3795_v17  ;;  %v4878_v21 = vsel %vm3726_vm3, %v4877_v33, %v4876_v18  ;;  %v5969_v62 = vunpack.i.l.s16 %v4083_v31  ;;  %v5968_v24 = vunpack.i.l.s16 %v4082_v0 }
 0x51c   : > { %v5970_v19 = vunpack.i.l.s16 %v4084_v15  ;;  %v3987_v60 = vrot.slane %v8664_v56, 3  ;;  %v3988_v49 = vrot.slane %v8667_v47, 2 }
 0x51d   : > { %v4094_v0 = vrot.slane %v5968_v24, 4  ;;  %v4182_v13 = vrot.slane %v5968_v24, 5 }
 0x51e   : > { %v4185_v56 = vrot.slane %v5970_v19, 3  ;;  %v3989_v44 = vsel %vm3723_vm2, %v3988_v49, %v3987_v60 }
 0x522   : > { %v3672_v37 = vld [vmem:[#allocation4 + $0x18] sm:$0x1]  ;;  %v3866_v52 = vld [vmem:[#allocation4 + $0x18] sm:$0x2]  ;;  %v4840_v16 = vld [vmem:[#allocation4 + $0x1c] sm:$0x4] }
 0x523   : > { %v3713_v29 = vunpack.c.l.b16 %v3672_v37  ;;  %v3891_v59 = vunpack.c.l.b16 %v3866_v52  ;;  %v4865_v26 = vunpack.c.l.b16 %v4840_v16  ;;  %v5036_v51 = vld [vmem:[#allocation4 + $0x1c] sm:$0x8]  ;;  %v4060_v63 = vld [vmem:[#allocation4 + $0x18] sm:$0x4]  ;;  %v4095_v37 = vrot.slane %v5969_v62, 3  ;;  %v6661_v52 = vld [vmem:[%s9055_s7 + $0x1e8] sm:$0xff] }
 0x524   : > { %v5061_v42 = vunpack.c.l.b16 %v5036_v51  ;;  %v4085_v34 = vunpack.c.l.b16 %v4060_v63  ;;  %v3990_v16 = vrot.slane %v8680_v50, 1  ;;  %v6652_v50 = vld [vmem:[%s9055_s7 + $0x1a0] sm:$0xff]  ;;  %v4254_v51 = vld [vmem:[#allocation4 + $0x8] sm:$0x8]  ;;  %v4256_v58 = vld [vmem:[#allocation4 + $0x18] sm:$0x8] }
 0x525   : > { %v5787_v61 = vunpack.i.l.s16 %v3713_v29  ;;  %v8691_v46 = vunpack.i.l.s16 %v3891_v59  ;;  %v6371_v27 = vunpack.i.l.s16 %v4865_v26  ;;  %v4097_v29 = vrot.slane %v5970_v19, 2  ;;  %v4452_v63 = vld [vmem:[#allocation4 + $0x1c] sm:$0x1] }
 0x526   : > { %v6471_v10 = vunpack.i.l.s16 %v5061_v42  ;;  %v5971_v39 = vunpack.i.l.s16 %v4085_v34  ;;  %v4183_v59 = vrot.slane %v5969_v62, 4  ;;  %v4096_v33 = vsel %vm3723_vm2, %v4095_v37, %v4094_v0  ;;  %v6658_v34 = vld [vmem:[%s9055_s7 + $0x1d0] sm:$0xff] }
 0x527   : > { %v3728_v8 = vrot.slane %v5787_v61, 6  ;;  %v3798_v38 = vrot.slane %v5787_v61, 5  ;;  %v3904_v32 = vrot.slane %v8691_v46, 7  ;;  %v4879_v48 = vrot.slane %v6371_v27, 1 }
 0x528   : > { %v4967_v57 = vrot.slane %v6371_v27, 2  ;;  %v5075_v7 = vrot.slane %v6471_v10, 3  ;;  %v5163_v3 = vrot.slane %v6471_v10, 4  ;;  %v4099_v26 = vrot.slane %v5971_v39, 1 }
 0x529   : > { %v3730_v45 = vsel %vm3729_vm4, %v3728_v8, %v3727_v25  ;;  %v3799_v23 = vsel %vm3729_vm4, %v3798_v38, %v3797_v2  ;;  %v3905_v55 = vsel %vm3729_vm4, %v3904_v32, %v3903_v1  ;;  %v4880_v41 = vsel %vm3729_vm4, %v4879_v48, %v4878_v21  ;;  %v4255_v8 = vld [vmem:[#allocation4 + $0x10] sm:$0x8]  ;;  %v4450_v38 = vld [vmem:[#allocation4 + $0xc] sm:$0x1]  ;;  %v4253_v48 = vld [vmem:[#allocation4] sm:$0x8] }
 0x52a   : > { %v3731_v54 = vpack.c.b16 %v3730_v45, %v3730_v45  ;;  %v3800_v40 = vpack.c.b16 %v3799_v23, %v3799_v23  ;;  %v3906_v6 = vpack.c.b16 %v3905_v55, %v3905_v55  ;;  %v4881_v53 = vpack.c.b16 %v4880_v41, %v4880_v41  ;;  %v4451_v25 = vld [vmem:[#allocation4 + $0x14] sm:$0x1]  ;;  %v6651_v2 = vld [vmem:[%s9055_s7 + $0x198] sm:$0xff] }
 0x52b   : > { %v8726_v22 = vsel %vm3729_vm4, %v4967_v57, %v8670_v14  ;;  %v6669_v14 = vld [vmem:[%s9055_s7 + $0x228] sm:$0xff]  ;;  %v8742_v47 = vsel %vm3729_vm4, %v5075_v7, %v8684_v4  ;;  %v8746_v31 = vsel %vm3729_vm4, %v5163_v3, %v8687_v28  ;;  %v4187_v36 = vrot.slane %v5971_v39, 2  ;;  %v6660_v4 = vld [vmem:[%s9055_s7 + $0x1e0] sm:$0xff]  ;;  %v6659_v45 = vld [vmem:[%s9055_s7 + $0x1d8] sm:$0xff] }
 0x52c   : > { %3789 = vmatmul.bf16.vlgmr.msrb.gmra.mxu1 %v3731_v54  ;;  %3858 = vmatmul.bf16.vlgmr.msrb.gmra.mxu2 %v3800_v40  ;;  %v6668_v28 = vld [vmem:[%s9055_s7 + $0x220] sm:$0xff]  ;;  %v3991_v61 = vsel %vm3726_vm3, %v3990_v16, %v3989_v44  ;;  %v4098_v20 = vsel %vm3726_vm3, %v4097_v29, %v4096_v33  ;;  %v4184_v27 = vsel %vm3723_vm2, %v4183_v59, %v4182_v13  ;;  %v4279_v21 = vunpack.c.l.b16 %v4254_v51  ;;  %v6667_v23 = vld [vmem:[%s9055_s7 + $0x218] sm:$0xff]  ;;  %v6649_v39 = vld [vmem:[%s9055_s7 + $0x188] sm:$0xff] }
 0x52d   : > { %3964 = vmatmul.bf16.vlgmr.msra.gmra.mxu3 %v3906_v6  ;;  %4347 = vmatpush.bf16.msrb.mxu1 %v6655_v11  ;;  %v3992_v17 = vsel %vm3729_vm4, %v8691_v46, %v3991_v61  ;;  %v4100_v1 = vsel %vm3729_vm4, %v4099_v26, %v4098_v20  ;;  %v4186_v18 = vsel %vm3726_vm3, %v4185_v56, %v4184_v27  ;;  %v4280_v55 = vunpack.c.l.b16 %v4255_v8  ;;  %v6657_v3 = vld [vmem:[%s9055_s7 + $0x1c8] sm:$0xff]  ;;  %v6648_v13 = vld [vmem:[%s9055_s7 + $0x180] sm:$0xff]  ;;  %v6679_v61 = vld [vmem:[%s9055_s7 + $0x278] sm:$0xff] }
 0x52e   : > { %4435 = vmatpush.bf16.msrb.mxu2 %v6663_v43  ;;  %4542 = vmatpush.bf16.msra.mxu3 %v6671_v30  ;;  %v4188_v32 = vsel %vm3729_vm4, %v4187_v36, %v4186_v18  ;;  %v3993_v46 = vpack.c.b16 %v3992_v17, %v3992_v17  ;;  %v4101_v42 = vpack.c.b16 %v4100_v1, %v4100_v1  ;;  %v4475_v11 = vunpack.c.l.b16 %v4450_v38  ;;  %v6650_v30 = vld [vmem:[%s9055_s7 + $0x190] sm:$0xff]  ;;  %v6664_v44 = vld [vmem:[%s9055_s7 + $0x200] sm:$0xff]  ;;  %v6687_v20 = vld [vmem:[%s9055_s7 + $0x2b8] sm:$0xff] }
 0x52f   : > { %4939 = vmatmul.bf16.vlgmr.msra.gmra.mxu0 %v4881_v53  ;;  %v4189_v41 = vpack.c.b16 %v4188_v32, %v4188_v32  ;;  %v4278_v54 = vunpack.c.l.b16 %v4253_v48  ;;  %v4281_v40 = vunpack.c.l.b16 %v4256_v58  ;;  %v4476_v6 = vunpack.c.l.b16 %v4451_v25  ;;  %v4449_v53 = vld [vmem:[#allocation4 + $0x4] sm:$0x1]  ;;  %v6695_v1 = vld [vmem:[%s9055_s7 + $0x2f8] sm:$0xff]  ;;  %v6678_v58 = vld [vmem:[%s9055_s7 + $0x270] sm:$0xff] }
 0x530   : > { %v4477_v43 = vunpack.c.l.b16 %v4452_v63  ;;  %v6069_v15 = vunpack.i.l.s16 %v4279_v21  ;;  %v6070_v62 = vunpack.i.l.s16 %v4280_v55  ;;  %v8785_v57 = vunpack.i.l.s16 %v4475_v11  ;;  %v6686_v25 = vld [vmem:[%s9055_s7 + $0x2b0] sm:$0xff]  ;;  %v6677_v21 = vld [vmem:[%s9055_s7 + $0x268] sm:$0xff]  ;;  %v4643_v11 = vld [vmem:[#allocation4 + $0x4] sm:$0x2] }
 0x531   : > { %4348 = vmatpush.bf16.msrb.mxu1 %v6654_v35  ;;  %v6666_v35 = vld [vmem:[%s9055_s7 + $0x210] sm:$0xff]  ;;  %v6068_v10 = vunpack.i.l.s16 %v4278_v54  ;;  %v4474_v24 = vunpack.c.l.b16 %v4449_v53  ;;  %v6685_v63 = vld [vmem:[%s9055_s7 + $0x2a8] sm:$0xff]  ;;  %v4646_v54 = vld [vmem:[#allocation4 + $0x1c] sm:$0x2] }
 0x532   : > { %4436 = vmatpush.bf16.msrb.mxu2 %v6662_v5  ;;  %4543 = vmatpush.bf16.msra.mxu3 %v6670_v12  ;;  %v6071_v5 = vunpack.i.l.s16 %v4281_v40  ;;  %v8787_v12 = vunpack.i.l.s16 %v4476_v6  ;;  %v8789_v19 = vunpack.i.l.s16 %v4477_v43  ;;  %v4291_v7 = vrot.slane %v6069_v15, 5  ;;  %v4644_v55 = vld [vmem:[#allocation4 + $0xc] sm:$0x2]  ;;  %v6675_v40 = vld [vmem:[%s9055_s7 + $0x258] sm:$0xff] }
 0x533   : > { %v4293_v60 = vrot.slane %v6070_v62, 4  ;;  %v4379_v49 = vrot.slane %v6069_v15, 6  ;;  %v4486_v37 = vrot.slane %v8785_v57, 7  ;;  %v4381_v16 = vrot.slane %v6070_v62, 5  ;;  %v6683_v6 = vld [vmem:[%s9055_s7 + $0x298] sm:$0xff]  ;;  %v6682_v62 = vld [vmem:[%s9055_s7 + $0x290] sm:$0xff] }
 0x534   : > { %v4488_v0 = vrot.slane %v8787_v12, 6  ;;  %v4378_v29 = vrot.slane %v6068_v10, 7  ;;  %v4383_v59 = vrot.slane %v6071_v5, 4  ;;  %v8802_v26 = vunpack.i.l.s16 %v4474_v24 }
 0x535   : > { %4349 = vmatpush.bf16.msrb.mxu1 %v6653_v9  ;;  %v6665_v9 = vld [vmem:[%s9055_s7 + $0x208] sm:$0xff]  ;;  %v4490_v56 = vrot.slane %v8789_v19, 5  ;;  %v4669_v43 = vunpack.c.l.b16 %v4644_v55  ;;  %v4668_v15 = vunpack.c.l.b16 %v4643_v11  ;;  %v6714_v55 = vld [vmem:[%s9055_s7 + $0x390] sm:$0xff] }
 0x536   : > { %4437 = vmatpush.bf16.msrb.mxu2 %v6661_v52  ;;  %4544 = vmatpush.bf16.msra.mxu3 %v6669_v14  ;;  %v4290_v52 = vrot.slane %v6068_v10, 6  ;;  %v4295_v14 = vrot.slane %v6071_v5, 3  ;;  %v6690_v5 = vld [vmem:[%s9055_s7 + $0x2d0] sm:$0xff] }
 0x537   : > { %v6269_v10 = vunpack.i.l.s16 %v4669_v43  ;;  %v6268_v24 = vunpack.i.l.s16 %v4668_v15  ;;  %v6722_v11 = vld [vmem:[%s9055_s7 + $0x3d0] sm:$0xff]  ;;  %v6712_v43 = vld [vmem:[%s9055_s7 + $0x380] sm:$0xff]  ;;  %v4969_v15 = vpack.c.b16 %v8726_v22, %v8726_v22 }
 0x538   : > { %v4292_v36 = vsel %vm3723_vm2, %v4291_v7, %v4290_v52  ;;  %v4575_v52 = vrot.slane %v8787_v12, 7 }
 0x539   : > { %4350 = vmatpush.bf16.msrb.mxu1 %v6652_v50  ;;  %v6656_v50 = vld [vmem:[%s9055_s7 + $0x1c0] sm:$0xff]  ;;  %v4294_v33 = vsel %vm3726_vm3, %v4293_v60, %v4292_v36  ;;  %v4681_v60 = vrot.slane %v6269_v10, 1 }
 0x53a   : > { %4438 = vmatpush.bf16.msrb.mxu2 %v6660_v4  ;;  %4545 = vmatpush.bf16.msra.mxu3 %v6668_v28  ;;  %v4380_v4 = vsel %vm3723_vm2, %v4379_v49, %v4378_v29  ;;  %v4487_v28 = vsel %vm3723_vm2, %v4486_v37, %v8802_v26  ;;  %v4296_v27 = vsel %vm3729_vm4, %v4295_v14, %v4294_v33  ;;  %v6689_v49 = vld [vmem:[%s9055_s7 + $0x2c8] sm:$0xff]  ;;  %v4573_v37 = vrot.slane %v8802_v26, 1  ;;  %v6680_v36 = vld [vmem:[%s9055_s7 + $0x280] sm:$0xff] }
 0x53b   : > { %v4382_v51 = vsel %vm3726_vm3, %v4381_v16, %v4380_v4  ;;  %v4489_v17 = vsel %vm3726_vm3, %v4488_v0, %v4487_v28  ;;  %v4297_v38 = vpack.c.b16 %v4296_v27, %v4296_v27  ;;  %v4768_v14 = vrot.slane %v6269_v10, 2  ;;  %v6727_v28 = vld [vmem:[%s9055_s7 + $0x3f8] sm:$0xff] }
 0x53c   : > { %4051 = vmatmul.bf16.vlgmr.msra.gmra.mxu1 %v3993_v46  ;;  %4159 = vmatmul.bf16.vlgmr.msra.gmra.mxu2 %v4101_v42  ;;  %v4384_v18 = vsel %vm3729_vm4, %v4383_v59, %v4382_v51  ;;  %v4491_v8 = vsel %vm3729_vm4, %v4490_v56, %v4489_v17  ;;  %v6693_v46 = vld [vmem:[%s9055_s7 + $0x2e8] sm:$0xff]  ;;  %v6676_v42 = vld [vmem:[%s9055_s7 + $0x260] sm:$0xff]  ;;  %v4577_v16 = vrot.slane %v8789_v19, 6  ;;  %v4680_v0 = vrot.slane %v6268_v24, 2 }
 0x53d   : > { %4247 = vmatmul.bf16.vlgmr.msrb.gmra.mxu3 %v4189_v41  ;;  %4351 = vmatpush.bf16.msrb.mxu1 %v6651_v2  ;;  %v4385_v32 = vpack.c.b16 %v4384_v18, %v4384_v18  ;;  %v4492_v48 = vpack.c.b16 %v4491_v8, %v4491_v8  ;;  %v6694_v2 = vld [vmem:[%s9055_s7 + $0x2f0] sm:$0xff]  ;;  %v4767_v56 = vrot.slane %v6268_v24, 3  ;;  %v4574_v12 = vsel %vm3723_vm2, %v8785_v57, %v4573_v37  ;;  %v6688_v19 = vld [vmem:[%s9055_s7 + $0x2c0] sm:$0xff]  ;;  %v6719_v57 = vld [vmem:[%s9055_s7 + $0x3b8] sm:$0xff] }
 0x53e   : > { %4439 = vmatpush.bf16.msrb.mxu2 %v6659_v45  ;;  %4546 = vmatpush.bf16.msra.mxu3 %v6667_v23  ;;  %v6684_v45 = vld [vmem:[%s9055_s7 + $0x2a0] sm:$0xff]  ;;  %v4645_v41 = vld [vmem:[#allocation4 + $0x14] sm:$0x2]  ;;  %v4682_v26 = vsel %vm3723_vm2, %v4681_v60, %v4680_v0 }
 0x53f   : > { %v6692_v23 = vld [vmem:[%s9055_s7 + $0x2e0] sm:$0xff]  ;;  %v4670_v53 = vunpack.c.l.b16 %v4645_v41  ;;  %v4769_v4 = vsel %vm3723_vm2, %v4768_v14, %v4767_v56  ;;  %v6710_v18 = vld [vmem:[%s9055_s7 + $0x370] sm:$0xff]  ;;  %v6705_v41 = vld [vmem:[%s9055_s7 + $0x348] sm:$0xff] }
 0x541   : > { %4352 = vmatpush.bf16.msrb.mxu1 %v6650_v30  ;;  %v6691_v30 = vld [vmem:[%s9055_s7 + $0x2d8] sm:$0xff] }
 0x542   : > { %4440 = vmatpush.bf16.msrb.mxu2 %v6658_v34  ;;  %4547 = vmatpush.bf16.msra.mxu3 %v6666_v35  ;;  %v4671_v34 = vunpack.c.l.b16 %v4646_v54  ;;  %v6674_v35 = vld [vmem:[%s9055_s7 + $0x250] sm:$0xff]  ;;  %v6713_v54 = vld [vmem:[%s9055_s7 + $0x388] sm:$0xff] }
 0x544   : > { %v6271_v7 = vunpack.i.l.s16 %v4671_v34  ;;  %v5165_v34 = vpack.c.b16 %v8746_v31, %v8746_v31 }
 0x545   : > { %4353 = vmatpush.bf16.msrb.mxu1 %v6649_v39  ;;  %v6270_v39 = vunpack.i.l.s16 %v4670_v53  ;;  %v5077_v53 = vpack.c.b16 %v8742_v47, %v8742_v47 }
 0x546   : > { %4441 = vmatpush.bf16.msrb.mxu2 %v6657_v3  ;;  %4548 = vmatpush.bf16.msra.mxu3 %v6665_v9  ;;  %v6673_v3 = vld [vmem:[%s9055_s7 + $0x248] sm:$0xff]  ;;  %v4684_v29 = vrot.slane %v6271_v7, 7 }
 0x547   : > { %v6681_v9 = vld [vmem:[%s9055_s7 + $0x288] sm:$0xff]  ;;  %v4770_v59 = vrot.slane %v6270_v39, 1  ;;  %v4683_v33 = vsel %vm3726_vm3, %v6270_v39, %v4682_v26 }
 0x549   : > { %4354 = vmatpush.bf16.msrb.mxu1 %v6648_v13  ;;  %v6672_v13 = vld [vmem:[%s9055_s7 + $0x240] sm:$0xff]  ;;  %v4771_v27 = vsel %vm3726_vm3, %v4770_v59, %v4769_v4 }
 0x54a   : > { %4442 = vmatpush.bf16.msrb.mxu2 %v6656_v50  ;;  %4549 = vmatpush.bf16.msra.mxu3 %v6664_v44  ;;  %v6711_v50 = vld [vmem:[%s9055_s7 + $0x378] sm:$0xff]  ;;  %v4576_v44 = vsel %vm3726_vm3, %v4575_v52, %v4574_v12  ;;  %v4772_v51 = vsel %vm3729_vm4, %v6271_v7, %v4771_v27 }
 0x54b   : > { %v4773_v8 = vpack.c.b16 %v4772_v51, %v4772_v51 }
 0x54c   : > { %4355 = vmatmul.bf16.vlgmr.msrb.gmra.mxu1 %v4297_v38  ;;  %v6718_v38 = vld [vmem:[%s9055_s7 + $0x3b0] sm:$0xff] }
 0x54d   : > { %4629 = vmatpush.bf16.msra.mxu1 %v6679_v61  ;;  %4443 = vmatmul.bf16.vlgmr.msrb.gmra.mxu2 %v4385_v32  ;;  %v4578_v61 = vsel %vm3729_vm4, %v4577_v16, %v4576_v44  ;;  %v6726_v32 = vld [vmem:[%s9055_s7 + $0x3f0] sm:$0xff] }
 0x54e   : > { %4736 = vmatpush.bf16.msra.mxu2 %v6687_v20  ;;  %4823 = vmatpush.bf16.msrb.mxu3 %v6695_v1  ;;  %v4685_v20 = vsel %vm3729_vm4, %v4684_v29, %v4683_v33  ;;  %v4579_v17 = vpack.c.b16 %v4578_v61, %v4578_v61  ;;  %v6730_v33 = vld [vmem:[%s9057_s9 + $0x10] sm:$0xff] }
 0x54f   : > { %4550 = vmatmul.bf16.vlgmr.msra.gmra.mxu3 %v4492_v48  ;;  %v4686_v1 = vpack.c.b16 %v4685_v20, %v4685_v20  ;;  %v6709_v48 = vld [vmem:[%s9055_s7 + $0x368] sm:$0xff] }
 0x551   : > { %4630 = vmatpush.bf16.msra.mxu1 %v6678_v58  ;;  %v6717_v58 = vld [vmem:[%s9055_s7 + $0x3a8] sm:$0xff] }
 0x552   : > { %4737 = vmatpush.bf16.msra.mxu2 %v6686_v25  ;;  %4824 = vmatpush.bf16.msrb.mxu3 %v6694_v2  ;;  %v6725_v25 = vld [vmem:[%s9055_s7 + $0x3e8] sm:$0xff]  ;;  %v6708_v2 = vld [vmem:[%s9055_s7 + $0x360] sm:$0xff] }
 0x555   : > { %4631 = vmatpush.bf16.msra.mxu1 %v6677_v21  ;;  %v6716_v21 = vld [vmem:[%s9055_s7 + $0x3a0] sm:$0xff] }
 0x556   : > { %4738 = vmatpush.bf16.msra.mxu2 %v6685_v63  ;;  %4825 = vmatpush.bf16.msrb.mxu3 %v6693_v46  ;;  %v6724_v63 = vld [vmem:[%s9055_s7 + $0x3e0] sm:$0xff]  ;;  %v6707_v46 = vld [vmem:[%s9055_s7 + $0x358] sm:$0xff] }
 0x559   : > { %4632 = vmatpush.bf16.msra.mxu1 %v6676_v42  ;;  %v6715_v42 = vld [vmem:[%s9055_s7 + $0x398] sm:$0xff] }
 0x55a   : > { %4739 = vmatpush.bf16.msra.mxu2 %v6684_v45  ;;  %4826 = vmatpush.bf16.msrb.mxu3 %v6692_v23  ;;  %v6723_v45 = vld [vmem:[%s9055_s7 + $0x3d8] sm:$0xff]  ;;  %v6706_v23 = vld [vmem:[%s9055_s7 + $0x350] sm:$0xff] }
 0x55d   : > { %4633 = vmatpush.bf16.msra.mxu1 %v6675_v40  ;;  %v6721_v40 = vld [vmem:[%s9055_s7 + $0x3c8] sm:$0xff] }
 0x55e   : > { %4740 = vmatpush.bf16.msra.mxu2 %v6683_v6  ;;  %4827 = vmatpush.bf16.msrb.mxu3 %v6691_v30  ;;  %v6704_v6 = vld [vmem:[%s9055_s7 + $0x340] sm:$0xff] }
 0x55f   : > { %v6720_v30 = vld [vmem:[%s9055_s7 + $0x3c0] sm:$0xff] }
 0x561   : > { %4634 = vmatpush.bf16.msra.mxu1 %v6674_v35 }
 0x562   : > { %4741 = vmatpush.bf16.msra.mxu2 %v6682_v62  ;;  %4828 = vmatpush.bf16.msrb.mxu3 %v6690_v5 }
 0x565   : > { %4635 = vmatpush.bf16.msra.mxu1 %v6673_v3 }
 0x566   : > { %4742 = vmatpush.bf16.msra.mxu2 %v6681_v9  ;;  %4829 = vmatpush.bf16.msrb.mxu3 %v6689_v49 }
 0x569   : > { %4636 = vmatpush.bf16.msra.mxu1 %v6672_v13 }
 0x56a   : > { %4743 = vmatpush.bf16.msra.mxu2 %v6680_v36  ;;  %4830 = vmatpush.bf16.msrb.mxu3 %v6688_v19  ;;  %v6731_v19 = vld [vmem:[%s9057_s9 + $0x18] sm:$0xff] }
 0x56b   : > { %5279 = vmatpush.bf16.msrb.mxu0 %v6731_v19 }
 0x56c   : > { %4637 = vmatmul.bf16.vlgmr.msra.gmra.mxu1 %v4579_v17 }
 0x56d   : > { %5019 = vmatpush.bf16.msrb.mxu1 %v6711_v50  ;;  %4744 = vmatmul.bf16.vlgmr.msra.gmra.mxu2 %v4686_v1  ;;  %v6729_v1 = vld [vmem:[%s9057_s9 + $0x8] sm:$0xff] }
 0x56e   : > { %5127 = vmatpush.bf16.msrb.mxu2 %v6719_v57  ;;  %5215 = vmatpush.bf16.msra.mxu3 %v6727_v28 }
 0x56f   : > { %4831 = vmatmul.bf16.vlgmr.msrb.gmra.mxu3 %v4773_v8  ;;  %5280 = vmatpush.bf16.msrb.mxu0 %v6730_v33 }
 0x571   : > { %5020 = vmatpush.bf16.msrb.mxu1 %v6710_v18 }
 0x572   : > { %5128 = vmatpush.bf16.msrb.mxu2 %v6718_v38  ;;  %5216 = vmatpush.bf16.msra.mxu3 %v6726_v32  ;;  %v6728_v38 = vld [vmem:[%s9057_s9] sm:$0xff]  ;;  %v6733_v32 = vld [vmem:[%s9059_s11 + $0x8] sm:$0xff] }
 0x573   : > { %5281 = vmatpush.bf16.msrb.mxu0 %v6729_v1 }
 0x575   : > { %5021 = vmatpush.bf16.msrb.mxu1 %v6709_v48  ;;  %v6732_v48 = vld [vmem:[%s9059_s11] sm:$0xff] }
 0x576   : > { %5129 = vmatpush.bf16.msrb.mxu2 %v6717_v58  ;;  %5217 = vmatpush.bf16.msra.mxu3 %v6725_v25 }
 0x577   : > { %5282 = vmatpush.bf16.msrb.mxu0 %v6728_v38 }
 0x579   : > { %5022 = vmatpush.bf16.msrb.mxu1 %v6708_v2 }
 0x57a   : > { %5130 = vmatpush.bf16.msrb.mxu2 %v6716_v21  ;;  %5218 = vmatpush.bf16.msra.mxu3 %v6724_v63 }
 0x57d   : > { %5023 = vmatpush.bf16.msrb.mxu1 %v6707_v46  ;;  %v6805_v46 = vld [vmem:[%s9056_s8] ss:$0 sm:$0xff] }
 0x57e   : > { %5131 = vmatpush.bf16.msrb.mxu2 %v6715_v42  ;;  %5219 = vmatpush.bf16.msra.mxu3 %v6723_v45 }
 0x581   : > { %5024 = vmatpush.bf16.msrb.mxu1 %v6706_v23 }
 0x582   : > { %5132 = vmatpush.bf16.msrb.mxu2 %v6714_v55  ;;  %5220 = vmatpush.bf16.msra.mxu3 %v6722_v11 }
 0x585   : > { %5025 = vmatpush.bf16.msrb.mxu1 %v6705_v41 }
 0x586   : > { %5133 = vmatpush.bf16.msrb.mxu2 %v6713_v54  ;;  %5221 = vmatpush.bf16.msra.mxu3 %v6721_v40  ;;  %v6806_v40 = vld [vmem:[%s9058_s10] ss:$0 sm:$0xff] }
 0x589   : > { %5026 = vmatpush.bf16.msrb.mxu1 %v6704_v6 }
 0x58a   : > { %5134 = vmatpush.bf16.msrb.mxu2 %v6712_v43  ;;  %5222 = vmatpush.bf16.msra.mxu3 %v6720_v30 }
 0x58c   : > { %5027 = vmatmul.bf16.vlgmr.msrb.gmra.mxu1 %v4969_v15 }
 0x58d   : > { %5135 = vmatmul.bf16.vlgmr.msrb.gmra.mxu2 %v5077_v53  ;;  %5223 = vmatmul.bf16.vlgmr.msra.gmra.mxu3 %v5165_v34  ;;  %v6807_v34 = vld [vmem:[%s9060_s12] ss:$0 sm:$0xff] }
 0x58e   : > { %5319 = vmatpush.bf16.msra.mxu1 %v6733_v32 }
 0x592   : > { %5320 = vmatpush.bf16.msra.mxu1 %v6732_v48 }
 0x5a9   : > { %v3790_v35 = vpop.f32.mrf.mxu1 }
 0x5ac   : > { %v4940_v62 = vpop.f32.mrf.mxu0 }
 0x5af   : > { %v3859_v10 = vpop.f32.mrf.mxu2 }
 0x5b0   : > { %v3860_v5 = vadd.f32 %v3859_v10, %v3790_v35  ;;  %v3965_v24 = vpop.f32.mrf.mxu3 }
 0x5b1   : > { %v3792_v39 = vpop.f32.mrf.mxu1 }
 0x5b2   : > { %v3969_v7 = vadd.f32 %v3965_v24, %v3860_v5 }
 0x5b4   : > { %v4942_v3 = vpop.f32.mrf.mxu0 }
 0x5b7   : > { %v3861_v9 = vpop.f32.mrf.mxu2 }
 0x5b8   : > { %v3967_v60 = vpop.f32.mrf.mxu3 }
 0x5b9   : > { %v4052_v22 = vpop.f32.mrf.mxu1 }
 0x5ba   : > { %v4056_v13 = vadd.f32 %v4052_v22, %v3969_v7 }
 0x5bf   : > { %v4160_v49 = vpop.f32.mrf.mxu2 }
 0x5c0   : > { %v4248_v37 = vpop.f32.mrf.mxu3  ;;  %v4164_v36 = vadd.f32 %v4160_v49, %v4056_v13 }
 0x5c1   : > { %v4054_v47 = vpop.f32.mrf.mxu1 }
 0x5c2   : > { %v4252_v12 = vadd.f32 %v4248_v37, %v4164_v36 }
 0x5c7   : > { %v4162_v52 = vpop.f32.mrf.mxu2 }
 0x5c8   : > { %v4250_v14 = vpop.f32.mrf.mxu3 }
 0x5c9   : > { %v4356_v31 = vpop.f32.mrf.mxu1 }
 0x5ca   : > { %v4360_v26 = vadd.f32 %v4356_v31, %v4252_v12 }
 0x5d0   : > { %v4444_v16 = vpop.f32.mrf.mxu2 }
 0x5d1   : > { %v4358_v29 = vpop.f32.mrf.mxu1  ;;  %v4448_v50 = vadd.f32 %v4444_v16, %v4360_v26 }
 0x5d2   : > { %v4551_v0 = vpop.f32.mrf.mxu3 }
 0x5d3   : > { %v4555_v4 = vadd.f32 %v4551_v0, %v4448_v50 }
 0x5d8   : > { %v4446_v59 = vpop.f32.mrf.mxu2 }
 0x5da   : > { %v4553_v56 = vpop.f32.mrf.mxu3 }
 0x5e9   : > { %v4638_v44 = vpop.f32.mrf.mxu1 }
 0x5ea   : > { %v4642_v57 = vadd.f32 %v4638_v44, %v4555_v4 }
 0x5f0   : > { %v4745_v28 = vpop.f32.mrf.mxu2 }
 0x5f1   : > { %v4749_v61 = vadd.f32 %v4745_v28, %v4642_v57  ;;  %v4640_v27 = vpop.f32.mrf.mxu1 }
 0x5f2   : > { %v4832_v20 = vpop.f32.mrf.mxu3 }
 0x5f3   : > { %v4836_v51 = vadd.f32 %v4832_v20, %v4749_v61 }
 0x5f5   : > { %v4944_v17 = vadd.f32 %v4940_v62, %v4836_v51 }
 0x5f8   : > { %v4747_v18 = vpop.f32.mrf.mxu2 }
 0x5fa   : > { %v4834_v8 = vpop.f32.mrf.mxu3 }
 0x609   : > { %v5028_v58 = vpop.f32.mrf.mxu1 }
 0x60a   : > { %v5032_v25 = vadd.f32 %v5028_v58, %v4944_v17 }
 0x610   : > { %v5136_v2 = vpop.f32.mrf.mxu2  ;;  %v5224_v21 = vpop.f32.mrf.mxu3 }
 0x611   : > { %v5140_v63 = vadd.f32 %v5136_v2, %v5032_v25  ;;  %v5030_v42 = vpop.f32.mrf.mxu1 }
 0x613   : > { %v5228_v45 = vadd.f32 %v5224_v21, %v5140_v63 }
 0x615   : > { %v5233_v23 = vadd.f32 %v6805_v46, %v5228_v45 }
 0x617   : > { %v5234_v55 = vmax.f32 %v5233_v23, 0.0 }
 0x618   : > { %v5138_v11 = vpop.f32.mrf.mxu2  ;;  %v5226_v41 = vpop.f32.mrf.mxu3 }
 0x619   : > { %v5235_v54 = vpack.c.bf16 %v5234_v55, %v5234_v55 }
 0x61b   : > { %6568 = vmatmul.msk.bf16.vlgmr.msrb.gmra.mxu0 %vm3195_vm1, %v5235_v54 }
 0x698   : > { %v5284_v6 = vpop.f32.mrf.mxu0 }
 0x699   : > { %v5285_v43 = vadd.f32 %v6806_v40, %v5284_v6 }
 0x69b   : > { %v5288_v30 = vmax.f32 %v5285_v43, 0.0 }
 0x69d   : > { %v5289_v15 = vpack.c.bf16 %v5288_v30, %v5288_v30 }
 0x69f   : > { %6577 = vmatmul.msk.bf16.vlgmr.msra.gmra.mxu1 %vm2465_vm0, %v5289_v15 }
 0x6a0   : > { %v5286_v53 = vpop.f32.mrf.mxu0 }
 0x71c   : > { %v5322_v35 = vpop.f32.mrf.mxu1 }
 0x71d   : > { %v5323_v62 = vadd.f32 %v6807_v34, %v5322_v35 }
 0x71f   : > { %5327 = vst.msk [vmem:[%s433_s16] sm:$0xf] %vm5326_vm5, %v5323_v62 }
 0x720   : > { %6837 = shalt.err (!%p6834_p3)
}
 0x721   : > { %6758 = dma.vmem_to_hbm [thread:$0]  (%p6984_p5), %s5342_s20, 64, %s5344_s2, %s5329_s29  }
 0x724   : > { %v5324_v10 = vpop.f32.mrf.mxu1 }
 0x725 PF: > { %p6764_p4 = scmp.ge.s32.totalorder %s6872_s28, 2  ;;  %s5355_s24 = sand.u32 1, %s6860_s25  }
 0x726   : > { %s5356_s0 = scalar_lea.sflag [#allocation6], %s5355_s24 }
 0x727   : > { %p6761_p7 = pnand %p6764_p4, %p6988_p6 }
 0x729   : > { %p6762_p8 = pneg %p6761_p7 }
 0x72b   : > { %6855 = dma.done.wait (%p6762_p8), %s5356_s0, 64  }
 0x72c   : > { %6857 = vsyncadd (%p6762_p8), %s5356_s0, 4294967232  ;;  %p23_p9 = scmp.ge.s32.totalorder %s6971_s14, 4   ;;  %s9089_s25 = smov %s6864_s26 }
 0x72d   : > { %s9090_s26 = smov %s6868_s27  ;;  %s9091_s27 = smov %s6982_s17 }
 0x72e   : > { %s9092_s28 = smov %s6971_s14  ;;  %25 = sbr.rel (!%p23_p9) target bundleno = 9 (0x9), region = 413 }
 0x733   :  { %5362 = vsyncpa [#allocation6], 1 }
 0x734   :  { %5364 = vsyncpa [#allocation6 + $0x1], 1 }

</bundles_post_ra>
